<compile_context>
chip_gen: v5e
topology: v5e:2x2
jax: 0.10.0
libtpu: 0.0.40
codegen_flags: <defaults>
</compile_context>

<pallas_src>
import functools
import math

import jax
import jax.numpy as jnp
from jax import lax
from jax.experimental import pallas as pl
from jax.experimental.pallas import tpu as pltpu

# VGG16 "D" feature configuration (conv channels, 'M' = 2x2 maxpool).
VGG16_CFG = (64, 64, 'M', 128, 128, 'M', 256, 256, 256, 'M',
             512, 512, 512, 'M', 512, 512, 512, 'M')


def _pick_vmem_limit():
    """Per-generation scoped-VMEM budget (~half of physical, capped at 96 MiB)."""
    cap = 64 * 1024 * 1024
    try:
        cap = int(pltpu.get_tpu_info().vmem_capacity_bytes)
    except Exception:
        pass
    return int(min(96 * 1024 * 1024, max(32 * 1024 * 1024, cap // 2)))


VMEM_LIMIT = _pick_vmem_limit()


def _largest_divisor_le(n, cap):
    d = max(1, min(n, cap))
    while n % d:
        d -= 1
    return d


def _largest_even_divisor_le(n, cap):
    """Largest even divisor of n that is <= cap (n is assumed even)."""
    best = 2
    d = 2
    top = min(n, max(2, cap))
    while d <= top:
        if n % d == 0:
            best = d
        d += 2
    return best


def _shift_rows(y, k):
    """y'[p] = y[(p + k) mod m] along axis 0.

    Built from explicit slices + concat (== jnp.roll(y, -k, 0)) so the shift
    direction is guaranteed by construction.  k is 0/1/2, so the wrapped head
    only lands in the two discarded padding columns of the conv accumulator.
    """
    if k == 0:
        return y
    return jnp.concatenate([y[k:], y[:k]], axis=0)


# ---------------------------------------------------------------------------
# Kernels
# ---------------------------------------------------------------------------
def _conv3x3_kernel(body_ref, halo_ref, w_ref, b_ref, o_ref, *, th, w_out, relu):
    """3x3 conv (stride 1, pad 1) on one row tile, bf16 MXU / f32 accumulation.

    body_ref: (1, th, W+2, Cin)  bf16 — padded rows [t*th, t*th+th)
    halo_ref: (1, 2,  W+2, Cin)  bf16 — padded rows [t*th+th, t*th+th+2)
    w_ref:    (9, Cin, Cout)     bf16 — taps ordered dy*3+dx
    b_ref:    (1, Cout)          f32
    o_ref:    (1, th, W, Cout)   bf16
    """
    wp2 = w_out + 2
    cin = body_ref.shape[-1]
    cout = o_ref.shape[-1]
    m = th * wp2

    body = body_ref[0]                                   # (th, W+2, Cin) bf16
    halo = halo_ref[0]                                    # (2,  W+2, Cin) bf16
    # Row bands for the three dy taps (band_dy[r] = padded row t*th + r + dy).
    bands = (
        body.reshape(m, cin),
        jnp.concatenate([body[1:], halo[:1]], axis=0).reshape(m, cin),
        jnp.concatenate([body[2:], halo[:2]], axis=0).reshape(m, cin),
    )

    acc = None
    for dx in range(3):
        # Sum the 3 dy taps of this column offset with unshifted matmuls
        # (bf16 x bf16 -> f32 on the MXU), ...
        z = None
        for dy in range(3):
            y = jnp.dot(bands[dy], w_ref[dy * 3 + dx],
                        preferred_element_type=jnp.float32)
            z = y if z is None else z + y
        # ... then align the column tap by shifting the f32 *output* (the two
        # wrapped rows only touch the padding columns, which are discarded).
        z = _shift_rows(z, dx)
        acc = z if acc is None else acc + z

    acc = acc + b_ref[...]
    if relu:
        acc = jnp.maximum(acc, 0.0)
    o_ref[0] = acc.reshape(th, wp2, cout)[:, :w_out, :].astype(o_ref.dtype)


def _mm_bias_act_kernel(x_ref, w_ref, b_ref, o_ref, *, relu):
    # Single folded-K MXU matmul: (1, tp, K) @ (K, Cout) + bias (+ ReLU).
    acc = jnp.dot(x_ref[0], w_ref[...], preferred_element_type=jnp.float32)
    acc = acc + b_ref[...]
    if relu:
        acc = jnp.maximum(acc, 0.0)
    o_ref[0] = acc.astype(o_ref.dtype)


def _maxpool_kernel(x_ref, o_ref):
    # x_ref: (1, tr, 2, W2, 2C) metadata-reshaped view of NHWC; o_ref: (1, tr, W2, C).
    # Row pair lives on a leading axis, column pair is packed into the lanes.
    c = o_ref.shape[-1]
    a = jnp.maximum(x_ref[0, :, 0, :, :], x_ref[0, :, 1, :, :])   # row-pair max
    o_ref[0] = jnp.maximum(a[:, :, :c], a[:, :, c:])              # column-pair max


def _adaptive_avgpool_kernel(x_ref, o_ref, *, out_hw):
    # x_ref: (1, Hf, Wf, C) bf16, o_ref: (1, oh, ow, C)
    Hf, Wf = x_ref.shape[1], x_ref.shape[2]
    oh, ow = out_hw
    x = x_ref[0].astype(jnp.float32)
    rows = []
    for i in range(oh):
        h0 = (i * Hf) // oh
        h1 = -((-(i + 1) * Hf) // oh)        # ceil((i+1)*Hf/oh)
        cols = []
        for j in range(ow):
            w0 = (j * Wf) // ow
            w1 = -((-(j + 1) * Wf) // ow)    # ceil((j+1)*Wf/ow)
            win = x[h0:h1, w0:w1, :]
            cnt = (h1 - h0) * (w1 - w0)
            cols.append(jnp.sum(win, axis=(0, 1), keepdims=True) * (1.0 / cnt))
        rows.append(jnp.concatenate(cols, axis=1))
    o_ref[0] = jnp.concatenate(rows, axis=0).astype(o_ref.dtype)


# ---------------------------------------------------------------------------
# Pallas wrappers
# ---------------------------------------------------------------------------
def _matmul_bias_act(x, w, b, *, relu, out_dtype):
    """x: (N, P, K) bf16, w: (K, Cout) bf16, b: (Cout,) f32 -> (N, P, Cout)."""
    N, P, K = x.shape
    Cout = w.shape[-1]
    tp = _largest_divisor_le(P, 2048)
    return pl.pallas_call(
        functools.partial(_mm_bias_act_kernel, relu=relu),
        out_shape=jax.ShapeDtypeStruct((N, P, Cout), out_dtype),
        grid_spec=pltpu.PrefetchScalarGridSpec(
            num_scalar_prefetch=0,
            grid=(N, P // tp),
            in_specs=[
                pl.BlockSpec((1, tp, K), lambda n, p: (n, p, 0)),
                pl.BlockSpec((K, Cout), lambda n, p: (0, 0)),      # resident weights
                pl.BlockSpec((1, Cout), lambda n, p: (0, 0)),
            ],
            out_specs=pl.BlockSpec((1, tp, Cout), lambda n, p: (n, p, 0)),
        ),
        compiler_params=pltpu.CompilerParams(
            dimension_semantics=("parallel", "parallel"),
            vmem_limit_bytes=VMEM_LIMIT,
        ),
    )(x, w, b.reshape(1, Cout))


def conv3x3_relu(x, w, b, row_cap=None):
    """3x3 conv, stride 1, pad 1, + bias + ReLU.  x: (N,H,W,Cin), w: (3,3,Cin,Cout)."""
    N, H, W, Cin = x.shape
    Cout = w.shape[-1]
    x = x.astype(jnp.bfloat16)
    b32 = b.astype(jnp.float32)
    xp = jnp.pad(x, ((0, 0), (1, 1), (1, 1), (0, 0)))     # padded activation (bf16)

    if Cin >= 8 and H % 2 == 0:
        # Halo path: the padded activation is passed twice — a th-row body block
        # plus a 2-row bottom-halo block — so the overlapping window per row
        # tile comes straight from pipelined DMAs (no gathered copy in HBM).
        bytes_per_row = (W + 2) * max(Cin, Cout) * 4       # f32 accumulator row
        cap = max(2, (VMEM_LIMIT // 8) // bytes_per_row)
        if row_cap is not None:
            cap = max(2, min(cap, row_cap))
        th = _largest_even_divisor_le(H, cap)
        T = H // th
        half_th = th // 2
        wt = w.reshape(9, Cin, Cout).astype(jnp.bfloat16)
        return pl.pallas_call(
            functools.partial(_conv3x3_kernel, th=th, w_out=W, relu=True),
            out_shape=jax.ShapeDtypeStruct((N, H, W, Cout), jnp.bfloat16),
            grid_spec=pltpu.PrefetchScalarGridSpec(
                num_scalar_prefetch=0,
                grid=(N, T),
                in_specs=[
                    # body: padded rows [t*th, t*th+th)
                    pl.BlockSpec((1, th, W + 2, Cin), lambda n, t: (n, t, 0, 0)),
                    # bottom halo: padded rows [t*th+th, t*th+th+2)
                    pl.BlockSpec((1, 2, W + 2, Cin),
                                 lambda n, t: (n, (t + 1) * half_th, 0, 0)),
                    pl.BlockSpec((9, Cin, Cout), lambda n, t: (0, 0, 0)),
                    pl.BlockSpec((1, Cout), lambda n, t: (0, 0)),
                ],
                out_specs=pl.BlockSpec((1, th, W, Cout), lambda n, t: (n, t, 0, 0)),
            ),
            compiler_params=pltpu.CompilerParams(
                dimension_semantics=("parallel", "parallel"),
                vmem_limit_bytes=VMEM_LIMIT,
            ),
        )(xp, xp, wt, b32.reshape(1, Cout))

    # Fallback (3-channel first layer / odd spatial dims): folded im2col
    # (K = 9*Cin) so each block is one big-K bf16 MXU matmul.
    cols = jnp.concatenate(
        [xp[:, dy:dy + H, dx:dx + W, :].reshape(N, H * W, Cin)
         for dy in range(3) for dx in range(3)], axis=-1)          # (N, P, 9*Cin)
    out = _matmul_bias_act(cols, w.reshape(9 * Cin, Cout).astype(jnp.bfloat16),
                           b32, relu=True, out_dtype=jnp.bfloat16)
    return out.reshape(N, H, W, Cout)


def conv1x1(x, w, b, out_dtype=jnp.float32):
    """1x1 conv + bias (no activation).  x: (N,H,W,Cin), w: (Cin,Cout)."""
    N, H, W, Cin = x.shape
    Cout = w.shape[-1]
    cols = x.reshape(N, H * W, Cin).astype(jnp.bfloat16)
    out = _matmul_bias_act(cols, w.astype(jnp.bfloat16), b.astype(jnp.float32),
                           relu=False, out_dtype=out_dtype)
    return out.reshape(N, H, W, Cout)


def maxpool2x2(x):
    """2x2 max pool, stride 2.  x: (N,H,W,C) with even H, W."""
    N, H, W, C = x.shape
    assert H % 2 == 0 and W % 2 == 0, "2x2 maxpool requires even spatial dims"
    H2, W2 = H // 2, W // 2
    # Pure row-major metadata reshape: row pair -> leading axis, column pair -> lanes.
    xr = x.reshape(N, H2, 2, W2, 2 * C)
    bytes_per_row = max(1, W2 * C * 10)                    # bf16 in (8x) + out (2x)
    tr = _largest_divisor_le(H2, max(1, (VMEM_LIMIT // 16) // bytes_per_row))
    return pl.pallas_call(
        _maxpool_kernel,
        out_shape=jax.ShapeDtypeStruct((N, H2, W2, C), x.dtype),
        grid_spec=pltpu.PrefetchScalarGridSpec(
            num_scalar_prefetch=0,
            grid=(N, H2 // tr),
            in_specs=[pl.BlockSpec((1, tr, 2, W2, 2 * C),
                                   lambda n, t: (n, t, 0, 0, 0))],
            out_specs=pl.BlockSpec((1, tr, W2, C), lambda n, t: (n, t, 0, 0)),
        ),
        compiler_params=pltpu.CompilerParams(
            dimension_semantics=("parallel", "parallel"),
            vmem_limit_bytes=VMEM_LIMIT,
        ),
    )(xr)


def adaptive_avgpool(x, out_hw):
    """AdaptiveAvgPool2d to out_hw.  x: (N,Hf,Wf,C)."""
    N, Hf, Wf, C = x.shape
    oh, ow = out_hw
    kernel = functools.partial(_adaptive_avgpool_kernel, out_hw=out_hw)
    return pl.pallas_call(
        kernel,
        out_shape=jax.ShapeDtypeStruct((N, oh, ow, C), x.dtype),
        grid_spec=pltpu.PrefetchScalarGridSpec(
            num_scalar_prefetch=0,
            grid=(N,),
            in_specs=[pl.BlockSpec((1, Hf, Wf, C), lambda n: (n, 0, 0, 0))],
            out_specs=pl.BlockSpec((1, oh, ow, C), lambda n: (n, 0, 0, 0)),
        ),
        compiler_params=pltpu.CompilerParams(
            dimension_semantics=("parallel",),
            vmem_limit_bytes=VMEM_LIMIT,
        ),
    )(x)


# ---------------------------------------------------------------------------
# Backbone (VGG16 body, return_layers={'avgpool': '0'}) + 1x1 projection
# ---------------------------------------------------------------------------
def init_backbone_params(key, num_channels=2048, dtype=jnp.float32):
    """Deterministic synthetic init (He init for convs, zero biases)."""
    # TODO(synk): checkpoint loading (torch.load / state_dict remap) has no Pallas
    # equivalent; weights are initialized synthetically instead.
    params = {'features': []}
    cin = 3
    for v in VGG16_CFG:
        if v == 'M':
            continue
        key, kw = jax.random.split(key)
        std = math.sqrt(2.0 / (9 * cin))
        w = jax.random.normal(kw, (3, 3, cin, v), dtype) * std
        b = jnp.zeros((v,), dtype)
        params['features'].append((w, b))
        cin = v
    key, kw = jax.random.split(key)
    params['proj_w'] = jax.random.normal(kw, (cin, num_channels), dtype) * math.sqrt(1.0 / cin)
    params['proj_b'] = jnp.zeros((num_channels,), dtype)
    return params


def backbone_forward(params, tensors_nchw, mask):
    """
    Mirrors Backbone.forward(NestedTensor(tensors, mask)) for net_type='vgg':
      features -> adaptive avgpool (7,7) -> mask nearest-resize -> 1x1 conv.
    Returns {'0': (features_nchw, resized_mask)}.
    """
    x = jnp.transpose(tensors_nchw, (0, 2, 3, 1)).astype(jnp.bfloat16)  # NCHW -> NHWC bf16
    conv_idx = 0
    for v in VGG16_CFG:
        if v == 'M':
            x = maxpool2x2(x)
        else:
            w, b = params['features'][conv_idx]
            conv_idx += 1
            x = conv3x3_relu(x, w, b)
    x = adaptive_avgpool(x, (7, 7))            # VGG avgpool output (N, 7, 7, 512)

    # glue: F.interpolate(mask[None].float(), size=(7,7)).bool()[0]  (mode='nearest')
    N, Hm, Wm = mask.shape
    oh, ow = x.shape[1], x.shape[2]
    hs = jnp.array([(i * Hm) // oh for i in range(oh)], dtype=jnp.int32)
    ws = jnp.array([(j * Wm) // ow for j in range(ow)], dtype=jnp.int32)
    mask_out = mask[:, hs, :][:, :, ws]

    h = conv1x1(x, params['proj_w'], params['proj_b'], out_dtype=jnp.float32)
    h = jnp.transpose(h, (0, 3, 1, 2))                   # back to NCHW
    return {'0': (h, mask_out)}


def _check_conv_against_reference():
    """Validate the halo-path conv (incl. multi-row-tile indexing) vs. lax.conv."""
    k1, k2, k3 = jax.random.split(jax.random.PRNGKey(1), 3)
    N, H, W, Cin, Cout = 1, 16, 16, 64, 128
    x = jax.random.normal(k1, (N, H, W, Cin), jnp.float32)
    w = jax.random.normal(k2, (3, 3, Cin, Cout), jnp.float32) * 0.05
    b = jax.random.normal(k3, (Cout,), jnp.float32) * 0.1
    out = conv3x3_relu(x, w, b, row_cap=8).astype(jnp.float32)   # forces 2 row tiles
    xb = x.astype(jnp.bfloat16).astype(jnp.float32)
    wb = w.astype(jnp.bfloat16).astype(jnp.float32)
    ref = lax.conv_general_dilated(
        xb, wb, window_strides=(1, 1), padding='SAME',
        dimension_numbers=('NHWC', 'HWIO', 'NHWC'))
    ref = jnp.maximum(ref + b[None, None, None, :], 0.0)
    err = float(jnp.max(jnp.abs(out - ref)))
    scale = float(jnp.max(jnp.abs(ref))) + 1.0
    assert err <= 0.05 * scale, (err, scale)


if __name__ == "__main__":
    # Sanity-check the halo-tiled 3x3 conv against a pure-JAX reference.
    _check_conv_against_reference()

    key = jax.random.PRNGKey(0)
    pkey, xkey = jax.random.split(key)

    num_channels = 2048
    params = init_backbone_params(pkey, num_channels=num_channels)

    # Small image batch (NCHW, like PyTorch) + padding mask.
    tensors = jax.random.normal(xkey, (2, 3, 64, 64), jnp.float32)
    rows = jnp.arange(64)
    mask = ((rows[None, :, None] + rows[None, None, :]) % 5) < 2
    mask = jnp.broadcast_to(mask, (2, 64, 64))

    fwd = jax.jit(backbone_forward)
    out = fwd(params, tensors, mask)
    h, m = out['0']
    jax.block_until_ready((h, m))

    assert h.shape == (2, num_channels, 7, 7), h.shape
    assert m.shape == (2, 7, 7) and m.dtype == jnp.bool_, (m.shape, m.dtype)
    assert bool(jnp.all(jnp.isfinite(h)))
    print("KERNEL_OK")
</pallas_src>

<mosaic_0001>
module attributes {stable_mosaic.version = 11 : i64} {
  func.func @_conv3x3_kernel(%arg0: i32, %arg1: i32, %arg2: memref<1x8x18x64xbf16, #tpu.memory_space<vmem>>, %arg3: memref<1x2x18x64xbf16, #tpu.memory_space<vmem>>, %arg4: memref<9x64x128xbf16, #tpu.memory_space<vmem>>, %arg5: memref<1x128xf32, #tpu.memory_space<vmem>>, %arg6: memref<1x8x16x128xbf16, #tpu.memory_space<vmem>>) attributes {dimension_semantics = [#tpu.dimension_semantics<parallel>, #tpu.dimension_semantics<parallel>], iteration_bounds = array<i64: 1, 2>, scalar_prefetch = 0 : i64, scratch_operands = 0 : i64, tpu.core_type = #tpu.core_type<tc>, window_params = [{transform_indices = @transform_0, window_bounds = array<i64: 1, 8, 18, 64>}, {transform_indices = @transform_1, window_bounds = array<i64: 1, 2, 18, 64>}, {pipeline_mode = #tpu.pipeline_mode<synchronous>, transform_indices = @transform_2, window_bounds = array<i64: 9, 64, 128>}, {pipeline_mode = #tpu.pipeline_mode<synchronous>, transform_indices = @transform_3, window_bounds = array<i64: 1, 128>}, {transform_indices = @transform_4, window_bounds = array<i64: 1, 8, 16, 128>}]} {
    %c0 = arith.constant 0 : index
    %c0_0 = arith.constant 0 : index
    %c0_1 = arith.constant 0 : index
    %c0_2 = arith.constant 0 : index
    %0 = vector.load %arg2[%c0, %c0_0, %c0_1, %c0_2] : memref<1x8x18x64xbf16, #tpu.memory_space<vmem>>, vector<1x8x18x64xbf16>
    %1 = vector.shape_cast %0 : vector<1x8x18x64xbf16> to vector<8x18x64xbf16>
    %c0_3 = arith.constant 0 : index
    %c0_4 = arith.constant 0 : index
    %c0_5 = arith.constant 0 : index
    %c0_6 = arith.constant 0 : index
    %2 = vector.load %arg3[%c0_3, %c0_4, %c0_5, %c0_6] : memref<1x2x18x64xbf16, #tpu.memory_space<vmem>>, vector<1x2x18x64xbf16>
    %3 = vector.shape_cast %2 : vector<1x2x18x64xbf16> to vector<2x18x64xbf16>
    %4 = vector.shape_cast %1 : vector<8x18x64xbf16> to vector<144x64xbf16>
    %5 = vector.extract_strided_slice %1 {offsets = [1, 0, 0], sizes = [7, 18, 64], strides = [1, 1, 1]} : vector<8x18x64xbf16> to vector<7x18x64xbf16>
    %6 = vector.extract_strided_slice %3 {offsets = [0, 0, 0], sizes = [1, 18, 64], strides = [1, 1, 1]} : vector<2x18x64xbf16> to vector<1x18x64xbf16>
    %7 = tpu.concatenate %5, %6 in 0 : vector<7x18x64xbf16>, vector<1x18x64xbf16> -> vector<8x18x64xbf16>
    %8 = vector.shape_cast %7 : vector<8x18x64xbf16> to vector<144x64xbf16>
    %9 = vector.extract_strided_slice %1 {offsets = [2, 0, 0], sizes = [6, 18, 64], strides = [1, 1, 1]} : vector<8x18x64xbf16> to vector<6x18x64xbf16>
    %10 = tpu.concatenate %9, %3 in 0 : vector<6x18x64xbf16>, vector<2x18x64xbf16> -> vector<8x18x64xbf16>
    %11 = vector.shape_cast %10 : vector<8x18x64xbf16> to vector<144x64xbf16>
    %c0_7 = arith.constant 0 : index
    %c0_8 = arith.constant 0 : index
    %c0_9 = arith.constant 0 : index
    %12 = vector.load %arg4[%c0_7, %c0_8, %c0_9] : memref<9x64x128xbf16, #tpu.memory_space<vmem>>, vector<1x64x128xbf16>
    %13 = vector.shape_cast %12 : vector<1x64x128xbf16> to vector<64x128xbf16>
    %cst = arith.constant dense<0.000000e+00> : vector<144x128xf32>
    %14 = tpu.matmul %4, %13, %cst {dimension_numbers = #tpu.dot_dimension_numbers<[1], [0], [0], [1], [0, 0, 1, 1], [], []>} : vector<144x64xbf16>, vector<64x128xbf16>, vector<144x128xf32> -> vector<144x128xf32>
    %c3 = arith.constant 3 : index
    %c0_10 = arith.constant 0 : index
    %c0_11 = arith.constant 0 : index
    %15 = vector.load %arg4[%c3, %c0_10, %c0_11] : memref<9x64x128xbf16, #tpu.memory_space<vmem>>, vector<1x64x128xbf16>
    %16 = vector.shape_cast %15 : vector<1x64x128xbf16> to vector<64x128xbf16>
    %cst_12 = arith.constant dense<0.000000e+00> : vector<144x128xf32>
    %17 = tpu.matmul %8, %16, %cst_12 {dimension_numbers = #tpu.dot_dimension_numbers<[1], [0], [0], [1], [0, 0, 1, 1], [], []>} : vector<144x64xbf16>, vector<64x128xbf16>, vector<144x128xf32> -> vector<144x128xf32>
    %18 = arith.addf %14, %17 : vector<144x128xf32>
    %c6 = arith.constant 6 : index
    %c0_13 = arith.constant 0 : index
    %c0_14 = arith.constant 0 : index
    %19 = vector.load %arg4[%c6, %c0_13, %c0_14] : memref<9x64x128xbf16, #tpu.memory_space<vmem>>, vector<1x64x128xbf16>
    %20 = vector.shape_cast %19 : vector<1x64x128xbf16> to vector<64x128xbf16>
    %cst_15 = arith.constant dense<0.000000e+00> : vector<144x128xf32>
    %21 = tpu.matmul %11, %20, %cst_15 {dimension_numbers = #tpu.dot_dimension_numbers<[1], [0], [0], [1], [0, 0, 1, 1], [], []>} : vector<144x64xbf16>, vector<64x128xbf16>, vector<144x128xf32> -> vector<144x128xf32>
    %22 = arith.addf %18, %21 : vector<144x128xf32>
    %c1 = arith.constant 1 : index
    %c0_16 = arith.constant 0 : index
    %c0_17 = arith.constant 0 : index
    %23 = vector.load %arg4[%c1, %c0_16, %c0_17] : memref<9x64x128xbf16, #tpu.memory_space<vmem>>, vector<1x64x128xbf16>
    %24 = vector.shape_cast %23 : vector<1x64x128xbf16> to vector<64x128xbf16>
    %cst_18 = arith.constant dense<0.000000e+00> : vector<144x128xf32>
    %25 = tpu.matmul %4, %24, %cst_18 {dimension_numbers = #tpu.dot_dimension_numbers<[1], [0], [0], [1], [0, 0, 1, 1], [], []>} : vector<144x64xbf16>, vector<64x128xbf16>, vector<144x128xf32> -> vector<144x128xf32>
    %c4 = arith.constant 4 : index
    %c0_19 = arith.constant 0 : index
    %c0_20 = arith.constant 0 : index
    %26 = vector.load %arg4[%c4, %c0_19, %c0_20] : memref<9x64x128xbf16, #tpu.memory_space<vmem>>, vector<1x64x128xbf16>
    %27 = vector.shape_cast %26 : vector<1x64x128xbf16> to vector<64x128xbf16>
    %cst_21 = arith.constant dense<0.000000e+00> : vector<144x128xf32>
    %28 = tpu.matmul %8, %27, %cst_21 {dimension_numbers = #tpu.dot_dimension_numbers<[1], [0], [0], [1], [0, 0, 1, 1], [], []>} : vector<144x64xbf16>, vector<64x128xbf16>, vector<144x128xf32> -> vector<144x128xf32>
    %29 = arith.addf %25, %28 : vector<144x128xf32>
    %c7 = arith.constant 7 : index
    %c0_22 = arith.constant 0 : index
    %c0_23 = arith.constant 0 : index
    %30 = vector.load %arg4[%c7, %c0_22, %c0_23] : memref<9x64x128xbf16, #tpu.memory_space<vmem>>, vector<1x64x128xbf16>
    %31 = vector.shape_cast %30 : vector<1x64x128xbf16> to vector<64x128xbf16>
    %cst_24 = arith.constant dense<0.000000e+00> : vector<144x128xf32>
    %32 = tpu.matmul %11, %31, %cst_24 {dimension_numbers = #tpu.dot_dimension_numbers<[1], [0], [0], [1], [0, 0, 1, 1], [], []>} : vector<144x64xbf16>, vector<64x128xbf16>, vector<144x128xf32> -> vector<144x128xf32>
    %33 = arith.addf %29, %32 : vector<144x128xf32>
    %34 = vector.extract_strided_slice %33 {offsets = [1, 0], sizes = [143, 128], strides = [1, 1]} : vector<144x128xf32> to vector<143x128xf32>
    %35 = vector.extract_strided_slice %33 {offsets = [0, 0], sizes = [1, 128], strides = [1, 1]} : vector<144x128xf32> to vector<1x128xf32>
    %36 = tpu.concatenate %34, %35 in 0 : vector<143x128xf32>, vector<1x128xf32> -> vector<144x128xf32>
    %37 = arith.addf %22, %36 : vector<144x128xf32>
    %c2 = arith.constant 2 : index
    %c0_25 = arith.constant 0 : index
    %c0_26 = arith.constant 0 : index
    %38 = vector.load %arg4[%c2, %c0_25, %c0_26] : memref<9x64x128xbf16, #tpu.memory_space<vmem>>, vector<1x64x128xbf16>
    %39 = vector.shape_cast %38 : vector<1x64x128xbf16> to vector<64x128xbf16>
    %cst_27 = arith.constant dense<0.000000e+00> : vector<144x128xf32>
    %40 = tpu.matmul %4, %39, %cst_27 {dimension_numbers = #tpu.dot_dimension_numbers<[1], [0], [0], [1], [0, 0, 1, 1], [], []>} : vector<144x64xbf16>, vector<64x128xbf16>, vector<144x128xf32> -> vector<144x128xf32>
    %c5 = arith.constant 5 : index
    %c0_28 = arith.constant 0 : index
    %c0_29 = arith.constant 0 : index
    %41 = vector.load %arg4[%c5, %c0_28, %c0_29] : memref<9x64x128xbf16, #tpu.memory_space<vmem>>, vector<1x64x128xbf16>
    %42 = vector.shape_cast %41 : vector<1x64x128xbf16> to vector<64x128xbf16>
    %cst_30 = arith.constant dense<0.000000e+00> : vector<144x128xf32>
    %43 = tpu.matmul %8, %42, %cst_30 {dimension_numbers = #tpu.dot_dimension_numbers<[1], [0], [0], [1], [0, 0, 1, 1], [], []>} : vector<144x64xbf16>, vector<64x128xbf16>, vector<144x128xf32> -> vector<144x128xf32>
    %44 = arith.addf %40, %43 : vector<144x128xf32>
    %c8 = arith.constant 8 : index
    %c0_31 = arith.constant 0 : index
    %c0_32 = arith.constant 0 : index
    %45 = vector.load %arg4[%c8, %c0_31, %c0_32] : memref<9x64x128xbf16, #tpu.memory_space<vmem>>, vector<1x64x128xbf16>
    %46 = vector.shape_cast %45 : vector<1x64x128xbf16> to vector<64x128xbf16>
    %cst_33 = arith.constant dense<0.000000e+00> : vector<144x128xf32>
    %47 = tpu.matmul %11, %46, %cst_33 {dimension_numbers = #tpu.dot_dimension_numbers<[1], [0], [0], [1], [0, 0, 1, 1], [], []>} : vector<144x64xbf16>, vector<64x128xbf16>, vector<144x128xf32> -> vector<144x128xf32>
    %48 = arith.addf %44, %47 : vector<144x128xf32>
    %49 = vector.extract_strided_slice %48 {offsets = [2, 0], sizes = [142, 128], strides = [1, 1]} : vector<144x128xf32> to vector<142x128xf32>
    %50 = vector.extract_strided_slice %48 {offsets = [0, 0], sizes = [2, 128], strides = [1, 1]} : vector<144x128xf32> to vector<2x128xf32>
    %51 = tpu.concatenate %49, %50 in 0 : vector<142x128xf32>, vector<2x128xf32> -> vector<144x128xf32>
    %52 = arith.addf %37, %51 : vector<144x128xf32>
    %c0_34 = arith.constant 0 : index
    %c0_35 = arith.constant 0 : index
    %53 = vector.load %arg5[%c0_34, %c0_35] : memref<1x128xf32, #tpu.memory_space<vmem>>, vector<1x128xf32>
    %54 = vector.broadcast %53 : vector<1x128xf32> to vector<144x128xf32>
    %55 = arith.addf %52, %54 : vector<144x128xf32>
    %cst_36 = arith.constant 0.000000e+00 : f32
    %56 = vector.broadcast %cst_36 : f32 to vector<144x128xf32>
    %57 = arith.maximumf %55, %56 : vector<144x128xf32>
    %58 = vector.shape_cast %57 : vector<144x128xf32> to vector<8x18x128xf32>
    %59 = vector.extract_strided_slice %58 {offsets = [0, 0, 0], sizes = [8, 16, 128], strides = [1, 1, 1]} : vector<8x18x128xf32> to vector<8x16x128xf32>
    %60 = arith.truncf %59 : vector<8x16x128xf32> to vector<8x16x128xbf16>
    %c0_37 = arith.constant 0 : index
    %c0_38 = arith.constant 0 : index
    %c0_39 = arith.constant 0 : index
    %c0_40 = arith.constant 0 : index
    %61 = vector.load %arg6[%c0_37, %c0_38, %c0_39, %c0_40] : memref<1x8x16x128xbf16, #tpu.memory_space<vmem>>, vector<1x8x16x128xbf16>
    %62 = vector.shape_cast %61 : vector<1x8x16x128xbf16> to vector<8x16x128xbf16>
    %63 = vector.shape_cast %60 : vector<8x16x128xbf16> to vector<1x8x16x128xbf16>
    tpu.vector_store %arg6[%c0_37, %c0_38, %c0_39, %c0_40], %63 {strides = array<i32>} : memref<1x8x16x128xbf16, #tpu.memory_space<vmem>>, vector<1x8x16x128xbf16>,
    return
  }
  func.func @transform_0(%arg0: i32, %arg1: i32) -> (i32, i32, i32, i32) {
    %c0_i32 = arith.constant 0 : i32
    %c0_i32_0 = arith.constant 0 : i32
    %c0_i32_1 = arith.constant 0 : i32
    return %arg0, %arg1, %c0_i32, %c0_i32_0 : i32, i32, i32, i32
  }
  func.func @transform_1(%arg0: i32, %arg1: i32) -> (i32, i32, i32, i32) {
    %c1_i32 = arith.constant 1 : i32
    %0 = arith.addi %arg1, %c1_i32 : i32
    %c4_i32 = arith.constant 4 : i32
    %1 = arith.muli %0, %c4_i32 : i32
    %c0_i32 = arith.constant 0 : i32
    %c0_i32_0 = arith.constant 0 : i32
    %c0_i32_1 = arith.constant 0 : i32
    return %arg0, %1, %c0_i32, %c0_i32_0 : i32, i32, i32, i32
  }
  func.func @transform_2(%arg0: i32, %arg1: i32) -> (i32, i32, i32) {
    %c0_i32 = arith.constant 0 : i32
    %c0_i32_0 = arith.constant 0 : i32
    %c0_i32_1 = arith.constant 0 : i32
    %c0_i32_2 = arith.constant 0 : i32
    return %c0_i32, %c0_i32_0, %c0_i32_1 : i32, i32, i32
  }
  func.func @transform_3(%arg0: i32, %arg1: i32) -> (i32, i32) {
    %c0_i32 = arith.constant 0 : i32
    %c0_i32_0 = arith.constant 0 : i32
    %c0_i32_1 = arith.constant 0 : i32
    return %c0_i32, %c0_i32_0 : i32, i32
  }
  func.func @transform_4(%arg0: i32, %arg1: i32) -> (i32, i32, i32, i32) {
    %c0_i32 = arith.constant 0 : i32
    %c0_i32_0 = arith.constant 0 : i32
    %c0_i32_1 = arith.constant 0 : i32
    return %arg0, %arg1, %c0_i32, %c0_i32_0 : i32, i32, i32, i32
  }
}

</mosaic_0001>

<bundles_post_ra>
// kernel: tpu_custom_call.1
= control target key start
LH: loop header
LB: loop body
LE: loop exit
PB: predicated region body
PF: predicated region fallthrough
CT: control target
= control target key end

     0   :  { %s5440_s0 = inlined_call_operand.hbm [shape: bf16[1,18,18,64], index: 0, kind: input, shape index: {}]   ;;  %s5441_s1 = inlined_call_operand.hbm [shape: bf16[1,18,18,64], index: 1, kind: input, shape index: {}]   ;;  %s5442_s2 = inlined_call_operand.hbm [shape: bf16[9,64,128], index: 2, kind: input, shape index: {}]   ;;  %s5443_s3 = inlined_call_operand.vmem [shape: f32[1,128], index: 3, kind: input, shape index: {}]   ;;  %s5444_s4 = inlined_call_operand.hbm [shape: bf16[1,16,16,128], index: 4, kind: output, shape index: {}]  }
   0x1   :  { %5637 = sst [smem:[#allocation111_spill]] %s5440_s0 }
   0x2   :  { %5638 = sst [smem:[#allocation112_spill]] %s5442_s2 }
   0x3   :  { %9 = vsyncpa [#allocation3], 0 }
   0x4   :  { %11 = vsyncpa [#allocation3 + $0x1], 0 }
   0x5   :  { %12 = vsyncpa [#allocation6], 0 }
   0x6   :  { %14 = vsyncpa [#allocation6 + $0x1], 0 }
   0x7   :  { %15 = vsyncpa [#allocation4], 0 }
   0x8   :  { %17 = vsyncpa [#allocation4 + $0x1], 0  ;;  %s3816_s15 = smov 0   ;;  %s3818_s16 = smov 0  }
   0x9   :  { %s3820_s17 = smov 0   ;;  %s3822_s18 = smov 0  }
   0xa   :  { %s3824_s19 = smov 0   ;;  %s3826_s20 = smov 0  }
   0xb   :  { %s3828_s21 = smov 0   ;;  %s3830_s22 = smov 0  }
   0xc   :  { %s3832_s23 = smov 0  }
   0xd LB: > { %5639 = sst [smem:[#allocation13_spill]] %s3759_s18  ;;  %s3862_s24 = sadd.s32 4294967295, %s3779_s23   ;;  %s3779_s23 = sphi %s3832_s23, %s23_s23   ;;  %s3775_s22 = sphi %s3830_s22, %s6014_s22   ;;  %s3771_s21 = sphi %s3828_s21, %s6013_s21   ;;  %s3767_s20 = sphi %s3826_s20, %s6006_s20   ;;  %s3763_s19 = sphi %s3824_s19, %s6012_s19   ;;  %s3759_s18 = sphi %s3822_s18, %s6011_s18   ;;  %s3755_s17 = sphi %s3820_s17, %s6010_s17   ;;  %s3751_s16 = sphi %s3818_s16, %s6009_s16   ;;  %s3747_s15 = sphi %s3816_s15, %s6008_s15  }
   0xe   : > { %5640 = sst [smem:[#allocation14_spill]] %s3767_s20  ;;  %s3109_s25 = sadd.s32 4294967294, %s3779_s23  }
   0xf   : > { %s32_s26 = sadd.s32 1, %s3775_s22  ;;  %s44_s27 = sadd.s32 1, %s3767_s20 }
  0x10   : > { %p33_p0 = scmp.ge.s32.totalorder %s32_s26, 2  ;;  %p51_p1 = scmp.ne.s32.totalorder %s3767_s20, %s3763_s19 }
  0x11   : > { %p52_p2 = scmp.eq.s32.totalorder %s3779_s23, 0  ;;  %p5445_p3 = scmp.ne.s32.totalorder %s3763_s19, %s3759_s18 }
  0x12   : > { %s6016_s26 = smov (%p33_p0, %s32_s26), 0  ;;  %p58_p5 = scmp.eq.s32.totalorder %s3862_s24, 0 }
  0x13   : > { %5641 = sst [smem:[#allocation15_spill]] %s6016_s26  ;;  %p3879_p4 = por %p52_p2, %p51_p1 }
  0x14   : > { %s40_s29 = ssub.s32 %s3775_s22, %s6016_s26  ;;  %s3358_s30 = sshll.u32 %s3775_s22, 2 }
  0x15   : > { %p42_p6 = scmp.eq.s32.totalorder %s40_s29, 0  ;;  %p3892_p7 = por %p58_p5, %p5445_p3 }
  0x16   : > { %s3359_s6 = sadd.s32 4, %s3358_s30  ;;  %s3360_s7 = sshll.u32 %s6016_s26, 2 }
  0x17   : > { %s5643_s5 = scalar_select %p3892_p7, 1, 0 }
  0x18   : > { %s3898_s8 = scalar_select %p42_p6, %s3767_s20, %s44_s27  }
  0x19   : > { %s3361_s9 = sadd.s32 4, %s3360_s7  ;;  %s76_s10 = sadd.s32 1, %s3755_s17 }
  0x1a   : > { %5644 = sst [smem:[#allocation16_spill]] %s3898_s8  ;;  %s72_s11 = ssub.s32 %s3359_s6, %s3361_s9 }
  0x1b   : > { %p83_p8 = scmp.ne.s32.totalorder %s3755_s17, %s3751_s16  ;;  %p74_p9 = scmp.eq.s32.totalorder %s72_s11, 0 }
  0x1c   : > { %p89_p10 = scmp.ne.s32.totalorder %s3751_s16, %s3747_s15  ;;  %p157_p12 = scmp.eq.s32.totalorder %s3862_s24, 1 }
  0x1d   : > { %p3907_p11 = por %p83_p8, %p52_p2  ;;  %p163_p6 = scmp.eq.s32.totalorder %s3109_s25, 1 }
  0x1e   : > { %s3913_s13 = scalar_select %p74_p9, %s3755_s17, %s76_s10  }
  0x1f   : > { %p3917_p13 = por %p89_p10, %p58_p5  ;;  %p3924_p0 = por %p157_p12, %p51_p1 }
  0x20   : > { %5646 = sst [smem:[#allocation17_spill]] %s3913_s13  ;;  %p3112_p3 = scmp.ge.s32.totalorder %s3779_s23, 1 }
  0x21   : > { %p170_p2 = scmp.lt.s32.totalorder %s3779_s23, 3  ;;  %p5649_p8 = scmp.ne.s32.totalorder %s3763_s19, %s3759_s18 }
  0x22   : > { %s5652_s2 = sld [smem:[#allocation112_spill]]  ;;  %s3781_s25 = smov [#allocation7]  }
  0x23   : > { %p3933_p7 = por %p163_p6, %p5649_p8  ;;  %p3940_p9 = pnand %p3112_p3, %p170_p2 }
  0x24   : > { %s183_s9 = sshll.u32 %s3781_s25, 4  ;;  %s3782_s10 = smov 64   ;;  %s184_s9 = int_to_ptr.vmem [resolvable:$true] %s183_s9 }
  0x25   : > { %s5650_s15 = scalar_select %p3933_p7, 1, 0 }
  0x26   : > { %p3473_p1 = pneg %p3940_p9  ;;  %s3783_s11 = smov 4  }
  0x27   : > { %5651 = sst [smem:[#allocation18_spill]] %s5650_s15  ;;  %p3114_p12 = scmp.ge.s32.totalorder %s3779_s23, 2 }
  0x28   : > { %s181_s6 = sshll.u32 %s5652_s2, 4  ;;  %p3474_p10 = pnand %p3473_p1, %p58_p5  ;;  %s182_s6 = int_to_ptr.hbm [resolvable:$true] %s181_s6 }
  0x29   : > { %196 = sbr.rel (%p3114_p12) target bundleno = 80 (0x50), region = 24 }
  0x2a   : > { %3476 = dma.hbm_to_vmem [thread:$0]  (!%p3474_p10), %s182_s6, 4608, %s184_s9, [#allocation6], %s3782_s10, %s3782_s10, %s3783_s11  }
  0x2e   : > { %199 = sbr.rel (!%p3879_p4) target bundleno = 72 (0x48), region = 28  ;;  %s200_s29 = sand.u32 (%p3879_p4), 1, %s3767_s20  }
  0x2f   : > { %s3459_s30 = smul.u32 (%p3879_p4), 96, %s200_s29  ;;  %s3954_s2 = scalar_lea.sflag (%p3879_p4), [#allocation3], %s200_s29 }
  0x30   : > { %s3460_s26 = smul.u32 (%p3879_p4), 96, %s3775_s22  ;;  %s5654_s0 = sld [smem:[#allocation111_spill]] (%p3879_p4) }
  0x31   : > { %s204_s25 = scalar_lea.vmem (%p3879_p4), [#allocation2], %s3459_s30 }
  0x32   : > { %s3957_s8 = sshll.u32 (%p3879_p4), %s204_s25, 4  ;;  %s225_s8 = int_to_ptr.vmem [resolvable:$true] %s3957_s8 }
  0x36   : > { %s219_s9 = scalar_lea.hbm %s5654_s0, %s3460_s26  ;;  %s3607_s29 = scalar_lea.hbm %s5654_s0, 216 }
  0x37   : > { %s222_s10 = sshll.u32 %s219_s9, 4  ;;  %s223_s10 = int_to_ptr.hbm [resolvable:$true] %s222_s10 }
  0x38   : > { %s3596_s28 = sshra.s32 %s223_s10, 4  ;;  %s3597_s28 = int_to_ptr.hbm [resolvable:$true] %s3596_s28 }
  0x39   : > { %s3603_s11 = scalar_lea.hbm %s3597_s28, 96 }
  0x3a   : > { %p3604_p3 = scmp.ne.s32.totalorder %s3597_s28, %s3603_s11  ;;  %p3609_p4 = scmp.lt.s32.totalorder %s3607_s29, %s3603_s11 }
  0x3c   : > { %p3611_p6 = pnand %p3609_p4, %p3604_p3 }
  0x3e   : > { %3614 = shalt.err (!%p3611_p6)
}
  0x3f   : > { %s3615_s30 = sshra.s32 %s225_s8, 4  ;;  %s3784_s13 = smov [#allocation2]   ;;  %s3616_s30 = int_to_ptr.vmem [resolvable:$true] %s3615_s30 }
  0x40   : > { %s3622_s25 = scalar_lea.vmem %s3616_s30, 96  ;;  %s3626_s26 = scalar_lea.vmem %s3784_s13, 192 }
  0x41   : > { %p3623_p2 = scmp.ne.s32.totalorder %s3616_s30, %s3622_s25  ;;  %p3628_p8 = scmp.lt.s32.totalorder %s3626_s26, %s3622_s25 }
  0x43   : > { %p3630_p1 = pnand %p3628_p8, %p3623_p2 }
  0x45   : > { %3633 = shalt.err (!%p3630_p1)
}
  0x46   : > { %s3785_s6 = smov 64   ;;  %s3786_s9 = smov 4  }
  0x47   : > { %230 = dma.hbm_to_vmem [thread:$0]  %s223_s10, 1536, %s225_s8, %s3954_s2, %s3785_s6, %s3785_s6, %s3786_s9  }
  0x48 PF: > { %s234_s20 = sand.u32 1, %s3779_s23   ;;  %s236_s15 = sand.u32 1, %s3755_s17  }
  0x49   : > { %s3461_s28 = smul.u32 24, %s236_s15  ;;  %s235_s2 = scalar_lea.sflag [#allocation6], %s234_s20 }
  0x4a   : > { %s3123_s11 = smul.u32 96, %s3775_s22  ;;  %s3787_s8 = smov 64  }
  0x4b   : > { %s238_s25 = scalar_lea.vmem [#allocation5], %s3461_s28  ;;  %s3788_s10 = smov 4  }
  0x4c   : > { %s3030_s13 = scalar_lea.hbm %s5441_s1, %s3123_s11  ;;  %s251_s26 = sshll.u32 %s238_s25, 4  ;;  %s252_s26 = int_to_ptr.vmem [resolvable:$true] %s251_s26 }
  0x4d   : > { %s3031_s0 = scalar_lea.hbm %s3030_s13, 96 }
  0x4e   : > { %s249_s18 = sshll.u32 %s3031_s0, 4  ;;  %s250_s18 = int_to_ptr.hbm [resolvable:$true] %s249_s18 }
  0x4f   : > { %3466 = dma.hbm_to_vmem [thread:$0]  (%p3907_p11), %s250_s18, 384, %s252_s26, %s235_s2, %s3787_s8, %s3787_s8, %s3788_s10  }
  0x50 PF: > { %263 = sbr.rel (%p3940_p9) target bundleno = 1511 (0x5e7), region = 36 }
  0x55   : > { %s3978_s6 = sand.u32 1, %s3763_s19   ;;  %p5655_p10 = scmp.ne.s32.totalorder %s5643_s5, 0 }
  0x56   : > { %s3462_s9 = smul.u32 96, %s3978_s6  ;;  %s266_s15 = scalar_lea.sflag [#allocation3], %s3978_s6 }
  0x58   : > { %s3982_s28 = scalar_lea.vmem [#allocation2], %s3462_s9 }
  0x59   : > { %3728 = dma.done.wait (%p5655_p10), %s266_s15, 1536  }
  0x5a   : > { %3730 = vsyncadd (%p5655_p10), %s266_s15, 4294965760  ;;  %s275_s0 = sand.u32 1, %s3862_s24   ;;  %s277_s18 = sand.u32 1, %s3751_s16  }
  0x5b   : > { %s3463_s12 = smul.u32 24, %s277_s18  ;;  %s276_s7 = scalar_lea.sflag [#allocation6], %s275_s0 }
  0x5d   : > { %s3990_s20 = scalar_lea.vmem [#allocation5], %s3463_s12 }
  0x5e   : > { %3732 = dma.done.wait (%p3917_p13), %s276_s7, 384  }
  0x5f   : > { %3734 = vsyncadd (%p3917_p13), %s276_s7, 4294966912 }
  0x60   : > { %3736 = dma.done.wait (%p58_p5), [#allocation6], 4608  }
  0x61   : > { %3738 = vsyncadd (%p58_p5), [#allocation6], 4294962688  ;;  %v3369_v0 = vld [vmem:[#allocation7 + $0x78] sm:$0xff]  ;;  %v330_v2 = vld [vmem:[%s3982_s28 + $0x10] sm:$0xf]  ;;  %vm404_vm0 = vcmask 1040384  }
  0x62   : > { %v329_v1 = vld [vmem:[%s3982_s28 + $0xc] sm:$0xf]  ;;  %3447 = vmatpush.bf16.msra.mxu1 %v3369_v0  ;;  %v3368_v3 = vld [vmem:[#allocation7 + $0x70] sm:$0xff]  ;;  %vm408_vm1 = vcmask 1041409   ;;  %vm412_vm2 = vcmask 1042434   ;;  %vm416_vm3 = vcmask 1043459   ;;  %3448 = vmatpush.bf16.msra.mxu2 %v3369_v0 }
  0x63   : > { %v383_v4 = vrot.slane %v329_v1, 3  ;;  %v384_v5 = vrot.slane %v330_v2, 3  ;;  %3449 = vmatpush.bf16.msra.mxu3 %v3369_v0  ;;  %890 = vmatpush.bf16.msra.mxu0 %v3369_v0  ;;  %v3367_v10 = vld [vmem:[#allocation7 + $0x68] sm:$0xff]  ;;  %v3366_v22 = vld [vmem:[#allocation7 + $0x60] sm:$0xff]  ;;  %vm867_vm4 = vcmask 523264   ;;  %v3365_v59 = vld [vmem:[#allocation7 + $0x18] sm:$0xff] }
  0x64   : > { %v332_v20 = vld [vmem:[%s3982_s28 + $0x18] sm:$0xf]  ;;  %v331_v23 = vld [vmem:[%s3982_s28 + $0x14] sm:$0x1]  ;;  %v333_v25 = vld [vmem:[%s3982_s28 + $0x1c] sm:$0xf] }
  0x65   : > { %v4003_v6 = vsel %vm404_vm0, %v329_v1, %v383_v4  ;;  %v438_v7 = vsel %vm408_vm1, %v329_v1, %v383_v4  ;;  %v441_v8 = vsel %vm412_vm2, %v329_v1, %v383_v4  ;;  %v444_v9 = vsel %vm416_vm3, %v329_v1, %v383_v4  ;;  %v335_v42 = vld [vmem:[%s3982_s28 + $0x24] sm:$0xf]  ;;  %v334_v43 = vld [vmem:[%s3982_s28 + $0x20] sm:$0x1]  ;;  %v336_v45 = vld [vmem:[%s3982_s28 + $0x28] sm:$0xf] }
  0x66   : > { %5656 = vst [vmem:[#allocation19_spill] sm:$0xff] %v4003_v6  ;;  %3450 = vmatpush.bf16.msra.mxu1 %v3368_v3  ;;  %v4008_v11 = vrot.slane %v438_v7, 1  ;;  %v4010_v12 = vrot.slane %v441_v8, 2  ;;  %v4012_v13 = vrot.slane %v444_v9, 3  ;;  %v4015_v14 = vsel %vm404_vm0, %v330_v2, %v384_v5  ;;  %3451 = vmatpush.bf16.msra.mxu2 %v3368_v3  ;;  %v3364_v61 = vld [vmem:[#allocation7 + $0x10] sm:$0xff]  ;;  %v3363_v1 = vld [vmem:[#allocation7 + $0x8] sm:$0xff] }
  0x67   : > { %5660 = vst [vmem:[#allocation23_spill] sm:$0xff] %v4015_v14  ;;  %v450_v15 = vsel %vm408_vm1, %v330_v2, %v384_v5  ;;  %v453_v16 = vsel %vm412_vm2, %v330_v2, %v384_v5  ;;  %v456_v17 = vsel %vm416_vm3, %v330_v2, %v384_v5  ;;  %3452 = vmatpush.bf16.msra.mxu3 %v3368_v3  ;;  %v386_v24 = vrot.slane %v332_v20, 3  ;;  %v338_v0 = vld [vmem:[%s3982_s28 + $0x30] sm:$0xf]  ;;  %v337_v2 = vld [vmem:[%s3982_s28 + $0x2c] sm:$0x1] }
  0x68   : > { %5657 = vst [vmem:[#allocation20_spill] sm:$0xff] %v4008_v11  ;;  %v4022_v18 = vrot.slane %v450_v15, 1  ;;  %v4024_v19 = vrot.slane %v453_v16, 2  ;;  %891 = vmatpush.bf16.msra.mxu0 %v3368_v3  ;;  %v4028_v21 = vrot.slane %v456_v17, 3  ;;  %v385_v26 = vrot.slane %v331_v23, 3  ;;  %v3362_v8 = vld [vmem:[#allocation7] sm:$0xff] }
  0x69   : > { %5658 = vst [vmem:[#allocation21_spill] sm:$0xff] %v4010_v12  ;;  %v387_v27 = vrot.slane %v333_v25, 3  ;;  %v465_v28 = vsel %vm408_vm1, %v332_v20, %v386_v24  ;;  %v468_v29 = vsel %vm412_vm2, %v332_v20, %v386_v24  ;;  %v471_v31 = vsel %vm416_vm3, %v332_v20, %v386_v24  ;;  %s3126_s14 = sshll.u32 %s3978_s6, 6  ;;  %s3399_s29 = sshll.u32 %s3771_s21, 6 }
  0x6a   : > { %5659 = vst [vmem:[#allocation22_spill] sm:$0xff] %v4012_v13  ;;  %3453 = vmatpush.bf16.msra.mxu1 %v3367_v10  ;;  %3454 = vmatpush.bf16.msra.mxu2 %v3367_v10  ;;  %v4040_v30 = vsel %vm404_vm0, %v331_v23, %v385_v26  ;;  %v4044_v32 = vsel %vm404_vm0, %v332_v20, %v386_v24  ;;  %v4046_v33 = vrot.slane %v465_v28, 1  ;;  %v4048_v34 = vrot.slane %v468_v29, 2  ;;  %s5303_s11 = scalar_lea.vmem [#allocation8], %s3126_s14  ;;  %s2981_s25 = scalar_lea.hbm %s5444_s4, %s3399_s29 }
  0x6b   : > { %707 = vst [vmem:[#allocation1] ss:$9 sm:$0xff] %v4003_v6  ;;  %3455 = vmatpush.bf16.msra.mxu3 %v3367_v10  ;;  %v477_v35 = vsel %vm408_vm1, %v333_v25, %v387_v27  ;;  %v4051_v37 = vrot.slane %v471_v31, 3  ;;  %v480_v38 = vsel %vm412_vm2, %v333_v25, %v387_v27  ;;  %v4058_v39 = vsel %vm404_vm0, %v333_v25, %v387_v27  ;;  %v341_v31 = vld [vmem:[%s3982_s28 + $0x3c] sm:$0xf]  ;;  %s2982_s26 = sshll.u32 %s5303_s11, 4  ;;  %s2983_s26 = int_to_ptr.vmem [resolvable:$true] %s2982_s26 }
  0x6c   : > { %718 = vst [vmem:[#allocation1 + $0x4] ss:$9 sm:$0xff] %v4015_v14  ;;  %892 = vmatpush.bf16.msra.mxu0 %v3367_v10  ;;  %v4060_v40 = vrot.slane %v477_v35, 1  ;;  %v4063_v41 = vrot.slane %v480_v38, 2  ;;  %v389_v44 = vrot.slane %v335_v42, 3  ;;  %v483_v46 = vsel %vm416_vm3, %v333_v25, %v387_v27  ;;  %s2984_s2 = sshll.u32 %s2981_s25, 4  ;;  %s2985_s2 = int_to_ptr.hbm [resolvable:$true] %s2984_s2 }
  0x6d   : > { %5661 = vst [vmem:[#allocation24_spill] sm:$0xff] %v4022_v18  ;;  %v388_v47 = vrot.slane %v334_v43, 3  ;;  %v390_v48 = vrot.slane %v336_v45, 3  ;;  %v4074_v49 = vrot.slane %v483_v46, 3  ;;  %v392_v3 = vrot.slane %v338_v0, 3  ;;  %s2967_s8 = scalar_lea.sflag [#allocation4], %s3978_s6 }
  0x6e   : > { %5662 = vst [vmem:[#allocation25_spill] sm:$0xff] %v4024_v19  ;;  %3456 = vmatpush.bf16.msra.mxu1 %v3366_v22  ;;  %3457 = vmatpush.bf16.msra.mxu2 %v3366_v22  ;;  %v492_v50 = vsel %vm408_vm1, %v335_v42, %v389_v44  ;;  %v495_v51 = vsel %vm412_vm2, %v335_v42, %v389_v44  ;;  %v391_v7 = vrot.slane %v337_v2, 3  ;;  %v339_v10 = vld [vmem:[%s3982_s28 + $0x34] sm:$0xf]  ;;  %v340_v35 = vld [vmem:[%s3982_s28 + $0x38] sm:$0x1] }
  0x6f   : > { %710 = vst [vmem:[#allocation1 + $0x1] ss:$9 sm:$0xff] %v4008_v11  ;;  %3458 = vmatpush.bf16.msra.mxu3 %v3366_v22  ;;  %v4079_v52 = vsel %vm404_vm0, %v334_v43, %v388_v47  ;;  %v498_v53 = vsel %vm416_vm3, %v335_v42, %v389_v44  ;;  %v4083_v55 = vsel %vm404_vm0, %v335_v42, %v389_v44  ;;  %v4085_v56 = vrot.slane %v492_v50, 1  ;;  %s3677_s10 = sshra.s32 %s2985_s2, 4  ;;  %s3678_s10 = int_to_ptr.hbm [resolvable:$true] %s3677_s10 }
  0x70   : > { %5663 = vst [vmem:[#allocation26_spill] sm:$0xff] %v4028_v21  ;;  %893 = vmatpush.bf16.msra.mxu0 %v3366_v22  ;;  %v4088_v57 = vrot.slane %v495_v51, 2  ;;  %v504_v58 = vsel %vm408_vm1, %v336_v45, %v390_v48  ;;  %v4092_v60 = vrot.slane %v498_v53, 3  ;;  %v4097_v62 = vsel %vm404_vm0, %v336_v45, %v390_v48  ;;  %s3679_s21 = scalar_lea.hbm %s3678_s10, 64  ;;  %p3684_p9 = scmp.lt.s32.totalorder %s3678_s10, %s5444_s4 }
  0x71   : > { %713 = vst [vmem:[#allocation1 + $0x2] ss:$9 sm:$0xff] %v4010_v12  ;;  %v4099_v63 = vrot.slane %v504_v58, 1  ;;  %v507_v4 = vsel %vm412_vm2, %v336_v45, %v390_v48  ;;  %v510_v5 = vsel %vm416_vm3, %v336_v45, %v390_v48  ;;  %v519_v16 = vsel %vm408_vm1, %v338_v0, %v392_v3  ;;  %p3680_p5 = scmp.ne.s32.totalorder %s3678_s10, %s3679_s21 }
  0x72   : > { %716 = vst [vmem:[#allocation1 + $0x3] ss:$9 sm:$0xff] %v4012_v13  ;;  %1080 = vmatpush.bf16.msrb.mxu1 %v3365_v59  ;;  %v4110_v9 = vrot.slane %v507_v4, 2  ;;  %v4113_v15 = vrot.slane %v510_v5, 3  ;;  %v522_v17 = vsel %vm412_vm2, %v338_v0, %v392_v3  ;;  %v4118_v22 = vsel %vm404_vm0, %v337_v2, %v391_v7  ;;  %v343_v4 = vld [vmem:[%s3982_s28 + $0x44] sm:$0x1] }
  0x73   : > { %721 = vst [vmem:[#allocation1 + $0x5] ss:$9 sm:$0xff] %v4022_v18  ;;  %v525_v23 = vsel %vm416_vm3, %v338_v0, %v392_v3  ;;  %v393_v24 = vrot.slane %v339_v10, 3  ;;  %v4122_v25 = vsel %vm404_vm0, %v338_v0, %v392_v3  ;;  %v4124_v26 = vrot.slane %v519_v16, 1  ;;  %v344_v3 = vld [vmem:[%s3982_s28 + $0x48] sm:$0xf]  ;;  %p3681_p11 = pnand %p3680_p5, %p3924_p0 }
  0x74   : > { %724 = vst [vmem:[#allocation1 + $0x6] ss:$9 sm:$0xff] %v4024_v19  ;;  %v4128_v27 = vrot.slane %v522_v17, 2  ;;  %v4131_v28 = vrot.slane %v525_v23, 3  ;;  %v395_v38 = vrot.slane %v341_v31, 3  ;;  %v394_v44 = vrot.slane %v340_v35, 3 }
  0x75   : > { %727 = vst [vmem:[#allocation1 + $0x7] ss:$9 sm:$0xff] %v4028_v21  ;;  %v4136_v29 = vsel %vm404_vm0, %v339_v10, %v393_v24  ;;  %v534_v42 = vsel %vm412_vm2, %v339_v10, %v393_v24  ;;  %v537_v43 = vsel %vm416_vm3, %v339_v10, %v393_v24  ;;  %v398_v7 = vrot.slane %v344_v3, 3  ;;  %p3682_p13 = pneg %p3681_p11 }
  0x76   : > { %5664 = vst [vmem:[#allocation27_spill] sm:$0xff] %v4040_v30  ;;  %1081 = vmatpush.bf16.msrb.mxu1 %v3364_v61  ;;  %v4149_v46 = vrot.slane %v534_v42, 2  ;;  %v4151_v47 = vrot.slane %v537_v43, 3  ;;  %v546_v48 = vsel %vm408_vm1, %v341_v31, %v395_v38  ;;  %v549_v51 = vsel %vm412_vm2, %v341_v31, %v395_v38  ;;  %v342_v61 = vld [vmem:[%s3982_s28 + $0x40] sm:$0xf] }
  0x77   : > { %5665 = vst [vmem:[#allocation28_spill] sm:$0xff] %v4044_v32  ;;  %v4156_v53 = vsel %vm404_vm0, %v340_v35, %v394_v44  ;;  %v4161_v58 = vsel %vm404_vm0, %v341_v31, %v395_v38  ;;  %v4163_v59 = vrot.slane %v546_v48, 1  ;;  %v4168_v0 = vrot.slane %v549_v51, 2  ;;  %v345_v44 = vld [vmem:[%s3982_s28 + $0x4c] sm:$0xf] }
  0x78   : > { %5666 = vst [vmem:[#allocation29_spill] sm:$0xff] %v4046_v33  ;;  %v396_v2 = vrot.slane %v342_v61, 3  ;;  %v397_v16 = vrot.slane %v343_v4, 3  ;;  %v4201_v42 = vsel %vm404_vm0, %v344_v3, %v398_v7  ;;  %v347_v51 = vld [vmem:[%s3982_s28 + $0x54] sm:$0xf]  ;;  %vm1962_vm5 = vcmask 1046528  }
  0x79   : > { %5667 = vst [vmem:[#allocation30_spill] sm:$0xff] %v4048_v34  ;;  %vm2651_vm6 = vcmask 1045504  }
  0x7a   : > { %5668 = vst [vmem:[#allocation31_spill] sm:$0xff] %v4051_v37  ;;  %1082 = vmatpush.bf16.msrb.mxu1 %v3363_v1  ;;  %v558_v5 = vsel %vm408_vm1, %v342_v61, %v396_v2  ;;  %v4184_v17 = vsel %vm404_vm0, %v342_v61, %v396_v2 }
  0x7b   : > { %5669 = vst [vmem:[#allocation32_spill] sm:$0xff] %v4058_v39 }
  0x7c   : > { %v728_v36 = vld [vmem:[#allocation1] sm:$0xff]  ;;  %5670 = vst [vmem:[#allocation33_spill] sm:$0xff] %v4060_v40 }
  0x7d   : > { %729 = vst [vmem:[#allocation1] ss:$9 sm:$0xff] %v4040_v30  ;;  %3143 = vmatmul.msk.bf16.vlgmr.msra.gmra.mxu0 %vm867_vm4, %v728_v36  ;;  %v531_v36 = vsel %vm408_vm1, %v339_v10, %v393_v24  ;;  %v564_v10 = vsel %vm416_vm3, %v342_v61, %v396_v2 }
  0x7e   : > { %730 = vst [vmem:[#allocation1 + $0x1] ss:$9 sm:$0xff] %v4044_v32  ;;  %1083 = vmatpush.bf16.msrb.mxu1 %v3362_v8  ;;  %v4147_v45 = vrot.slane %v531_v36, 1  ;;  %v561_v8 = vsel %vm412_vm2, %v342_v61, %v396_v2  ;;  %v4190_v24 = vrot.slane %v564_v10, 3  ;;  %v576_v36 = vsel %vm412_vm2, %v344_v3, %v398_v7  ;;  %v346_v61 = vld [vmem:[%s3982_s28 + $0x50] sm:$0x1] }
  0x7f   : > { %732 = vst [vmem:[#allocation1 + $0x2] ss:$9 sm:$0xff] %v4046_v33  ;;  %v4188_v23 = vrot.slane %v561_v8, 2  ;;  %v4207_v48 = vrot.slane %v576_v36, 2 }
  0x80   : > { %5671 = vst [vmem:[#allocation34_spill] sm:$0xff] %v4063_v41 }
  0x81   : > { %734 = vst [vmem:[#allocation1 + $0x3] ss:$9 sm:$0xff] %v4048_v34 }
  0x82   : > { %736 = vst [vmem:[#allocation1 + $0x4] ss:$9 sm:$0xff] %v4051_v37 }
  0x83   : > { %737 = vst [vmem:[#allocation1 + $0x5] ss:$9 sm:$0xff] %v4058_v39 }
  0x84   : > { %739 = vst [vmem:[#allocation1 + $0x6] ss:$9 sm:$0xff] %v4060_v40 }
  0x85   : > { %741 = vst [vmem:[#allocation1 + $0x7] ss:$9 sm:$0xff] %v4063_v41 }
  0x86   : > { %5672 = vst [vmem:[#allocation35_spill] sm:$0xff] %v4083_v55 }
  0x87   : > { %5673 = vst [vmem:[#allocation36_spill] sm:$0xff] %v4092_v60 }
  0x88   : > { %5674 = vst [vmem:[#allocation37_spill] sm:$0xff] %v4110_v9 }
  0x89   : > { %5675 = vst [vmem:[#allocation38_spill] sm:$0xff] %v4113_v15 }
  0x8a   : > { %5676 = vst [vmem:[#allocation39_spill] sm:$0xff] %v4131_v28 }
  0x8b   : > { %5677 = vst [vmem:[#allocation40_spill] sm:$0xff] %v4136_v29 }
  0x8c   : > { %v742_v54 = vld [vmem:[#allocation1] sm:$0xff]  ;;  %5678 = vst [vmem:[#allocation41_spill] sm:$0xff] %v4149_v46 }
  0x8d   : > { %3144 = vmatmul.msk.bf16.vlgmr.msra.gmra.mxu1 %vm867_vm4, %v742_v54  ;;  %744 = vst [vmem:[#allocation1] ss:$9 sm:$0xff] %v4074_v49  ;;  %v552_v54 = vsel %vm416_vm3, %v341_v31, %v395_v38  ;;  %v573_v31 = vsel %vm408_vm1, %v344_v3, %v398_v7  ;;  %v4197_v38 = vsel %vm404_vm0, %v343_v4, %v397_v16  ;;  %v401_v4 = vrot.slane %v347_v51, 3 }
  0x8e   : > { %745 = vst [vmem:[#allocation1 + $0x1] ss:$9 sm:$0xff] %v4079_v52  ;;  %v4171_v1 = vrot.slane %v552_v54, 3  ;;  %v4203_v43 = vrot.slane %v573_v31, 1  ;;  %v579_v54 = vsel %vm416_vm3, %v344_v3, %v398_v7  ;;  %v400_v16 = vrot.slane %v346_v61, 3 }
  0x8f   : > { %746 = vst [vmem:[#allocation1 + $0x2] ss:$9 sm:$0xff] %v4083_v55 }
  0x90   : > { %748 = vst [vmem:[#allocation1 + $0x3] ss:$9 sm:$0xff] %v4085_v56 }
  0x91   : > { %750 = vst [vmem:[#allocation1 + $0x4] ss:$9 sm:$0xff] %v4088_v57 }
  0x92   : > { %752 = vst [vmem:[#allocation1 + $0x5] ss:$9 sm:$0xff] %v4092_v60 }
  0x93   : > { %753 = vst [vmem:[#allocation1 + $0x6] ss:$9 sm:$0xff] %v4097_v62 }
  0x94   : > { %755 = vst [vmem:[#allocation1 + $0x7] ss:$9 sm:$0xff] %v4099_v63 }
  0x95   : > { %5679 = vst [vmem:[#allocation42_spill] sm:$0xff] %v4151_v47 }
  0x96   : > { %5680 = vst [vmem:[#allocation43_spill] sm:$0xff] %v4156_v53 }
  0x97   : > { %5681 = vst [vmem:[#allocation44_spill] sm:$0xff] %v4161_v58 }
  0x98   : > { %5682 = vst [vmem:[#allocation45_spill] sm:$0xff] %v4163_v59 }
  0x99   : > { %5683 = vst [vmem:[#allocation46_spill] sm:$0xff] %v4168_v0 }
  0x9a   : > { %5684 = vst [vmem:[#allocation47_spill] sm:$0xff] %v4171_v1 }
  0x9b   : > { %v756_v20 = vld [vmem:[#allocation1] sm:$0xff]  ;;  %5685 = vst [vmem:[#allocation48_spill] sm:$0xff] %v4207_v48 }
  0x9c   : > { %758 = vst [vmem:[#allocation1] ss:$9 sm:$0xff] %v4110_v9 }
  0x9d   : > { %3145 = vmatmul.msk.bf16.gmra.mxu1 %vm867_vm4, %v756_v20  ;;  %760 = vst [vmem:[#allocation1 + $0x1] ss:$9 sm:$0xff] %v4113_v15  ;;  %v4186_v20 = vrot.slane %v558_v5, 1  ;;  %v4218_v5 = vrot.slane %v579_v54, 3  ;;  %v4236_v54 = vsel %vm404_vm0, %v346_v61, %v400_v16  ;;  %v603_v61 = vsel %vm412_vm2, %v347_v51, %v401_v4  ;;  %v349_v16 = vld [vmem:[%s3982_s28 + $0x5c] sm:$0x1] }
  0x9e   : > { %761 = vst [vmem:[#allocation1 + $0x2] ss:$9 sm:$0xff] %v4118_v22 }
  0x9f   : > { %762 = vst [vmem:[#allocation1 + $0x3] ss:$9 sm:$0xff] %v4122_v25 }
  0xa0   : > { %764 = vst [vmem:[#allocation1 + $0x4] ss:$9 sm:$0xff] %v4124_v26 }
  0xa1   : > { %766 = vst [vmem:[#allocation1 + $0x5] ss:$9 sm:$0xff] %v4128_v27 }
  0xa2   : > { %768 = vst [vmem:[#allocation1 + $0x6] ss:$9 sm:$0xff] %v4131_v28 }
  0xa3   : > { %769 = vst [vmem:[#allocation1 + $0x7] ss:$9 sm:$0xff] %v4136_v29 }
  0xa4   : > { %5686 = vst [vmem:[#allocation49_spill] sm:$0xff] %v4218_v5 }
  0xa5   : > { %5691 = vst [vmem:[#allocation54_spill] sm:$0xff] %v4236_v54 }
  0xaa   : > { %v770_v50 = vld [vmem:[#allocation1] sm:$0xff] }
  0xab   : > { %772 = vst [vmem:[#allocation1] ss:$9 sm:$0xff] %v4147_v45 }
  0xac   : > { %774 = vst [vmem:[#allocation1 + $0x1] ss:$9 sm:$0xff] %v4149_v46 }
  0xad   : > { %3146 = vmatmul.msk.bf16.gmra.mxu1 %vm867_vm4, %v770_v50  ;;  %776 = vst [vmem:[#allocation1 + $0x2] ss:$9 sm:$0xff] %v4151_v47  ;;  %v399_v50 = vrot.slane %v345_v44, 3 }
  0xae   : > { %777 = vst [vmem:[#allocation1 + $0x3] ss:$9 sm:$0xff] %v4156_v53 }
  0xaf   : > { %778 = vst [vmem:[#allocation1 + $0x4] ss:$9 sm:$0xff] %v4161_v58  ;;  %v585_v2 = vsel %vm408_vm1, %v345_v44, %v399_v50  ;;  %v588_v8 = vsel %vm412_vm2, %v345_v44, %v399_v50  ;;  %v591_v10 = vsel %vm416_vm3, %v345_v44, %v399_v50  ;;  %v4223_v31 = vsel %vm404_vm0, %v345_v44, %v399_v50 }
  0xb0   : > { %780 = vst [vmem:[#allocation1 + $0x5] ss:$9 sm:$0xff] %v4163_v59  ;;  %v4227_v36 = vrot.slane %v588_v8, 2  ;;  %v4229_v7 = vrot.slane %v591_v10, 3  ;;  %v4240_v44 = vsel %vm404_vm0, %v347_v51, %v401_v4  ;;  %v606_v10 = vsel %vm416_vm3, %v347_v51, %v401_v4 }
  0xb1   : > { %782 = vst [vmem:[#allocation1 + $0x6] ss:$9 sm:$0xff] %v4168_v0 }
  0xb2   : > { %784 = vst [vmem:[#allocation1 + $0x7] ss:$9 sm:$0xff] %v4171_v1 }
  0xb3   : > { %5687 = vst [vmem:[#allocation50_spill] sm:$0xff] %v4223_v31 }
  0xb4   : > { %5689 = vst [vmem:[#allocation52_spill] sm:$0xff] %v4227_v36 }
  0xb5   : > { %5690 = vst [vmem:[#allocation53_spill] sm:$0xff] %v4229_v7 }
  0xb6   : > { %5692 = vst [vmem:[#allocation55_spill] sm:$0xff] %v4240_v44 }
  0xb9   : > { %v785_v35 = vld [vmem:[#allocation1] sm:$0xff] }
  0xba   : > { %786 = vst [vmem:[#allocation1] ss:$9 sm:$0xff] %v4184_v17  ;;  %3147 = vmatmul.msk.bf16.vlgmr.msra.gmra.mxu2 %vm867_vm4, %v785_v35  ;;  %v4225_v35 = vrot.slane %v585_v2, 1  ;;  %v348_v2 = vld [vmem:[%s3982_s28 + $0x58] sm:$0xf] }
  0xbb   : > { %788 = vst [vmem:[#allocation1 + $0x1] ss:$9 sm:$0xff] %v4186_v20  ;;  %v402_v8 = vrot.slane %v348_v2, 3 }
  0xbc   : > { %790 = vst [vmem:[#allocation1 + $0x2] ss:$9 sm:$0xff] %v4188_v23 }
  0xbd   : > { %792 = vst [vmem:[#allocation1 + $0x3] ss:$9 sm:$0xff] %v4190_v24 }
  0xbe   : > { %793 = vst [vmem:[#allocation1 + $0x4] ss:$9 sm:$0xff] %v4197_v38 }
  0xbf   : > { %794 = vst [vmem:[#allocation1 + $0x5] ss:$9 sm:$0xff] %v4201_v42 }
  0xc0   : > { %796 = vst [vmem:[#allocation1 + $0x6] ss:$9 sm:$0xff] %v4203_v43 }
  0xc1   : > { %798 = vst [vmem:[#allocation1 + $0x7] ss:$9 sm:$0xff] %v4207_v48  ;;  %v600_v48 = vsel %vm408_vm1, %v347_v51, %v401_v4 }
  0xc2   : > { %5688 = vst [vmem:[#allocation51_spill] sm:$0xff] %v4225_v35  ;;  %v4242_v50 = vrot.slane %v600_v48, 1  ;;  %v612_v48 = vsel %vm408_vm1, %v348_v2, %v402_v8 }
  0xc4   : > { %5693 = vst [vmem:[#allocation56_spill] sm:$0xff] %v4242_v50 }
  0xc8   : > { %v799_v3 = vld [vmem:[#allocation1] sm:$0xff] }
  0xc9   : > { %801 = vst [vmem:[#allocation1] ss:$9 sm:$0xff] %v4218_v5 }
  0xca   : > { %802 = vst [vmem:[#allocation1 + $0x1] ss:$9 sm:$0xff] %v4223_v31  ;;  %3148 = vmatmul.msk.bf16.gmra.mxu2 %vm867_vm4, %v799_v3  ;;  %v4253_v3 = vrot.slane %v603_v61, 2  ;;  %v4264_v31 = vrot.slane %v612_v48, 1 }
  0xcb   : > { %804 = vst [vmem:[#allocation1 + $0x2] ss:$9 sm:$0xff] %v4225_v35  ;;  %v4257_v35 = vrot.slane %v606_v10, 3 }
  0xcc   : > { %806 = vst [vmem:[#allocation1 + $0x3] ss:$9 sm:$0xff] %v4227_v36  ;;  %v350_v36 = vld [vmem:[%s3990_s20] sm:$0xf] }
  0xcd   : > { %808 = vst [vmem:[#allocation1 + $0x4] ss:$9 sm:$0xff] %v4229_v7  ;;  %v615_v7 = vsel %vm412_vm2, %v348_v2, %v402_v8  ;;  %v627_v61 = vrot.slane %v350_v36, 3 }
  0xce   : > { %809 = vst [vmem:[#allocation1 + $0x5] ss:$9 sm:$0xff] %v4236_v54  ;;  %v618_v54 = vsel %vm416_vm3, %v348_v2, %v402_v8  ;;  %v4266_v4 = vrot.slane %v615_v7, 2 }
  0xcf   : > { %810 = vst [vmem:[#allocation1 + $0x6] ss:$9 sm:$0xff] %v4240_v44  ;;  %v403_v44 = vrot.slane %v349_v16, 3  ;;  %v4269_v5 = vrot.slane %v618_v54, 3  ;;  %v4279_v7 = vsel %vm404_vm0, %v350_v36, %v627_v61  ;;  %v633_v10 = vsel %vm408_vm1, %v350_v36, %v627_v61 }
  0xd0   : > { %812 = vst [vmem:[#allocation1 + $0x7] ss:$9 sm:$0xff] %v4242_v50  ;;  %v4262_v50 = vsel %vm404_vm0, %v348_v2, %v402_v8  ;;  %v351_v8 = vld [vmem:[%s3990_s20 + $0x4] sm:$0xf]  ;;  %v4289_v48 = vrot.slane %v633_v10, 1 }
  0xd1   : > { %5694 = vst [vmem:[#allocation57_spill] sm:$0xff] %v4253_v3  ;;  %v4275_v2 = vsel %vm404_vm0, %v349_v16, %v403_v44  ;;  %v628_v54 = vrot.slane %v351_v8, 3  ;;  %v636_v44 = vsel %vm412_vm2, %v350_v36, %v627_v61  ;;  %v639_v16 = vsel %vm416_vm3, %v350_v36, %v627_v61  ;;  %v326_v10 = vld [vmem:[%s3982_s28] sm:$0xf] }
  0xd2   : > { %5695 = vst [vmem:[#allocation58_spill] sm:$0xff] %v4257_v35 }
  0xd3   : > { %5696 = vst [vmem:[#allocation59_spill] sm:$0xff] %v4262_v50 }
  0xd4   : > { %5697 = vst [vmem:[#allocation60_spill] sm:$0xff] %v4264_v31 }
  0xd5   : > { %5698 = vst [vmem:[#allocation61_spill] sm:$0xff] %v4266_v4 }
  0xd6   : > { %5699 = vst [vmem:[#allocation62_spill] sm:$0xff] %v4269_v5 }
  0xd7   : > { %v813_v51 = vld [vmem:[#allocation1] sm:$0xff]  ;;  %5700 = vst [vmem:[#allocation63_spill] sm:$0xff] %v4275_v2 }
  0xd8   : > { %815 = vst [vmem:[#allocation1] ss:$9 sm:$0xff] %v4253_v3  ;;  %v4300_v3 = vsel %vm404_vm0, %v351_v8, %v628_v54 }
  0xd9   : > { %817 = vst [vmem:[#allocation1 + $0x1] ss:$9 sm:$0xff] %v4257_v35 }
  0xda   : > { %818 = vst [vmem:[#allocation1 + $0x2] ss:$9 sm:$0xff] %v4262_v50  ;;  %3149 = vmatmul.msk.bf16.gmra.mxu2 %vm867_vm4, %v813_v51  ;;  %v352_v51 = vld [vmem:[%s3990_s20 + $0x8] sm:$0x1] }
  0xdb   : > { %820 = vst [vmem:[#allocation1 + $0x3] ss:$9 sm:$0xff] %v4264_v31  ;;  %v4292_v31 = vrot.slane %v636_v44, 2  ;;  %v629_v35 = vrot.slane %v352_v51, 3 }
  0xdc   : > { %5701 = vst [vmem:[#allocation64_spill] sm:$0xff] %v4279_v7 }
  0xdd   : > { %822 = vst [vmem:[#allocation1 + $0x4] ss:$9 sm:$0xff] %v4266_v4  ;;  %v645_v4 = vsel %vm408_vm1, %v351_v8, %v628_v54 }
  0xde   : > { %824 = vst [vmem:[#allocation1 + $0x5] ss:$9 sm:$0xff] %v4269_v5  ;;  %v4295_v5 = vrot.slane %v639_v16, 3  ;;  %v4302_v36 = vrot.slane %v645_v4, 1  ;;  %v380_v4 = vrot.slane %v326_v10, 3 }
  0xdf   : > { %825 = vst [vmem:[#allocation1 + $0x6] ss:$9 sm:$0xff] %v4275_v2  ;;  %v648_v2 = vsel %vm412_vm2, %v351_v8, %v628_v54 }
  0xe0   : > { %826 = vst [vmem:[#allocation1 + $0x7] ss:$9 sm:$0xff] %v4279_v7  ;;  %v651_v7 = vsel %vm416_vm3, %v351_v8, %v628_v54  ;;  %v4306_v61 = vrot.slane %v648_v2, 2  ;;  %v4315_v8 = vsel %vm404_vm0, %v352_v51, %v629_v35  ;;  %v413_v54 = vsel %vm412_vm2, %v326_v10, %v380_v4 }
  0xe1   : > { %5702 = vst [vmem:[#allocation65_spill] sm:$0xff] %v4289_v48  ;;  %v4310_v44 = vrot.slane %v651_v7, 3  ;;  %v409_v7 = vsel %vm408_vm1, %v326_v10, %v380_v4  ;;  %v417_v16 = vsel %vm416_vm3, %v326_v10, %v380_v4  ;;  %v4326_v35 = vsel %vm404_vm0, %v326_v10, %v380_v4 }
  0xe2   : > { %5703 = vst [vmem:[#allocation66_spill] sm:$0xff] %v4292_v31  ;;  %v4328_v51 = vrot.slane %v409_v7, 1 }
  0xe3   : > { %5704 = vst [vmem:[#allocation67_spill] sm:$0xff] %v4295_v5 }
  0xe4   : > { %5705 = vst [vmem:[#allocation68_spill] sm:$0xff] %v4300_v3 }
  0xe5   : > { %5706 = vst [vmem:[#allocation69_spill] sm:$0xff] %v4302_v36 }
  0xe6   : > { %5707 = vst [vmem:[#allocation70_spill] sm:$0xff] %v4306_v61 }
  0xe7   : > { %v827_v50 = vld [vmem:[#allocation1] sm:$0xff]  ;;  %5708 = vst [vmem:[#allocation71_spill] sm:$0xff] %v4310_v44 }
  0xe8   : > { %829 = vst [vmem:[#allocation1] ss:$9 sm:$0xff] %v4289_v48  ;;  %3150 = vmatmul.msk.bf16.vlgmr.msra.gmra.mxu3 %vm867_vm4, %v827_v50  ;;  %v327_v50 = vld [vmem:[%s3982_s28 + $0x4] sm:$0xf] }
  0xe9   : > { %831 = vst [vmem:[#allocation1 + $0x1] ss:$9 sm:$0xff] %v4292_v31  ;;  %v381_v2 = vrot.slane %v327_v50, 3 }
  0xea   : > { %833 = vst [vmem:[#allocation1 + $0x2] ss:$9 sm:$0xff] %v4295_v5 }
  0xeb   : > { %834 = vst [vmem:[#allocation1 + $0x3] ss:$9 sm:$0xff] %v4300_v3  ;;  %v4333_v3 = vrot.slane %v417_v16, 3  ;;  %v429_v5 = vsel %vm416_vm3, %v327_v50, %v381_v2  ;;  %v4339_v31 = vsel %vm404_vm0, %v327_v50, %v381_v2  ;;  %v3371_v16 = vld [vmem:[#allocation7 + $0xc8] sm:$0xff] }
  0xec   : > { %5709 = vst [vmem:[#allocation72_spill] sm:$0xff] %v4315_v8  ;;  %v4348_v7 = vrot.slane %v429_v5, 3 }
  0xed   : > { %836 = vst [vmem:[#allocation1 + $0x4] ss:$9 sm:$0xff] %v4302_v36  ;;  %v4330_v36 = vrot.slane %v413_v54, 2 }
  0xee   : > { %838 = vst [vmem:[#allocation1 + $0x5] ss:$9 sm:$0xff] %v4306_v61  ;;  %v423_v61 = vsel %vm408_vm1, %v327_v50, %v381_v2 }
  0xef   : > { %840 = vst [vmem:[#allocation1 + $0x6] ss:$9 sm:$0xff] %v4310_v44  ;;  %v4341_v10 = vrot.slane %v423_v61, 1  ;;  %v328_v61 = vld [vmem:[%s3982_s28 + $0x8] sm:$0x1]  ;;  %s3683_s28 = scalar_lea.hbm %s5444_s4, 128 }
  0xf0   : > { %841 = vst [vmem:[#allocation1 + $0x7] ss:$9 sm:$0xff] %v4315_v8  ;;  %v426_v8 = vsel %vm412_vm2, %v327_v50, %v381_v2  ;;  %v3372_v2 = vld [vmem:[#allocation7 + $0xd0] sm:$0xff]  ;;  %p3685_p3 = scmp.lt.s32.totalorder %s3683_s28, %s3679_s21 }
  0xf1   : > { %5710 = vst [vmem:[#allocation73_spill] sm:$0xff] %v4326_v35  ;;  %v4345_v4 = vrot.slane %v426_v8, 2  ;;  %v3373_v8 = vld [vmem:[#allocation7 + $0xd8] sm:$0xff] }
  0xf2   : > { %5711 = vst [vmem:[#allocation74_spill] sm:$0xff] %v4328_v51  ;;  %1279 = vmatpush.bf16.msrb.mxu2 %v3373_v8  ;;  %p3686_p4 = por %p3685_p3, %p3684_p9 }
  0xf3   : > { %5712 = vst [vmem:[#allocation75_spill] sm:$0xff] %v4330_v36 }
  0xf4   : > { %5713 = vst [vmem:[#allocation76_spill] sm:$0xff] %v4333_v3  ;;  %p3687_p6 = pnand %p3686_p4, %p3682_p13 }
  0xf5   : > { %5714 = vst [vmem:[#allocation77_spill] sm:$0xff] %v4339_v31 }
  0xf6   : > { %5715 = vst [vmem:[#allocation78_spill] sm:$0xff] %v4341_v10  ;;  %1280 = vmatpush.bf16.msrb.mxu2 %v3372_v2 }
  0xf7   : > { %v842_v44 = vld [vmem:[#allocation1] sm:$0xff]  ;;  %5716 = vst [vmem:[#allocation79_spill] sm:$0xff] %v4345_v4 }
  0xf8   : > { %940 = vst [vmem:[#allocation1] ss:$9 sm:$0xff] %v4326_v35  ;;  %3151 = vmatmul.msk.bf16.gmra.mxu3 %vm867_vm4, %v842_v44  ;;  %v382_v44 = vrot.slane %v328_v61, 3  ;;  %v5732_v35 = vld [vmem:[#allocation61_spill] sm:$0xff] }
  0xf9   : > { %943 = vst [vmem:[#allocation1 + $0x1] ss:$9 sm:$0xff] %v4328_v51  ;;  %v5731_v51 = vld [vmem:[#allocation60_spill] sm:$0xff] }
  0xfa   : > { %946 = vst [vmem:[#allocation1 + $0x2] ss:$9 sm:$0xff] %v4330_v36  ;;  %v4363_v5 = vsel %vm404_vm0, %v328_v61, %v382_v44  ;;  %1281 = vmatpush.bf16.msrb.mxu2 %v3371_v16  ;;  %v3370_v61 = vld [vmem:[#allocation7 + $0xc0] sm:$0xff]  ;;  %v5719_v16 = vld [vmem:[#allocation48_spill] sm:$0xff] }
  0xfb   : > { %5717 = vst [vmem:[#allocation80_spill] sm:$0xff] %v4348_v7  ;;  %v5730_v36 = vld [vmem:[#allocation59_spill] sm:$0xff] }
  0xfc   : > { %949 = vst [vmem:[#allocation1 + $0x3] ss:$9 sm:$0xff] %v4333_v3  ;;  %v5729_v3 = vld [vmem:[#allocation58_spill] sm:$0xff] }
  0xfd   : > { %951 = vst [vmem:[#allocation1 + $0x4] ss:$9 sm:$0xff] %v4339_v31  ;;  %v5728_v31 = vld [vmem:[#allocation57_spill] sm:$0xff] }
  0xfe   : > { %954 = vst [vmem:[#allocation1 + $0x5] ss:$9 sm:$0xff] %v4341_v10  ;;  %1282 = vmatpush.bf16.msrb.mxu2 %v3370_v61  ;;  %v5720_v61 = vld [vmem:[#allocation49_spill] sm:$0xff]  ;;  %v5727_v10 = vld [vmem:[#allocation56_spill] sm:$0xff] }
  0xff   : > { %957 = vst [vmem:[#allocation1 + $0x6] ss:$9 sm:$0xff] %v4345_v4 }
 0x100   : > { %960 = vst [vmem:[#allocation1 + $0x7] ss:$9 sm:$0xff] %v4348_v7  ;;  %v5725_v7 = vld [vmem:[#allocation54_spill] sm:$0xff] }
 0x101   : > { %5718 = vst [vmem:[#allocation81_spill] sm:$0xff] %v4363_v5 }
 0x107   : > { %v961_v50 = vld [vmem:[#allocation1] sm:$0xff] }
 0x108   : > { %3168 = vmatmul.msk.bf16.vlgmr.msrb.gmra.mxu1 %vm867_vm4, %v961_v50  ;;  %963 = vst [vmem:[#allocation1 + $0x1] ss:$9 sm:$0xff] %v4003_v6 }
 0x109   : > { %964 = vst [vmem:[#allocation1 + $0x2] ss:$9 sm:$0xff] %v4008_v11 }
 0x10a   : > { %965 = vst [vmem:[#allocation1 + $0x3] ss:$9 sm:$0xff] %v4010_v12 }
 0x10b   : > { %966 = vst [vmem:[#allocation1 + $0x4] ss:$9 sm:$0xff] %v4012_v13 }
 0x10c   : > { %967 = vst [vmem:[#allocation1 + $0x5] ss:$9 sm:$0xff] %v4015_v14 }
 0x10d   : > { %968 = vst [vmem:[#allocation1 + $0x6] ss:$9 sm:$0xff] %v4022_v18 }
 0x10e   : > { %969 = vst [vmem:[#allocation1 + $0x7] ss:$9 sm:$0xff] %v4024_v19 }
 0x10f   : > { %962 = vst [vmem:[#allocation1] ss:$9 sm:$0xff] %v4363_v5  ;;  %v5724_v5 = vld [vmem:[#allocation53_spill] sm:$0xff] }
 0x116   : > { %v970_v54 = vld [vmem:[#allocation1] sm:$0xff] }
 0x117   : > { %971 = vst [vmem:[#allocation1] ss:$9 sm:$0xff] %v4028_v21  ;;  %v5734_v21 = vld [vmem:[#allocation63_spill] sm:$0xff] }
 0x118   : > { %3169 = vmatmul.msk.bf16.gmra.mxu1 %vm867_vm4, %v970_v54  ;;  %972 = vst [vmem:[#allocation1 + $0x1] ss:$9 sm:$0xff] %v4040_v30  ;;  %v5733_v30 = vld [vmem:[#allocation62_spill] sm:$0xff] }
 0x119   : > { %973 = vst [vmem:[#allocation1 + $0x2] ss:$9 sm:$0xff] %v4044_v32 }
 0x11a   : > { %974 = vst [vmem:[#allocation1 + $0x3] ss:$9 sm:$0xff] %v4046_v33 }
 0x11b   : > { %975 = vst [vmem:[#allocation1 + $0x4] ss:$9 sm:$0xff] %v4048_v34 }
 0x11c   : > { %976 = vst [vmem:[#allocation1 + $0x5] ss:$9 sm:$0xff] %v4051_v37 }
 0x11d   : > { %977 = vst [vmem:[#allocation1 + $0x6] ss:$9 sm:$0xff] %v4058_v39 }
 0x11e   : > { %978 = vst [vmem:[#allocation1 + $0x7] ss:$9 sm:$0xff] %v4060_v40 }
 0x125   : > { %v979_v50 = vld [vmem:[#allocation1] sm:$0xff] }
 0x126   : > { %980 = vst [vmem:[#allocation1] ss:$9 sm:$0xff] %v4063_v41 }
 0x127   : > { %981 = vst [vmem:[#allocation1 + $0x1] ss:$9 sm:$0xff] %v4074_v49 }
 0x128   : > { %3170 = vmatmul.msk.bf16.gmra.mxu1 %vm867_vm4, %v979_v50  ;;  %982 = vst [vmem:[#allocation1 + $0x2] ss:$9 sm:$0xff] %v4079_v52  ;;  %v5721_v50 = vld [vmem:[#allocation50_spill] sm:$0xff] }
 0x129   : > { %983 = vst [vmem:[#allocation1 + $0x3] ss:$9 sm:$0xff] %v4083_v55 }
 0x12a   : > { %984 = vst [vmem:[#allocation1 + $0x4] ss:$9 sm:$0xff] %v4085_v56 }
 0x12b   : > { %985 = vst [vmem:[#allocation1 + $0x5] ss:$9 sm:$0xff] %v4088_v57 }
 0x12c   : > { %986 = vst [vmem:[#allocation1 + $0x6] ss:$9 sm:$0xff] %v4092_v60 }
 0x12d   : > { %987 = vst [vmem:[#allocation1 + $0x7] ss:$9 sm:$0xff] %v4097_v62 }
 0x134   : > { %v988_v44 = vld [vmem:[#allocation1] sm:$0xff] }
 0x135   : > { %989 = vst [vmem:[#allocation1] ss:$9 sm:$0xff] %v4099_v63 }
 0x136   : > { %990 = vst [vmem:[#allocation1 + $0x1] ss:$9 sm:$0xff] %v4110_v9 }
 0x137   : > { %991 = vst [vmem:[#allocation1 + $0x2] ss:$9 sm:$0xff] %v4113_v15 }
 0x138   : > { %3171 = vmatmul.msk.bf16.gmra.mxu1 %vm867_vm4, %v988_v44  ;;  %992 = vst [vmem:[#allocation1 + $0x3] ss:$9 sm:$0xff] %v4118_v22  ;;  %v5722_v44 = vld [vmem:[#allocation51_spill] sm:$0xff] }
 0x139   : > { %993 = vst [vmem:[#allocation1 + $0x4] ss:$9 sm:$0xff] %v4122_v25 }
 0x13a   : > { %994 = vst [vmem:[#allocation1 + $0x5] ss:$9 sm:$0xff] %v4124_v26 }
 0x13b   : > { %995 = vst [vmem:[#allocation1 + $0x6] ss:$9 sm:$0xff] %v4128_v27 }
 0x13c   : > { %996 = vst [vmem:[#allocation1 + $0x7] ss:$9 sm:$0xff] %v4131_v28 }
 0x143   : > { %v997_v8 = vld [vmem:[#allocation1] sm:$0xff] }
 0x144   : > { %998 = vst [vmem:[#allocation1] ss:$9 sm:$0xff] %v4136_v29 }
 0x145   : > { %999 = vst [vmem:[#allocation1 + $0x1] ss:$9 sm:$0xff] %v4147_v45 }
 0x146   : > { %1000 = vst [vmem:[#allocation1 + $0x2] ss:$9 sm:$0xff] %v4149_v46 }
 0x147   : > { %1001 = vst [vmem:[#allocation1 + $0x3] ss:$9 sm:$0xff] %v4151_v47 }
 0x148   : > { %1002 = vst [vmem:[#allocation1 + $0x4] ss:$9 sm:$0xff] %v4156_v53  ;;  %3172 = vmatmul.msk.bf16.gmra.mxu1 %vm867_vm4, %v997_v8  ;;  %v5723_v8 = vld [vmem:[#allocation52_spill] sm:$0xff] }
 0x149   : > { %1003 = vst [vmem:[#allocation1 + $0x5] ss:$9 sm:$0xff] %v4161_v58 }
 0x14a   : > { %1004 = vst [vmem:[#allocation1 + $0x6] ss:$9 sm:$0xff] %v4163_v59 }
 0x14b   : > { %1005 = vst [vmem:[#allocation1 + $0x7] ss:$9 sm:$0xff] %v4168_v0 }
 0x152   : > { %v1006_v2 = vld [vmem:[#allocation1] sm:$0xff] }
 0x153   : > { %1007 = vst [vmem:[#allocation1] ss:$9 sm:$0xff] %v4171_v1 }
 0x154   : > { %1008 = vst [vmem:[#allocation1 + $0x1] ss:$9 sm:$0xff] %v4184_v17 }
 0x155   : > { %1009 = vst [vmem:[#allocation1 + $0x2] ss:$9 sm:$0xff] %v4186_v20 }
 0x156   : > { %1010 = vst [vmem:[#allocation1 + $0x3] ss:$9 sm:$0xff] %v4188_v23 }
 0x157   : > { %1011 = vst [vmem:[#allocation1 + $0x4] ss:$9 sm:$0xff] %v4190_v24 }
 0x158   : > { %1012 = vst [vmem:[#allocation1 + $0x5] ss:$9 sm:$0xff] %v4197_v38  ;;  %3173 = vmatmul.msk.bf16.gmra.mxu1 %vm867_vm4, %v1006_v2  ;;  %v5726_v2 = vld [vmem:[#allocation55_spill] sm:$0xff] }
 0x159   : > { %1013 = vst [vmem:[#allocation1 + $0x6] ss:$9 sm:$0xff] %v4201_v42 }
 0x15a   : > { %1014 = vst [vmem:[#allocation1 + $0x7] ss:$9 sm:$0xff] %v4203_v43 }
 0x161   : > { %v1015_v54 = vld [vmem:[#allocation1] sm:$0xff] }
 0x162   : > { %1016 = vst [vmem:[#allocation1] ss:$9 sm:$0xff] %v5719_v16 }
 0x163   : > { %1017 = vst [vmem:[#allocation1 + $0x1] ss:$9 sm:$0xff] %v5720_v61 }
 0x164   : > { %1018 = vst [vmem:[#allocation1 + $0x2] ss:$9 sm:$0xff] %v5721_v50 }
 0x165   : > { %1019 = vst [vmem:[#allocation1 + $0x3] ss:$9 sm:$0xff] %v5722_v44 }
 0x166   : > { %1020 = vst [vmem:[#allocation1 + $0x4] ss:$9 sm:$0xff] %v5723_v8 }
 0x167   : > { %1021 = vst [vmem:[#allocation1 + $0x5] ss:$9 sm:$0xff] %v5724_v5 }
 0x168   : > { %1022 = vst [vmem:[#allocation1 + $0x6] ss:$9 sm:$0xff] %v5725_v7  ;;  %3174 = vmatmul.msk.bf16.gmra.mxu1 %vm867_vm4, %v1015_v54 }
 0x169   : > { %1023 = vst [vmem:[#allocation1 + $0x7] ss:$9 sm:$0xff] %v5726_v2 }
 0x170   : > { %v1024_v4 = vld [vmem:[#allocation1] sm:$0xff] }
 0x171   : > { %1025 = vst [vmem:[#allocation1] ss:$9 sm:$0xff] %v5727_v10 }
 0x172   : > { %1026 = vst [vmem:[#allocation1 + $0x1] ss:$9 sm:$0xff] %v5728_v31 }
 0x173   : > { %1027 = vst [vmem:[#allocation1 + $0x2] ss:$9 sm:$0xff] %v5729_v3 }
 0x174   : > { %1028 = vst [vmem:[#allocation1 + $0x3] ss:$9 sm:$0xff] %v5730_v36 }
 0x175   : > { %1029 = vst [vmem:[#allocation1 + $0x4] ss:$9 sm:$0xff] %v5731_v51 }
 0x176   : > { %1030 = vst [vmem:[#allocation1 + $0x5] ss:$9 sm:$0xff] %v5732_v35 }
 0x177   : > { %1031 = vst [vmem:[#allocation1 + $0x6] ss:$9 sm:$0xff] %v5733_v30 }
 0x178   : > { %1032 = vst [vmem:[#allocation1 + $0x7] ss:$9 sm:$0xff] %v5734_v21  ;;  %3175 = vmatmul.msk.bf16.gmra.mxu1 %vm867_vm4, %v1024_v4 }
 0x17f   : > { %v1033_v54 = vld [vmem:[#allocation1] sm:$0xff] }
 0x180   : > { %1139 = vst [vmem:[#allocation1] ss:$9 sm:$0xff] %v4044_v32 }
 0x181   : > { %1141 = vst [vmem:[#allocation1 + $0x1] ss:$9 sm:$0xff] %v4046_v33 }
 0x182   : > { %1143 = vst [vmem:[#allocation1 + $0x2] ss:$9 sm:$0xff] %v4048_v34 }
 0x183   : > { %1145 = vst [vmem:[#allocation1 + $0x3] ss:$9 sm:$0xff] %v4051_v37 }
 0x184   : > { %1147 = vst [vmem:[#allocation1 + $0x4] ss:$9 sm:$0xff] %v4058_v39 }
 0x185   : > { %1149 = vst [vmem:[#allocation1 + $0x5] ss:$9 sm:$0xff] %v4060_v40 }
 0x186   : > { %1151 = vst [vmem:[#allocation1 + $0x6] ss:$9 sm:$0xff] %v4063_v41 }
 0x187   : > { %1153 = vst [vmem:[#allocation1 + $0x7] ss:$9 sm:$0xff] %v4074_v49 }
 0x188   : > { %3176 = vmatmul.msk.bf16.gmra.mxu1 %vm867_vm4, %v1033_v54 }
 0x18e   : > { %v1154_v4 = vld [vmem:[#allocation1] sm:$0xff] }
 0x18f   : > { %3193 = vmatmul.msk.bf16.vlgmr.msrb.gmra.mxu2 %vm867_vm4, %v1154_v4  ;;  %1155 = vst [vmem:[#allocation1] ss:$9 sm:$0xff] %v4079_v52  ;;  %v3381_v4 = vld [vmem:[#allocation7 + $0x98] sm:$0xff] }
 0x190   : > { %1156 = vst [vmem:[#allocation1 + $0x1] ss:$9 sm:$0xff] %v4083_v55  ;;  %1499 = vmatpush.bf16.msrb.mxu3 %v3381_v4  ;;  %v3385_v4 = vld [vmem:[#allocation7 + $0xf8] sm:$0xff] }
 0x191   : > { %1157 = vst [vmem:[#allocation1 + $0x2] ss:$9 sm:$0xff] %v4085_v56  ;;  %1876 = vmatpush.bf16.msra.mxu1 %v3385_v4  ;;  %v5737_v4 = vld [vmem:[#allocation67_spill] sm:$0xff] }
 0x192   : > { %1158 = vst [vmem:[#allocation1 + $0x3] ss:$9 sm:$0xff] %v4088_v57 }
 0x193   : > { %1159 = vst [vmem:[#allocation1 + $0x4] ss:$9 sm:$0xff] %v4092_v60 }
 0x194   : > { %1160 = vst [vmem:[#allocation1 + $0x5] ss:$9 sm:$0xff] %v4097_v62 }
 0x195   : > { %1161 = vst [vmem:[#allocation1 + $0x6] ss:$9 sm:$0xff] %v4099_v63 }
 0x196   : > { %1162 = vst [vmem:[#allocation1 + $0x7] ss:$9 sm:$0xff] %v4110_v9 }
 0x19d   : > { %v1163_v54 = vld [vmem:[#allocation1] sm:$0xff] }
 0x19e   : > { %1164 = vst [vmem:[#allocation1] ss:$9 sm:$0xff] %v4113_v15 }
 0x19f   : > { %3194 = vmatmul.msk.bf16.gmra.mxu2 %vm867_vm4, %v1163_v54  ;;  %1165 = vst [vmem:[#allocation1 + $0x1] ss:$9 sm:$0xff] %v4118_v22  ;;  %v3380_v54 = vld [vmem:[#allocation7 + $0x90] sm:$0xff] }
 0x1a0   : > { %1166 = vst [vmem:[#allocation1 + $0x2] ss:$9 sm:$0xff] %v4122_v25  ;;  %1500 = vmatpush.bf16.msrb.mxu3 %v3380_v54  ;;  %v5736_v54 = vld [vmem:[#allocation66_spill] sm:$0xff] }
 0x1a1   : > { %1167 = vst [vmem:[#allocation1 + $0x3] ss:$9 sm:$0xff] %v4124_v26 }
 0x1a2   : > { %1168 = vst [vmem:[#allocation1 + $0x4] ss:$9 sm:$0xff] %v4128_v27 }
 0x1a3   : > { %1169 = vst [vmem:[#allocation1 + $0x5] ss:$9 sm:$0xff] %v4131_v28 }
 0x1a4   : > { %1170 = vst [vmem:[#allocation1 + $0x6] ss:$9 sm:$0xff] %v4136_v29  ;;  %v3377_v29 = vld [vmem:[#allocation7 + $0x38] sm:$0xff] }
 0x1a5   : > { %1171 = vst [vmem:[#allocation1 + $0x7] ss:$9 sm:$0xff] %v4147_v45  ;;  %1683 = vmatpush.bf16.msrb.mxu0 %v3377_v29 }
 0x1ac   : > { %v1172_v9 = vld [vmem:[#allocation1] sm:$0xff] }
 0x1ad   : > { %1173 = vst [vmem:[#allocation1] ss:$9 sm:$0xff] %v4149_v46  ;;  %v3376_v46 = vld [vmem:[#allocation7 + $0x30] sm:$0xff] }
 0x1ae   : > { %1174 = vst [vmem:[#allocation1 + $0x1] ss:$9 sm:$0xff] %v4151_v47  ;;  %v3379_v47 = vld [vmem:[#allocation7 + $0x88] sm:$0xff]  ;;  %1684 = vmatpush.bf16.msrb.mxu0 %v3376_v46 }
 0x1af   : > { %3195 = vmatmul.msk.bf16.gmra.mxu2 %vm867_vm4, %v1172_v9  ;;  %1175 = vst [vmem:[#allocation1 + $0x2] ss:$9 sm:$0xff] %v4156_v53  ;;  %v3384_v9 = vld [vmem:[#allocation7 + $0xf0] sm:$0xff]  ;;  %1501 = vmatpush.bf16.msrb.mxu3 %v3379_v47  ;;  %v3375_v53 = vld [vmem:[#allocation7 + $0x28] sm:$0xff] }
 0x1b0   : > { %1176 = vst [vmem:[#allocation1 + $0x3] ss:$9 sm:$0xff] %v4161_v58  ;;  %v3378_v58 = vld [vmem:[#allocation7 + $0x80] sm:$0xff]  ;;  %1877 = vmatpush.bf16.msra.mxu1 %v3384_v9  ;;  %v5735_v47 = vld [vmem:[#allocation64_spill] sm:$0xff] }
 0x1b1   : > { %1177 = vst [vmem:[#allocation1 + $0x4] ss:$9 sm:$0xff] %v4163_v59  ;;  %v5738_v9 = vld [vmem:[#allocation68_spill] sm:$0xff] }
 0x1b2   : > { %1178 = vst [vmem:[#allocation1 + $0x5] ss:$9 sm:$0xff] %v4168_v0  ;;  %1685 = vmatpush.bf16.msrb.mxu0 %v3375_v53  ;;  %v353_v53 = vld [vmem:[%s3990_s20 + $0xc] sm:$0xf] }
 0x1b3   : > { %1179 = vst [vmem:[#allocation1 + $0x6] ss:$9 sm:$0xff] %v4171_v1  ;;  %1502 = vmatpush.bf16.msrb.mxu3 %v3378_v58 }
 0x1b4   : > { %1180 = vst [vmem:[#allocation1 + $0x7] ss:$9 sm:$0xff] %v4184_v17 }
 0x1bb   : > { %v1181_v59 = vld [vmem:[#allocation1] sm:$0xff] }
 0x1bc   : > { %1182 = vst [vmem:[#allocation1] ss:$9 sm:$0xff] %v4186_v20 }
 0x1bd   : > { %1183 = vst [vmem:[#allocation1 + $0x1] ss:$9 sm:$0xff] %v4188_v23 }
 0x1be   : > { %1184 = vst [vmem:[#allocation1 + $0x2] ss:$9 sm:$0xff] %v4190_v24 }
 0x1bf   : > { %3196 = vmatmul.msk.bf16.gmra.mxu2 %vm867_vm4, %v1181_v59  ;;  %1185 = vst [vmem:[#allocation1 + $0x3] ss:$9 sm:$0xff] %v4197_v38  ;;  %v660_v59 = vrot.slane %v353_v53, 3 }
 0x1c0   : > { %1186 = vst [vmem:[#allocation1 + $0x4] ss:$9 sm:$0xff] %v4201_v42 }
 0x1c1   : > { %1187 = vst [vmem:[#allocation1 + $0x5] ss:$9 sm:$0xff] %v4203_v43 }
 0x1c2   : > { %1188 = vst [vmem:[#allocation1 + $0x6] ss:$9 sm:$0xff] %v5719_v16 }
 0x1c3   : > { %1189 = vst [vmem:[#allocation1 + $0x7] ss:$9 sm:$0xff] %v5720_v61 }
 0x1ca   : > { %v1190_v29 = vld [vmem:[#allocation1] sm:$0xff] }
 0x1cb   : > { %1191 = vst [vmem:[#allocation1] ss:$9 sm:$0xff] %v5721_v50 }
 0x1cc   : > { %1192 = vst [vmem:[#allocation1 + $0x1] ss:$9 sm:$0xff] %v5722_v44 }
 0x1cd   : > { %1193 = vst [vmem:[#allocation1 + $0x2] ss:$9 sm:$0xff] %v5723_v8 }
 0x1ce   : > { %1194 = vst [vmem:[#allocation1 + $0x3] ss:$9 sm:$0xff] %v5724_v5 }
 0x1cf   : > { %3197 = vmatmul.msk.bf16.gmra.mxu2 %vm867_vm4, %v1190_v29  ;;  %1195 = vst [vmem:[#allocation1 + $0x4] ss:$9 sm:$0xff] %v5725_v7  ;;  %v5739_v29 = vld [vmem:[#allocation69_spill] sm:$0xff] }
 0x1d0   : > { %1196 = vst [vmem:[#allocation1 + $0x5] ss:$9 sm:$0xff] %v5726_v2 }
 0x1d1   : > { %1197 = vst [vmem:[#allocation1 + $0x6] ss:$9 sm:$0xff] %v5727_v10 }
 0x1d2   : > { %1198 = vst [vmem:[#allocation1 + $0x7] ss:$9 sm:$0xff] %v5728_v31 }
 0x1d9   : > { %v1199_v46 = vld [vmem:[#allocation1] sm:$0xff] }
 0x1da   : > { %1200 = vst [vmem:[#allocation1] ss:$9 sm:$0xff] %v5729_v3 }
 0x1db   : > { %1201 = vst [vmem:[#allocation1 + $0x1] ss:$9 sm:$0xff] %v5730_v36 }
 0x1dc   : > { %1202 = vst [vmem:[#allocation1 + $0x2] ss:$9 sm:$0xff] %v5731_v51  ;;  %v355_v51 = vld [vmem:[%s3990_s20 + $0x14] sm:$0x1] }
 0x1dd   : > { %1203 = vst [vmem:[#allocation1 + $0x3] ss:$9 sm:$0xff] %v5732_v35  ;;  %v662_v3 = vrot.slane %v355_v51, 3 }
 0x1de   : > { %1204 = vst [vmem:[#allocation1 + $0x4] ss:$9 sm:$0xff] %v5733_v30  ;;  %v5742_v30 = vld [vmem:[#allocation71_spill] sm:$0xff] }
 0x1df   : > { %1205 = vst [vmem:[#allocation1 + $0x5] ss:$9 sm:$0xff] %v5734_v21  ;;  %3198 = vmatmul.msk.bf16.gmra.mxu2 %vm867_vm4, %v1199_v46  ;;  %v4500_v21 = vsel %vm404_vm0, %v353_v53, %v660_v59  ;;  %v5741_v46 = vld [vmem:[#allocation70_spill] sm:$0xff] }
 0x1e0   : > { %1206 = vst [vmem:[#allocation1 + $0x6] ss:$9 sm:$0xff] %v5735_v47  ;;  %v354_v47 = vld [vmem:[%s3990_s20 + $0x10] sm:$0xf] }
 0x1e1   : > { %1207 = vst [vmem:[#allocation1 + $0x7] ss:$9 sm:$0xff] %v4289_v48  ;;  %v5743_v48 = vld [vmem:[#allocation72_spill] sm:$0xff] }
 0x1e2   : > { %5740 = vst [vmem:[#allocation48_spill] sm:$0xff] %v4500_v21 }
 0x1e8   : > { %v1208_v58 = vld [vmem:[#allocation1] sm:$0xff] }
 0x1e9   : > { %1209 = vst [vmem:[#allocation1] ss:$9 sm:$0xff] %v5736_v54  ;;  %v661_v54 = vrot.slane %v354_v47, 3 }
 0x1ea   : > { %1210 = vst [vmem:[#allocation1 + $0x1] ss:$9 sm:$0xff] %v5737_v4  ;;  %v666_v4 = vsel %vm408_vm1, %v353_v53, %v660_v59 }
 0x1eb   : > { %1211 = vst [vmem:[#allocation1 + $0x2] ss:$9 sm:$0xff] %v5738_v9  ;;  %v669_v9 = vsel %vm412_vm2, %v353_v53, %v660_v59  ;;  %v4511_v35 = vrot.slane %v666_v4, 1  ;;  %v4522_v31 = vsel %vm404_vm0, %v354_v47, %v661_v54  ;;  %v4535_v4 = vsel %vm404_vm0, %v355_v51, %v662_v3  ;;  %v5752_v3 = vld [vmem:[#allocation26_spill] sm:$0xff]  ;;  %v5753_v51 = vld [vmem:[#allocation27_spill] sm:$0xff] }
 0x1ec   : > { %1212 = vst [vmem:[#allocation1 + $0x3] ss:$9 sm:$0xff] %v5739_v29  ;;  %v672_v29 = vsel %vm416_vm3, %v353_v53, %v660_v59 }
 0x1ed   : > { %1213 = vst [vmem:[#allocation1 + $0x4] ss:$9 sm:$0xff] %v5741_v46  ;;  %v4514_v46 = vrot.slane %v669_v9, 2  ;;  %v4517_v36 = vrot.slane %v672_v29, 3 }
 0x1ee   : > { %1214 = vst [vmem:[#allocation1 + $0x5] ss:$9 sm:$0xff] %v5742_v30  ;;  %v678_v30 = vsel %vm408_vm1, %v354_v47, %v661_v54 }
 0x1ef   : > { %1215 = vst [vmem:[#allocation1 + $0x6] ss:$9 sm:$0xff] %v5743_v48  ;;  %3199 = vmatmul.msk.bf16.gmra.mxu2 %vm867_vm4, %v1208_v58  ;;  %v681_v58 = vsel %vm412_vm2, %v354_v47, %v661_v54  ;;  %v4524_v10 = vrot.slane %v678_v30, 1  ;;  %v3383_v30 = vld [vmem:[#allocation7 + $0xe8] sm:$0xff] }
 0x1f0   : > { %1216 = vst [vmem:[#allocation1 + $0x7] ss:$9 sm:$0xff] %v4500_v21  ;;  %v684_v21 = vsel %vm416_vm3, %v354_v47, %v661_v54  ;;  %v4527_v53 = vrot.slane %v681_v58, 2  ;;  %v3374_v47 = vld [vmem:[#allocation7 + $0x20] sm:$0xff]  ;;  %1878 = vmatpush.bf16.msra.mxu1 %v3383_v30  ;;  %v5754_v58 = vld [vmem:[#allocation37_spill] sm:$0xff]  ;;  %v5755_v30 = vld [vmem:[#allocation40_spill] sm:$0xff] }
 0x1f1   : > { %5744 = vst [vmem:[#allocation49_spill] sm:$0xff] %v4511_v35  ;;  %v4530_v59 = vrot.slane %v684_v21, 3  ;;  %1686 = vmatpush.bf16.msrb.mxu0 %v3374_v47  ;;  %v3382_v21 = vld [vmem:[#allocation7 + $0xe0] sm:$0xff] }
 0x1f2   : > { %5745 = vst [vmem:[#allocation50_spill] sm:$0xff] %v4514_v46 }
 0x1f3   : > { %5746 = vst [vmem:[#allocation51_spill] sm:$0xff] %v4517_v36 }
 0x1f4   : > { %5747 = vst [vmem:[#allocation82_spill] sm:$0xff] %v4522_v31  ;;  %1879 = vmatpush.bf16.msra.mxu1 %v3382_v21  ;;  %v5756_v21 = vld [vmem:[#allocation41_spill] sm:$0xff] }
 0x1f5   : > { %5748 = vst [vmem:[#allocation83_spill] sm:$0xff] %v4524_v10 }
 0x1f6   : > { %5749 = vst [vmem:[#allocation84_spill] sm:$0xff] %v4527_v53 }
 0x1f7   : > { %v1217_v48 = vld [vmem:[#allocation1] sm:$0xff]  ;;  %5750 = vst [vmem:[#allocation85_spill] sm:$0xff] %v4530_v59 }
 0x1f8   : > { %1219 = vst [vmem:[#allocation1] ss:$9 sm:$0xff] %v4511_v35  ;;  %v5767_v35 = vld [vmem:[#allocation62_spill] sm:$0xff] }
 0x1f9   : > { %1221 = vst [vmem:[#allocation1 + $0x1] ss:$9 sm:$0xff] %v4514_v46  ;;  %v5766_v46 = vld [vmem:[#allocation61_spill] sm:$0xff] }
 0x1fa   : > { %1223 = vst [vmem:[#allocation1 + $0x2] ss:$9 sm:$0xff] %v4517_v36  ;;  %v5765_v36 = vld [vmem:[#allocation60_spill] sm:$0xff] }
 0x1fb   : > { %1224 = vst [vmem:[#allocation1 + $0x3] ss:$9 sm:$0xff] %v4522_v31  ;;  %v5764_v31 = vld [vmem:[#allocation59_spill] sm:$0xff] }
 0x1fc   : > { %5751 = vst [vmem:[#allocation86_spill] sm:$0xff] %v4535_v4 }
 0x1fd   : > { %1226 = vst [vmem:[#allocation1 + $0x4] ss:$9 sm:$0xff] %v4524_v10  ;;  %v5763_v10 = vld [vmem:[#allocation58_spill] sm:$0xff] }
 0x1fe   : > { %1228 = vst [vmem:[#allocation1 + $0x5] ss:$9 sm:$0xff] %v4527_v53  ;;  %v5762_v53 = vld [vmem:[#allocation57_spill] sm:$0xff] }
 0x1ff   : > { %1230 = vst [vmem:[#allocation1 + $0x6] ss:$9 sm:$0xff] %v4530_v59  ;;  %3200 = vmatmul.msk.bf16.gmra.mxu2 %vm867_vm4, %v1217_v48 }
 0x200   : > { %1231 = vst [vmem:[#allocation1 + $0x7] ss:$9 sm:$0xff] %v4535_v4 }
 0x207   : > { %v1232_v54 = vld [vmem:[#allocation1] sm:$0xff] }
 0x208   : > { %1365 = vst [vmem:[#allocation1] ss:$9 sm:$0xff] %v4003_v6 }
 0x209   : > { %1367 = vst [vmem:[#allocation1 + $0x1] ss:$9 sm:$0xff] %v4008_v11 }
 0x20a   : > { %1369 = vst [vmem:[#allocation1 + $0x2] ss:$9 sm:$0xff] %v4010_v12 }
 0x20b   : > { %1371 = vst [vmem:[#allocation1 + $0x3] ss:$9 sm:$0xff] %v4012_v13 }
 0x20c   : > { %1373 = vst [vmem:[#allocation1 + $0x4] ss:$9 sm:$0xff] %v4015_v14 }
 0x20d   : > { %1375 = vst [vmem:[#allocation1 + $0x5] ss:$9 sm:$0xff] %v4022_v18 }
 0x20e   : > { %1377 = vst [vmem:[#allocation1 + $0x6] ss:$9 sm:$0xff] %v4024_v19 }
 0x20f   : > { %1379 = vst [vmem:[#allocation1 + $0x7] ss:$9 sm:$0xff] %v5752_v3  ;;  %3201 = vmatmul.msk.bf16.gmra.mxu2 %vm867_vm4, %v1232_v54  ;;  %v5757_v54 = vld [vmem:[#allocation42_spill] sm:$0xff] }
 0x216   : > { %v1380_v48 = vld [vmem:[#allocation1] sm:$0xff] }
 0x217   : > { %3218 = vmatmul.msk.bf16.vlgmr.msrb.gmra.mxu3 %vm867_vm4, %v1380_v48  ;;  %1381 = vst [vmem:[#allocation1] ss:$9 sm:$0xff] %v5753_v51  ;;  %v5758_v48 = vld [vmem:[#allocation43_spill] sm:$0xff] }
 0x218   : > { %1382 = vst [vmem:[#allocation1 + $0x1] ss:$9 sm:$0xff] %v4044_v32 }
 0x219   : > { %1383 = vst [vmem:[#allocation1 + $0x2] ss:$9 sm:$0xff] %v4046_v33 }
 0x21a   : > { %1384 = vst [vmem:[#allocation1 + $0x3] ss:$9 sm:$0xff] %v4048_v34 }
 0x21b   : > { %1385 = vst [vmem:[#allocation1 + $0x4] ss:$9 sm:$0xff] %v4051_v37 }
 0x21c   : > { %1386 = vst [vmem:[#allocation1 + $0x5] ss:$9 sm:$0xff] %v4058_v39 }
 0x21d   : > { %1387 = vst [vmem:[#allocation1 + $0x6] ss:$9 sm:$0xff] %v4060_v40 }
 0x21e   : > { %1388 = vst [vmem:[#allocation1 + $0x7] ss:$9 sm:$0xff] %v4063_v41 }
 0x225   : > { %v1389_v9 = vld [vmem:[#allocation1] sm:$0xff] }
 0x226   : > { %1390 = vst [vmem:[#allocation1] ss:$9 sm:$0xff] %v4074_v49 }
 0x227   : > { %1391 = vst [vmem:[#allocation1 + $0x1] ss:$9 sm:$0xff] %v4079_v52  ;;  %3219 = vmatmul.msk.bf16.gmra.mxu3 %vm867_vm4, %v1389_v9  ;;  %v5759_v9 = vld [vmem:[#allocation44_spill] sm:$0xff] }
 0x228   : > { %1392 = vst [vmem:[#allocation1 + $0x2] ss:$9 sm:$0xff] %v4083_v55 }
 0x229   : > { %1393 = vst [vmem:[#allocation1 + $0x3] ss:$9 sm:$0xff] %v4085_v56 }
 0x22a   : > { %1394 = vst [vmem:[#allocation1 + $0x4] ss:$9 sm:$0xff] %v4088_v57 }
 0x22b   : > { %1395 = vst [vmem:[#allocation1 + $0x5] ss:$9 sm:$0xff] %v4092_v60 }
 0x22c   : > { %1396 = vst [vmem:[#allocation1 + $0x6] ss:$9 sm:$0xff] %v4097_v62 }
 0x22d   : > { %1397 = vst [vmem:[#allocation1 + $0x7] ss:$9 sm:$0xff] %v4099_v63 }
 0x234   : > { %v1398_v29 = vld [vmem:[#allocation1] sm:$0xff] }
 0x235   : > { %1399 = vst [vmem:[#allocation1] ss:$9 sm:$0xff] %v5754_v58 }
 0x236   : > { %1400 = vst [vmem:[#allocation1 + $0x1] ss:$9 sm:$0xff] %v4113_v15 }
 0x237   : > { %1401 = vst [vmem:[#allocation1 + $0x2] ss:$9 sm:$0xff] %v4118_v22  ;;  %3220 = vmatmul.msk.bf16.gmra.mxu3 %vm867_vm4, %v1398_v29  ;;  %v5760_v29 = vld [vmem:[#allocation45_spill] sm:$0xff] }
 0x238   : > { %1402 = vst [vmem:[#allocation1 + $0x3] ss:$9 sm:$0xff] %v4122_v25 }
 0x239   : > { %1403 = vst [vmem:[#allocation1 + $0x4] ss:$9 sm:$0xff] %v4124_v26 }
 0x23a   : > { %1404 = vst [vmem:[#allocation1 + $0x5] ss:$9 sm:$0xff] %v4128_v27 }
 0x23b   : > { %1405 = vst [vmem:[#allocation1 + $0x6] ss:$9 sm:$0xff] %v4131_v28 }
 0x23c   : > { %1406 = vst [vmem:[#allocation1 + $0x7] ss:$9 sm:$0xff] %v5755_v30 }
 0x243   : > { %v1407_v47 = vld [vmem:[#allocation1] sm:$0xff] }
 0x244   : > { %1408 = vst [vmem:[#allocation1] ss:$9 sm:$0xff] %v4147_v45 }
 0x245   : > { %1409 = vst [vmem:[#allocation1 + $0x1] ss:$9 sm:$0xff] %v5756_v21 }
 0x246   : > { %1410 = vst [vmem:[#allocation1 + $0x2] ss:$9 sm:$0xff] %v5757_v54 }
 0x247   : > { %1411 = vst [vmem:[#allocation1 + $0x3] ss:$9 sm:$0xff] %v5758_v48  ;;  %3221 = vmatmul.msk.bf16.gmra.mxu3 %vm867_vm4, %v1407_v47 }
 0x248   : > { %1412 = vst [vmem:[#allocation1 + $0x4] ss:$9 sm:$0xff] %v5759_v9 }
 0x249   : > { %1413 = vst [vmem:[#allocation1 + $0x5] ss:$9 sm:$0xff] %v5760_v29 }
 0x24a   : > { %1414 = vst [vmem:[#allocation1 + $0x6] ss:$9 sm:$0xff] %v4168_v0 }
 0x24b   : > { %1415 = vst [vmem:[#allocation1 + $0x7] ss:$9 sm:$0xff] %v4171_v1 }
 0x252   : > { %v1416_v4 = vld [vmem:[#allocation1] sm:$0xff] }
 0x253   : > { %1417 = vst [vmem:[#allocation1] ss:$9 sm:$0xff] %v4184_v17 }
 0x254   : > { %1418 = vst [vmem:[#allocation1 + $0x1] ss:$9 sm:$0xff] %v4186_v20 }
 0x255   : > { %1419 = vst [vmem:[#allocation1 + $0x2] ss:$9 sm:$0xff] %v4188_v23 }
 0x256   : > { %1420 = vst [vmem:[#allocation1 + $0x3] ss:$9 sm:$0xff] %v4190_v24 }
 0x257   : > { %1421 = vst [vmem:[#allocation1 + $0x4] ss:$9 sm:$0xff] %v4197_v38  ;;  %3222 = vmatmul.msk.bf16.gmra.mxu3 %vm867_vm4, %v1416_v4  ;;  %v5761_v4 = vld [vmem:[#allocation56_spill] sm:$0xff] }
 0x258   : > { %1422 = vst [vmem:[#allocation1 + $0x5] ss:$9 sm:$0xff] %v4201_v42 }
 0x259   : > { %1423 = vst [vmem:[#allocation1 + $0x6] ss:$9 sm:$0xff] %v4203_v43 }
 0x25a   : > { %1424 = vst [vmem:[#allocation1 + $0x7] ss:$9 sm:$0xff] %v5719_v16 }
 0x261   : > { %v1425_v47 = vld [vmem:[#allocation1] sm:$0xff] }
 0x262   : > { %1426 = vst [vmem:[#allocation1] ss:$9 sm:$0xff] %v5720_v61 }
 0x263   : > { %1427 = vst [vmem:[#allocation1 + $0x1] ss:$9 sm:$0xff] %v5721_v50 }
 0x264   : > { %1428 = vst [vmem:[#allocation1 + $0x2] ss:$9 sm:$0xff] %v5722_v44 }
 0x265   : > { %1429 = vst [vmem:[#allocation1 + $0x3] ss:$9 sm:$0xff] %v5723_v8 }
 0x266   : > { %1430 = vst [vmem:[#allocation1 + $0x4] ss:$9 sm:$0xff] %v5724_v5 }
 0x267   : > { %1431 = vst [vmem:[#allocation1 + $0x5] ss:$9 sm:$0xff] %v5725_v7  ;;  %3223 = vmatmul.msk.bf16.gmra.mxu3 %vm867_vm4, %v1425_v47  ;;  %v5768_v7 = vld [vmem:[#allocation63_spill] sm:$0xff]  ;;  %v5769_v47 = vld [vmem:[#allocation64_spill] sm:$0xff] }
 0x268   : > { %1432 = vst [vmem:[#allocation1 + $0x6] ss:$9 sm:$0xff] %v5726_v2  ;;  %v5770_v2 = vld [vmem:[#allocation65_spill] sm:$0xff] }
 0x269   : > { %1433 = vst [vmem:[#allocation1 + $0x7] ss:$9 sm:$0xff] %v5761_v4 }
 0x270   : > { %v1434_v59 = vld [vmem:[#allocation1] sm:$0xff] }
 0x271   : > { %1435 = vst [vmem:[#allocation1] ss:$9 sm:$0xff] %v5762_v53  ;;  %v5771_v53 = vld [vmem:[#allocation66_spill] sm:$0xff] }
 0x272   : > { %1436 = vst [vmem:[#allocation1 + $0x1] ss:$9 sm:$0xff] %v5763_v10  ;;  %v5772_v10 = vld [vmem:[#allocation67_spill] sm:$0xff] }
 0x273   : > { %1437 = vst [vmem:[#allocation1 + $0x2] ss:$9 sm:$0xff] %v5764_v31  ;;  %v5773_v31 = vld [vmem:[#allocation68_spill] sm:$0xff] }
 0x274   : > { %1438 = vst [vmem:[#allocation1 + $0x3] ss:$9 sm:$0xff] %v5765_v36  ;;  %v5774_v36 = vld [vmem:[#allocation69_spill] sm:$0xff] }
 0x275   : > { %1439 = vst [vmem:[#allocation1 + $0x4] ss:$9 sm:$0xff] %v5766_v46  ;;  %v5775_v46 = vld [vmem:[#allocation70_spill] sm:$0xff] }
 0x276   : > { %1440 = vst [vmem:[#allocation1 + $0x5] ss:$9 sm:$0xff] %v5767_v35  ;;  %v5776_v35 = vld [vmem:[#allocation71_spill] sm:$0xff] }
 0x277   : > { %1441 = vst [vmem:[#allocation1 + $0x6] ss:$9 sm:$0xff] %v5768_v7  ;;  %3224 = vmatmul.msk.bf16.gmra.mxu3 %vm867_vm4, %v1434_v59  ;;  %v5777_v7 = vld [vmem:[#allocation72_spill] sm:$0xff] }
 0x278   : > { %1442 = vst [vmem:[#allocation1 + $0x7] ss:$9 sm:$0xff] %v5769_v47  ;;  %v5778_v47 = vld [vmem:[#allocation73_spill] sm:$0xff] }
 0x27f   : > { %v1443_v4 = vld [vmem:[#allocation1] sm:$0xff] }
 0x280   : > { %1444 = vst [vmem:[#allocation1] ss:$9 sm:$0xff] %v5770_v2  ;;  %v5779_v2 = vld [vmem:[#allocation74_spill] sm:$0xff] }
 0x281   : > { %1445 = vst [vmem:[#allocation1 + $0x1] ss:$9 sm:$0xff] %v5771_v53  ;;  %v5780_v53 = vld [vmem:[#allocation75_spill] sm:$0xff] }
 0x282   : > { %1446 = vst [vmem:[#allocation1 + $0x2] ss:$9 sm:$0xff] %v5772_v10  ;;  %v5781_v10 = vld [vmem:[#allocation76_spill] sm:$0xff] }
 0x283   : > { %1447 = vst [vmem:[#allocation1 + $0x3] ss:$9 sm:$0xff] %v5773_v31  ;;  %v5782_v31 = vld [vmem:[#allocation77_spill] sm:$0xff] }
 0x284   : > { %1448 = vst [vmem:[#allocation1 + $0x4] ss:$9 sm:$0xff] %v5774_v36  ;;  %v5783_v36 = vld [vmem:[#allocation78_spill] sm:$0xff] }
 0x285   : > { %1449 = vst [vmem:[#allocation1 + $0x5] ss:$9 sm:$0xff] %v5775_v46  ;;  %v5784_v46 = vld [vmem:[#allocation79_spill] sm:$0xff] }
 0x286   : > { %1450 = vst [vmem:[#allocation1 + $0x6] ss:$9 sm:$0xff] %v5776_v35  ;;  %v5785_v35 = vld [vmem:[#allocation80_spill] sm:$0xff] }
 0x287   : > { %1451 = vst [vmem:[#allocation1 + $0x7] ss:$9 sm:$0xff] %v5777_v7  ;;  %3225 = vmatmul.msk.bf16.gmra.mxu3 %vm867_vm4, %v1443_v4 }
 0x28e   : > { %v1452_v59 = vld [vmem:[#allocation1] sm:$0xff] }
 0x28f   : > { %1549 = vst [vmem:[#allocation1] ss:$9 sm:$0xff] %v5778_v47  ;;  %v5786_v47 = vld [vmem:[#allocation81_spill] sm:$0xff] }
 0x290   : > { %1551 = vst [vmem:[#allocation1 + $0x1] ss:$9 sm:$0xff] %v5779_v2 }
 0x291   : > { %1553 = vst [vmem:[#allocation1 + $0x2] ss:$9 sm:$0xff] %v5780_v53  ;;  %v915_v53 = vpop.f32.mrf.mxu2 }
 0x292   : > { %1555 = vst [vmem:[#allocation1 + $0x3] ss:$9 sm:$0xff] %v5781_v10  ;;  %v5793_v10 = vld [vmem:[#allocation55_spill] sm:$0xff] }
 0x293   : > { %1557 = vst [vmem:[#allocation1 + $0x4] ss:$9 sm:$0xff] %v5782_v31 }
 0x294   : > { %1559 = vst [vmem:[#allocation1 + $0x5] ss:$9 sm:$0xff] %v5783_v36 }
 0x295   : > { %1561 = vst [vmem:[#allocation1 + $0x6] ss:$9 sm:$0xff] %v5784_v46 }
 0x296   : > { %1563 = vst [vmem:[#allocation1 + $0x7] ss:$9 sm:$0xff] %v5785_v35 }
 0x297   : > { %3226 = vmatmul.msk.bf16.gmra.mxu3 %vm867_vm4, %v1452_v59 }
 0x29d   : > { %v1564_v4 = vld [vmem:[#allocation1] sm:$0xff] }
 0x29e   : > { %3243 = vmatmul.msk.bf16.vlgmr.msrb.gmra.mxu0 %vm867_vm4, %v1564_v4  ;;  %1565 = vst [vmem:[#allocation1] ss:$9 sm:$0xff] %v5786_v47  ;;  %v4647_v4 = vpop.f32.mrf.mxu1 }
 0x29f   : > { %1566 = vst [vmem:[#allocation1 + $0x1] ss:$9 sm:$0xff] %v4003_v6 }
 0x2a0   : > { %1567 = vst [vmem:[#allocation1 + $0x2] ss:$9 sm:$0xff] %v4008_v11 }
 0x2a1   : > { %1568 = vst [vmem:[#allocation1 + $0x3] ss:$9 sm:$0xff] %v4010_v12  ;;  %v5803_v12 = vld [vmem:[#allocation62_spill] sm:$0xff] }
 0x2a2   : > { %1569 = vst [vmem:[#allocation1 + $0x4] ss:$9 sm:$0xff] %v4012_v13  ;;  %v4719_v13 = vpop.f32.mrf.mxu2 }
 0x2a3   : > { %1570 = vst [vmem:[#allocation1 + $0x5] ss:$9 sm:$0xff] %v4015_v14  ;;  %v5800_v14 = vld [vmem:[#allocation61_spill] sm:$0xff] }
 0x2a4   : > { %1571 = vst [vmem:[#allocation1 + $0x6] ss:$9 sm:$0xff] %v4022_v18  ;;  %v5799_v18 = vld [vmem:[#allocation60_spill] sm:$0xff] }
 0x2a5   : > { %1572 = vst [vmem:[#allocation1 + $0x7] ss:$9 sm:$0xff] %v4024_v19  ;;  %v5798_v19 = vld [vmem:[#allocation59_spill] sm:$0xff] }
 0x2a6   : > { %5787 = vst [vmem:[#allocation37_spill] sm:$0xff] %v4647_v4  ;;  %v4652_v35 = vpop.f32.mrf.mxu1  ;;  %v5795_v4 = vld [vmem:[#allocation56_spill] sm:$0xff] }
 0x2a7   : > { %5788 = vst [vmem:[#allocation40_spill] sm:$0xff] %v4652_v35 }
 0x2a8   : > { %5801 = vst [vmem:[#allocation55_spill] sm:$0xff] %v4719_v13 }
 0x2aa   : > { %v920_v11 = vpop.f32.mrf.mxu2 }
 0x2ac   : > { %v1573_v59 = vld [vmem:[#allocation1] sm:$0xff] }
 0x2ad   : > { %1574 = vst [vmem:[#allocation1] ss:$9 sm:$0xff] %v5752_v3  ;;  %v5797_v3 = vld [vmem:[#allocation58_spill] sm:$0xff] }
 0x2ae   : > { %1575 = vst [vmem:[#allocation1 + $0x1] ss:$9 sm:$0xff] %v5753_v51  ;;  %3244 = vmatmul.msk.bf16.gmra.mxu0 %vm867_vm4, %v1573_v59  ;;  %v4663_v59 = vpop.f32.mrf.mxu1  ;;  %v5796_v51 = vld [vmem:[#allocation57_spill] sm:$0xff] }
 0x2af   : > { %1576 = vst [vmem:[#allocation1 + $0x2] ss:$9 sm:$0xff] %v4044_v32 }
 0x2b0   : > { %1577 = vst [vmem:[#allocation1 + $0x3] ss:$9 sm:$0xff] %v4046_v33 }
 0x2b1   : > { %1578 = vst [vmem:[#allocation1 + $0x4] ss:$9 sm:$0xff] %v4048_v34 }
 0x2b2   : > { %1579 = vst [vmem:[#allocation1 + $0x5] ss:$9 sm:$0xff] %v4051_v37  ;;  %v4735_v13 = vpop.f32.mrf.mxu2 }
 0x2b3   : > { %1580 = vst [vmem:[#allocation1 + $0x6] ss:$9 sm:$0xff] %v4058_v39 }
 0x2b4   : > { %1581 = vst [vmem:[#allocation1 + $0x7] ss:$9 sm:$0xff] %v4060_v40 }
 0x2b5   : > { %5805 = vst [vmem:[#allocation57_spill] sm:$0xff] %v4735_v13 }
 0x2bb   : > { %v1582_v47 = vld [vmem:[#allocation1] sm:$0xff] }
 0x2bc   : > { %1583 = vst [vmem:[#allocation1] ss:$9 sm:$0xff] %v4063_v41 }
 0x2bd   : > { %1584 = vst [vmem:[#allocation1 + $0x1] ss:$9 sm:$0xff] %v4074_v49 }
 0x2be   : > { %1585 = vst [vmem:[#allocation1 + $0x2] ss:$9 sm:$0xff] %v4079_v52  ;;  %3245 = vmatmul.msk.bf16.gmra.mxu0 %vm867_vm4, %v1582_v47  ;;  %v4671_v47 = vpop.f32.mrf.mxu1 }
 0x2bf   : > { %1586 = vst [vmem:[#allocation1 + $0x3] ss:$9 sm:$0xff] %v4083_v55 }
 0x2c0   : > { %1587 = vst [vmem:[#allocation1 + $0x4] ss:$9 sm:$0xff] %v4085_v56 }
 0x2c1   : > { %1588 = vst [vmem:[#allocation1 + $0x5] ss:$9 sm:$0xff] %v4088_v57 }
 0x2c2   : > { %1589 = vst [vmem:[#allocation1 + $0x6] ss:$9 sm:$0xff] %v4092_v60 }
 0x2c3   : > { %1590 = vst [vmem:[#allocation1 + $0x7] ss:$9 sm:$0xff] %v4097_v62 }
 0x2c4   : > { %5789 = vst [vmem:[#allocation42_spill] sm:$0xff] %v4671_v47 }
 0x2c6   : > { %v4676_v36 = vpop.f32.mrf.mxu1 }
 0x2ca   : > { %v1591_v35 = vld [vmem:[#allocation1] sm:$0xff] }
 0x2cb   : > { %1592 = vst [vmem:[#allocation1] ss:$9 sm:$0xff] %v4099_v63 }
 0x2cc   : > { %1593 = vst [vmem:[#allocation1 + $0x1] ss:$9 sm:$0xff] %v5754_v58 }
 0x2cd   : > { %1594 = vst [vmem:[#allocation1 + $0x2] ss:$9 sm:$0xff] %v4113_v15 }
 0x2ce   : > { %1595 = vst [vmem:[#allocation1 + $0x3] ss:$9 sm:$0xff] %v4118_v22  ;;  %3246 = vmatmul.msk.bf16.gmra.mxu0 %vm867_vm4, %v1591_v35  ;;  %v4687_v35 = vpop.f32.mrf.mxu1 }
 0x2cf   : > { %1596 = vst [vmem:[#allocation1 + $0x4] ss:$9 sm:$0xff] %v4122_v25 }
 0x2d0   : > { %1597 = vst [vmem:[#allocation1 + $0x5] ss:$9 sm:$0xff] %v4124_v26 }
 0x2d1   : > { %1598 = vst [vmem:[#allocation1 + $0x6] ss:$9 sm:$0xff] %v4128_v27 }
 0x2d2   : > { %1599 = vst [vmem:[#allocation1 + $0x7] ss:$9 sm:$0xff] %v4131_v28 }
 0x2d3   : > { %5790 = vst [vmem:[#allocation43_spill] sm:$0xff] %v4687_v35 }
 0x2d9   : > { %v1600_v46 = vld [vmem:[#allocation1] sm:$0xff] }
 0x2da   : > { %1601 = vst [vmem:[#allocation1] ss:$9 sm:$0xff] %v5755_v30 }
 0x2db   : > { %1602 = vst [vmem:[#allocation1 + $0x1] ss:$9 sm:$0xff] %v4147_v45 }
 0x2dc   : > { %1603 = vst [vmem:[#allocation1 + $0x2] ss:$9 sm:$0xff] %v5756_v21 }
 0x2dd   : > { %1604 = vst [vmem:[#allocation1 + $0x3] ss:$9 sm:$0xff] %v5757_v54 }
 0x2de   : > { %1605 = vst [vmem:[#allocation1 + $0x4] ss:$9 sm:$0xff] %v5758_v48  ;;  %3247 = vmatmul.msk.bf16.gmra.mxu0 %vm867_vm4, %v1600_v46  ;;  %v4694_v46 = vpop.f32.mrf.mxu1 }
 0x2df   : > { %1606 = vst [vmem:[#allocation1 + $0x5] ss:$9 sm:$0xff] %v5759_v9 }
 0x2e0   : > { %1607 = vst [vmem:[#allocation1 + $0x6] ss:$9 sm:$0xff] %v5760_v29 }
 0x2e1   : > { %1608 = vst [vmem:[#allocation1 + $0x7] ss:$9 sm:$0xff] %v4168_v0 }
 0x2e6   : > { %v4700_v31 = vpop.f32.mrf.mxu1 }
 0x2e7   : > { %5791 = vst [vmem:[#allocation44_spill] sm:$0xff] %v4700_v31 }
 0x2e8   : > { %v1609_v47 = vld [vmem:[#allocation1] sm:$0xff] }
 0x2e9   : > { %1610 = vst [vmem:[#allocation1] ss:$9 sm:$0xff] %v4171_v1 }
 0x2ea   : > { %1611 = vst [vmem:[#allocation1 + $0x1] ss:$9 sm:$0xff] %v4184_v17 }
 0x2eb   : > { %1612 = vst [vmem:[#allocation1 + $0x2] ss:$9 sm:$0xff] %v4186_v20 }
 0x2ec   : > { %1613 = vst [vmem:[#allocation1 + $0x3] ss:$9 sm:$0xff] %v4188_v23 }
 0x2ed   : > { %1614 = vst [vmem:[#allocation1 + $0x4] ss:$9 sm:$0xff] %v4190_v24 }
 0x2ee   : > { %1615 = vst [vmem:[#allocation1 + $0x5] ss:$9 sm:$0xff] %v4197_v38  ;;  %3248 = vmatmul.msk.bf16.gmra.mxu0 %vm867_vm4, %v1609_v47  ;;  %v5792_v47 = vld [vmem:[#allocation54_spill] sm:$0xff]  ;;  %v4711_v31 = vpop.f32.mrf.mxu1 }
 0x2ef   : > { %1616 = vst [vmem:[#allocation1 + $0x6] ss:$9 sm:$0xff] %v4201_v42 }
 0x2f0   : > { %1617 = vst [vmem:[#allocation1 + $0x7] ss:$9 sm:$0xff] %v4203_v43 }
 0x2f1   : > { %5794 = vst [vmem:[#allocation54_spill] sm:$0xff] %v4711_v31  ;;  %v5804_v31 = vld [vmem:[#allocation63_spill] sm:$0xff] }
 0x2f7   : > { %v1618_v35 = vld [vmem:[#allocation1] sm:$0xff] }
 0x2f8   : > { %1619 = vst [vmem:[#allocation1] ss:$9 sm:$0xff] %v5719_v16 }
 0x2f9   : > { %1620 = vst [vmem:[#allocation1 + $0x1] ss:$9 sm:$0xff] %v5720_v61 }
 0x2fa   : > { %1621 = vst [vmem:[#allocation1 + $0x2] ss:$9 sm:$0xff] %v5721_v50 }
 0x2fb   : > { %1622 = vst [vmem:[#allocation1 + $0x3] ss:$9 sm:$0xff] %v5722_v44 }
 0x2fc   : > { %1623 = vst [vmem:[#allocation1 + $0x4] ss:$9 sm:$0xff] %v5723_v8 }
 0x2fd   : > { %1624 = vst [vmem:[#allocation1 + $0x5] ss:$9 sm:$0xff] %v5724_v5 }
 0x2fe   : > { %1625 = vst [vmem:[#allocation1 + $0x6] ss:$9 sm:$0xff] %v5792_v47  ;;  %3249 = vmatmul.msk.bf16.gmra.mxu0 %vm867_vm4, %v1618_v35  ;;  %v4721_v35 = vpop.f32.mrf.mxu1 }
 0x2ff   : > { %1626 = vst [vmem:[#allocation1 + $0x7] ss:$9 sm:$0xff] %v5793_v10 }
 0x300   : > { %5802 = vst [vmem:[#allocation56_spill] sm:$0xff] %v4721_v35 }
 0x306   : > { %v1627_v2 = vld [vmem:[#allocation1] sm:$0xff]  ;;  %v4726_v6 = vpop.f32.mrf.mxu1 }
 0x307   : > { %1628 = vst [vmem:[#allocation1] ss:$9 sm:$0xff] %v5795_v4 }
 0x308   : > { %1629 = vst [vmem:[#allocation1 + $0x1] ss:$9 sm:$0xff] %v5796_v51 }
 0x309   : > { %1630 = vst [vmem:[#allocation1 + $0x2] ss:$9 sm:$0xff] %v5797_v3 }
 0x30a   : > { %1631 = vst [vmem:[#allocation1 + $0x3] ss:$9 sm:$0xff] %v5798_v19 }
 0x30b   : > { %1632 = vst [vmem:[#allocation1 + $0x4] ss:$9 sm:$0xff] %v5799_v18 }
 0x30c   : > { %1633 = vst [vmem:[#allocation1 + $0x5] ss:$9 sm:$0xff] %v5800_v14 }
 0x30d   : > { %1634 = vst [vmem:[#allocation1 + $0x6] ss:$9 sm:$0xff] %v5803_v12 }
 0x30e   : > { %1635 = vst [vmem:[#allocation1 + $0x7] ss:$9 sm:$0xff] %v5804_v31  ;;  %3250 = vmatmul.msk.bf16.gmra.mxu0 %vm867_vm4, %v1627_v2  ;;  %v4737_v2 = vpop.f32.mrf.mxu1 }
 0x30f   : > { %5806 = vst [vmem:[#allocation87_spill] sm:$0xff] %v4737_v2 }
 0x315   : > { %v1636_v7 = vld [vmem:[#allocation1] sm:$0xff] }
 0x316   : > { %1742 = vst [vmem:[#allocation1] ss:$9 sm:$0xff] %v4044_v32  ;;  %v4741_v32 = vpop.f32.mrf.mxu1 }
 0x317   : > { %1744 = vst [vmem:[#allocation1 + $0x1] ss:$9 sm:$0xff] %v4046_v33  ;;  %v925_v33 = vpop.f32.mrf.mxu2 }
 0x318   : > { %1746 = vst [vmem:[#allocation1 + $0x2] ss:$9 sm:$0xff] %v4048_v34 }
 0x319   : > { %1748 = vst [vmem:[#allocation1 + $0x3] ss:$9 sm:$0xff] %v4051_v37 }
 0x31a   : > { %1750 = vst [vmem:[#allocation1 + $0x4] ss:$9 sm:$0xff] %v4058_v39 }
 0x31b   : > { %1752 = vst [vmem:[#allocation1 + $0x5] ss:$9 sm:$0xff] %v4060_v40 }
 0x31c   : > { %1754 = vst [vmem:[#allocation1 + $0x6] ss:$9 sm:$0xff] %v4063_v41 }
 0x31d   : > { %1756 = vst [vmem:[#allocation1 + $0x7] ss:$9 sm:$0xff] %v4074_v49 }
 0x31e   : > { %3251 = vmatmul.msk.bf16.gmra.mxu0 %vm867_vm4, %v1636_v7  ;;  %v4754_v13 = vpop.f32.mrf.mxu1 }
 0x31f   : > { %v4752_v7 = vpop.f32.mrf.mxu2  ;;  %5807 = vst [vmem:[#allocation88_spill] sm:$0xff] %v4754_v13 }
 0x324   : > { %v1757_v35 = vld [vmem:[#allocation1] sm:$0xff] }
 0x325   : > { %3268 = vmatmul.msk.bf16.vlgmr.msra.gmra.mxu1 %vm867_vm4, %v1757_v35  ;;  %1758 = vst [vmem:[#allocation1] ss:$9 sm:$0xff] %v4079_v52 }
 0x326   : > { %1759 = vst [vmem:[#allocation1 + $0x1] ss:$9 sm:$0xff] %v4083_v55  ;;  %v1105_v2 = vpop.f32.mrf.mxu1 }
 0x327   : > { %1760 = vst [vmem:[#allocation1 + $0x2] ss:$9 sm:$0xff] %v4085_v56  ;;  %v4757_v55 = vpop.f32.mrf.mxu2 }
 0x328   : > { %1761 = vst [vmem:[#allocation1 + $0x3] ss:$9 sm:$0xff] %v4088_v57 }
 0x329   : > { %1762 = vst [vmem:[#allocation1 + $0x4] ss:$9 sm:$0xff] %v4092_v60  ;;  %v4761_v60 = vadd.f32 %v1105_v2, %v915_v53 }
 0x32a   : > { %1763 = vst [vmem:[#allocation1 + $0x5] ss:$9 sm:$0xff] %v4097_v62 }
 0x32b   : > { %1764 = vst [vmem:[#allocation1 + $0x6] ss:$9 sm:$0xff] %v4099_v63 }
 0x32c   : > { %1765 = vst [vmem:[#allocation1 + $0x7] ss:$9 sm:$0xff] %v5754_v58 }
 0x32e   : > { %v4769_v13 = vpop.f32.mrf.mxu1 }
 0x32f   : > { %5808 = vst [vmem:[#allocation89_spill] sm:$0xff] %v4769_v13  ;;  %v3393_v13 = vld [vmem:[#allocation7 + $0xb8] sm:$0xff] }
 0x330   : > { %2188 = vmatpush.bf16.msra.mxu2 %v3393_v13 }
 0x333   : > { %v1766_v35 = vld [vmem:[#allocation1] sm:$0xff] }
 0x334   : > { %1767 = vst [vmem:[#allocation1] ss:$9 sm:$0xff] %v4113_v15  ;;  %v4771_v15 = vpop.f32.mrf.mxu2 }
 0x335   : > { %3269 = vmatmul.msk.bf16.gmra.mxu1 %vm867_vm4, %v1766_v35  ;;  %1768 = vst [vmem:[#allocation1 + $0x1] ss:$9 sm:$0xff] %v4118_v22 }
 0x336   : > { %1769 = vst [vmem:[#allocation1 + $0x2] ss:$9 sm:$0xff] %v4122_v25  ;;  %v1110_v53 = vpop.f32.mrf.mxu1 }
 0x337   : > { %1770 = vst [vmem:[#allocation1 + $0x3] ss:$9 sm:$0xff] %v4124_v26 }
 0x338   : > { %1771 = vst [vmem:[#allocation1 + $0x4] ss:$9 sm:$0xff] %v4128_v27 }
 0x339   : > { %1772 = vst [vmem:[#allocation1 + $0x5] ss:$9 sm:$0xff] %v4131_v28  ;;  %v4779_v28 = vadd.f32 %v1110_v53, %v920_v11  ;;  %v1096_v53 = vadd.f32 %v4726_v6, %v4663_v59  ;;  %v930_v6 = vpop.f32.mrf.mxu3 }
 0x33a   : > { %1773 = vst [vmem:[#allocation1 + $0x6] ss:$9 sm:$0xff] %v5755_v30 }
 0x33b   : > { %1774 = vst [vmem:[#allocation1 + $0x7] ss:$9 sm:$0xff] %v4147_v45 }
 0x33c   : > { %5809 = vst [vmem:[#allocation90_spill] sm:$0xff] %v4771_v15  ;;  %v4775_v2 = vpop.f32.mrf.mxu2  ;;  %v3389_v15 = vld [vmem:[#allocation7 + $0x58] sm:$0xff] }
 0x33d   : > { %2372 = vmatpush.bf16.msra.mxu3 %v3389_v15 }
 0x342   : > { %v1775_v35 = vld [vmem:[#allocation1] sm:$0xff] }
 0x343   : > { %1776 = vst [vmem:[#allocation1] ss:$9 sm:$0xff] %v5756_v21  ;;  %v3397_v21 = vld [vmem:[#allocation7 + $0x118] sm:$0xff] }
 0x344   : > { %1777 = vst [vmem:[#allocation1 + $0x1] ss:$9 sm:$0xff] %v5757_v54  ;;  %2565 = vmatpush.bf16.msra.mxu0 %v3397_v21  ;;  %v4788_v11 = vpop.f32.mrf.mxu2 }
 0x345   : > { %3270 = vmatmul.msk.bf16.gmra.mxu1 %vm867_vm4, %v1775_v35  ;;  %1778 = vst [vmem:[#allocation1 + $0x2] ss:$9 sm:$0xff] %v5758_v48  ;;  %v4786_v35 = vpop.f32.mrf.mxu1 }
 0x346   : > { %1779 = vst [vmem:[#allocation1 + $0x3] ss:$9 sm:$0xff] %v5759_v9 }
 0x347   : > { %1780 = vst [vmem:[#allocation1 + $0x4] ss:$9 sm:$0xff] %v5760_v29 }
 0x348   : > { %1781 = vst [vmem:[#allocation1 + $0x5] ss:$9 sm:$0xff] %v4168_v0 }
 0x349   : > { %1782 = vst [vmem:[#allocation1 + $0x6] ss:$9 sm:$0xff] %v4171_v1 }
 0x34a   : > { %1783 = vst [vmem:[#allocation1 + $0x7] ss:$9 sm:$0xff] %v4184_v17 }
 0x34b   : > { %5810 = vst [vmem:[#allocation91_spill] sm:$0xff] %v4786_v35 }
 0x34c   : > { %5811 = vst [vmem:[#allocation92_spill] sm:$0xff] %v4788_v11  ;;  %v1294_v0 = vpop.f32.mrf.mxu2  ;;  %v895_v11 = vpop.f32.mrf.mxu0 }
 0x34d   : > { %v1115_v1 = vpop.f32.mrf.mxu1  ;;  %v4799_v15 = vadd.f32 %v1294_v0, %v1096_v53 }
 0x34e   : > { %v4797_v13 = vadd.f32 %v1115_v1, %v925_v33  ;;  %v1101_v33 = vadd.f32 %v4741_v32, %v4676_v36  ;;  %v4822_v32 = vpop.f32.mrf.mxu3  ;;  %v3392_v36 = vld [vmem:[#allocation7 + $0xb0] sm:$0xff] }
 0x34f   : > { %2189 = vmatpush.bf16.msra.mxu2 %v3392_v36 }
 0x351   : > { %v1784_v29 = vld [vmem:[#allocation1] sm:$0xff] }
 0x352   : > { %1785 = vst [vmem:[#allocation1] ss:$9 sm:$0xff] %v4186_v20 }
 0x353   : > { %1786 = vst [vmem:[#allocation1 + $0x1] ss:$9 sm:$0xff] %v4188_v23 }
 0x354   : > { %1787 = vst [vmem:[#allocation1 + $0x2] ss:$9 sm:$0xff] %v4190_v24  ;;  %v4807_v59 = vpop.f32.mrf.mxu2 }
 0x355   : > { %3271 = vmatmul.msk.bf16.gmra.mxu1 %vm867_vm4, %v1784_v29  ;;  %1788 = vst [vmem:[#allocation1 + $0x3] ss:$9 sm:$0xff] %v4197_v38  ;;  %v4805_v21 = vpop.f32.mrf.mxu1 }
 0x356   : > { %1789 = vst [vmem:[#allocation1 + $0x4] ss:$9 sm:$0xff] %v4201_v42 }
 0x357   : > { %1790 = vst [vmem:[#allocation1 + $0x5] ss:$9 sm:$0xff] %v4203_v43 }
 0x358   : > { %1791 = vst [vmem:[#allocation1 + $0x6] ss:$9 sm:$0xff] %v5719_v16 }
 0x359   : > { %1792 = vst [vmem:[#allocation1 + $0x7] ss:$9 sm:$0xff] %v5720_v61 }
 0x35a   : > { %5812 = vst [vmem:[#allocation93_spill] sm:$0xff] %v4807_v59  ;;  %v3388_v59 = vld [vmem:[#allocation7 + $0x50] sm:$0xff] }
 0x35b   : > { %2373 = vmatpush.bf16.msra.mxu3 %v3388_v59  ;;  %v5816_v59 = vld [vmem:[#allocation64_spill] sm:$0xff] }
 0x35c   : > { %v1299_v1 = vpop.f32.mrf.mxu2 }
 0x35d   : > { %v1120_v0 = vpop.f32.mrf.mxu1  ;;  %v4819_v35 = vadd.f32 %v1299_v1, %v1101_v33 }
 0x35e   : > { %v4817_v53 = vadd.f32 %v1120_v0, %v930_v6  ;;  %v935_v0 = vpop.f32.mrf.mxu3 }
 0x360   : > { %v1793_v29 = vld [vmem:[#allocation1] sm:$0xff] }
 0x361   : > { %1794 = vst [vmem:[#allocation1] ss:$9 sm:$0xff] %v5721_v50 }
 0x362   : > { %1795 = vst [vmem:[#allocation1 + $0x1] ss:$9 sm:$0xff] %v5722_v44 }
 0x363   : > { %1796 = vst [vmem:[#allocation1 + $0x2] ss:$9 sm:$0xff] %v5723_v8  ;;  %v3396_v8 = vld [vmem:[#allocation7 + $0x110] sm:$0xff] }
 0x364   : > { %1797 = vst [vmem:[#allocation1 + $0x3] ss:$9 sm:$0xff] %v5724_v5  ;;  %v1086_v5 = vadd.f32 %v4694_v46, %v895_v11  ;;  %2566 = vmatpush.bf16.msra.mxu0 %v3396_v8  ;;  %v4832_v33 = vpop.f32.mrf.mxu2  ;;  %v4846_v11 = vpop.f32.mrf.mxu0 }
 0x365   : > { %3272 = vmatmul.msk.bf16.gmra.mxu1 %vm867_vm4, %v1793_v29  ;;  %1798 = vst [vmem:[#allocation1 + $0x4] ss:$9 sm:$0xff] %v5792_v47  ;;  %v4830_v29 = vpop.f32.mrf.mxu1 }
 0x366   : > { %1799 = vst [vmem:[#allocation1 + $0x5] ss:$9 sm:$0xff] %v5793_v10  ;;  %v4828_v6 = vadd.f32 %v4757_v55, %v1086_v5  ;;  %v4849_v36 = vpop.f32.mrf.mxu3 }
 0x367   : > { %1800 = vst [vmem:[#allocation1 + $0x6] ss:$9 sm:$0xff] %v5795_v4 }
 0x368   : > { %1801 = vst [vmem:[#allocation1 + $0x7] ss:$9 sm:$0xff] %v5796_v51 }
 0x369   : > { %5813 = vst [vmem:[#allocation94_spill] sm:$0xff] %v4828_v6 }
 0x36a   : > { %5814 = vst [vmem:[#allocation95_spill] sm:$0xff] %v4832_v33  ;;  %v5818_v33 = vld [vmem:[#allocation65_spill] sm:$0xff] }
 0x36b   : > { %5815 = vst [vmem:[#allocation96_spill] sm:$0xff] %v4846_v11  ;;  %v5825_v11 = vld [vmem:[#allocation70_spill] sm:$0xff] }
 0x36c   : > { %v1304_v55 = vpop.f32.mrf.mxu2  ;;  %5817 = vst [vmem:[#allocation97_spill] sm:$0xff] %v4849_v36  ;;  %v5826_v36 = vld [vmem:[#allocation71_spill] sm:$0xff] }
 0x36d   : > { %v1125_v46 = vpop.f32.mrf.mxu1  ;;  %v4844_v8 = vadd.f32 %v1304_v55, %v4761_v60  ;;  %v5823_v60 = vld [vmem:[#allocation68_spill] sm:$0xff]  ;;  %v5824_v55 = vld [vmem:[#allocation69_spill] sm:$0xff] }
 0x36e   : > { %v4841_v5 = vadd.f32 %v1125_v46, %v935_v0  ;;  %v5822_v46 = vld [vmem:[#allocation67_spill] sm:$0xff] }
 0x36f   : > { %v1802_v1 = vld [vmem:[#allocation1] sm:$0xff] }
 0x370   : > { %1803 = vst [vmem:[#allocation1] ss:$9 sm:$0xff] %v5797_v3 }
 0x371   : > { %1804 = vst [vmem:[#allocation1 + $0x1] ss:$9 sm:$0xff] %v5798_v19 }
 0x372   : > { %1805 = vst [vmem:[#allocation1 + $0x2] ss:$9 sm:$0xff] %v5799_v18  ;;  %v5820_v18 = vld [vmem:[#allocation66_spill] sm:$0xff] }
 0x373   : > { %1806 = vst [vmem:[#allocation1 + $0x3] ss:$9 sm:$0xff] %v5800_v14 }
 0x374   : > { %1807 = vst [vmem:[#allocation1 + $0x4] ss:$9 sm:$0xff] %v5803_v12  ;;  %v4852_v6 = vpop.f32.mrf.mxu2  ;;  %v1688_v12 = vpop.f32.mrf.mxu0 }
 0x375   : > { %3273 = vmatmul.msk.bf16.gmra.mxu1 %vm867_vm4, %v1802_v1  ;;  %1808 = vst [vmem:[#allocation1 + $0x5] ss:$9 sm:$0xff] %v5804_v31  ;;  %v1504_v1 = vpop.f32.mrf.mxu3 }
 0x376   : > { %1809 = vst [vmem:[#allocation1 + $0x6] ss:$9 sm:$0xff] %v5816_v59  ;;  %v4855_v0 = vadd.f32 %v1688_v12, %v1504_v1  ;;  %v5829_v12 = vld [vmem:[#allocation48_spill] sm:$0xff] }
 0x377   : > { %1810 = vst [vmem:[#allocation1 + $0x7] ss:$9 sm:$0xff] %v5818_v33 }
 0x378   : > { %5819 = vst [vmem:[#allocation98_spill] sm:$0xff] %v4852_v6  ;;  %v5827_v6 = vld [vmem:[#allocation72_spill] sm:$0xff] }
 0x379   : > { %5821 = vst [vmem:[#allocation99_spill] sm:$0xff] %v4855_v0 }
 0x37c   : > { %v1309_v33 = vpop.f32.mrf.mxu2  ;;  %v4870_v0 = vpop.f32.mrf.mxu0 }
 0x37d   : > { %v4865_v59 = vadd.f32 %v1309_v33, %v4779_v28  ;;  %v4868_v1 = vpop.f32.mrf.mxu3  ;;  %5831 = vst [vmem:[#allocation102_spill] sm:$0xff] %v4870_v0  ;;  %v5836_v33 = vld [vmem:[#allocation82_spill] sm:$0xff]  ;;  %v5838_v0 = vld [vmem:[#allocation84_spill] sm:$0xff] }
 0x37e   : > { %v1811_v14 = vld [vmem:[#allocation1] sm:$0xff]  ;;  %5830 = vst [vmem:[#allocation101_spill] sm:$0xff] %v4868_v1 }
 0x37f   : > { %1812 = vst [vmem:[#allocation1] ss:$9 sm:$0xff] %v5820_v18 }
 0x380   : > { %1813 = vst [vmem:[#allocation1 + $0x1] ss:$9 sm:$0xff] %v5822_v46  ;;  %v5835_v46 = vld [vmem:[#allocation51_spill] sm:$0xff] }
 0x381   : > { %1814 = vst [vmem:[#allocation1 + $0x2] ss:$9 sm:$0xff] %v5823_v60 }
 0x382   : > { %1815 = vst [vmem:[#allocation1 + $0x3] ss:$9 sm:$0xff] %v5824_v55 }
 0x383   : > { %1816 = vst [vmem:[#allocation1 + $0x4] ss:$9 sm:$0xff] %v5825_v11  ;;  %v5833_v11 = vld [vmem:[#allocation49_spill] sm:$0xff] }
 0x384   : > { %1817 = vst [vmem:[#allocation1 + $0x5] ss:$9 sm:$0xff] %v5826_v36  ;;  %v4872_v60 = vpop.f32.mrf.mxu2  ;;  %v5834_v36 = vld [vmem:[#allocation50_spill] sm:$0xff]  ;;  %v1693_v28 = vpop.f32.mrf.mxu0 }
 0x385   : > { %3274 = vmatmul.msk.bf16.gmra.mxu1 %vm867_vm4, %v1811_v14  ;;  %1818 = vst [vmem:[#allocation1 + $0x6] ss:$9 sm:$0xff] %v5827_v6  ;;  %v3391_v14 = vld [vmem:[#allocation7 + $0xa8] sm:$0xff]  ;;  %v1509_v18 = vpop.f32.mrf.mxu3 }
 0x386   : > { %5828 = vst [vmem:[#allocation100_spill] sm:$0xff] %v4865_v59  ;;  %v3387_v6 = vld [vmem:[#allocation7 + $0x48] sm:$0xff]  ;;  %v5837_v59 = vld [vmem:[#allocation83_spill] sm:$0xff]  ;;  %2190 = vmatpush.bf16.msra.mxu2 %v3391_v14 }
 0x387   : > { %1819 = vst [vmem:[#allocation1 + $0x7] ss:$9 sm:$0xff] %v5829_v12  ;;  %v1694_v12 = vadd.f32 %v1693_v28, %v1509_v18  ;;  %2374 = vmatpush.bf16.msra.mxu3 %v3387_v6  ;;  %v1118_v6 = vadd.f32 %v4805_v21, %v4752_v7  ;;  %v5850_v21 = vld [vmem:[#allocation24_spill] sm:$0xff] }
 0x388   : > { %5832 = vst [vmem:[#allocation103_spill] sm:$0xff] %v4872_v60  ;;  %v5839_v60 = vld [vmem:[#allocation85_spill] sm:$0xff] }
 0x38c   : > { %v1314_v1 = vpop.f32.mrf.mxu2  ;;  %v1695_v28 = vpop.f32.mrf.mxu0 }
 0x38d   : > { %v1511_v18 = vpop.f32.mrf.mxu3 }
 0x38e   : > { %v1820_v55 = vld [vmem:[#allocation1] sm:$0xff] }
 0x38f   : > { %1821 = vst [vmem:[#allocation1] ss:$9 sm:$0xff] %v5833_v11  ;;  %v4886_v11 = vpop.f32.mrf.mxu1 }
 0x390   : > { %1822 = vst [vmem:[#allocation1 + $0x1] ss:$9 sm:$0xff] %v5834_v36  ;;  %v5840_v36 = vld [vmem:[#allocation86_spill] sm:$0xff] }
 0x391   : > { %1823 = vst [vmem:[#allocation1 + $0x2] ss:$9 sm:$0xff] %v5835_v46  ;;  %v4884_v46 = vadd.f32 %v1314_v1, %v4797_v13  ;;  %v5847_v13 = vld [vmem:[#allocation22_spill] sm:$0xff] }
 0x392   : > { %1824 = vst [vmem:[#allocation1 + $0x3] ss:$9 sm:$0xff] %v5836_v33  ;;  %v3395_v33 = vld [vmem:[#allocation7 + $0x108] sm:$0xff] }
 0x393   : > { %1825 = vst [vmem:[#allocation1 + $0x4] ss:$9 sm:$0xff] %v5837_v59  ;;  %2567 = vmatpush.bf16.msra.mxu0 %v3395_v33  ;;  %v5851_v33 = vld [vmem:[#allocation25_spill] sm:$0xff] }
 0x394   : > { %1826 = vst [vmem:[#allocation1 + $0x5] ss:$9 sm:$0xff] %v5838_v0  ;;  %v1316_v0 = vpop.f32.mrf.mxu2 }
 0x395   : > { %1827 = vst [vmem:[#allocation1 + $0x6] ss:$9 sm:$0xff] %v5839_v60  ;;  %3275 = vmatmul.msk.bf16.gmra.mxu1 %vm867_vm4, %v1820_v55  ;;  %v5843_v60 = vld [vmem:[#allocation19_spill] sm:$0xff]  ;;  %v4891_v59 = vadd.f32 %v1316_v0, %v1118_v6  ;;  %v5845_v55 = vld [vmem:[#allocation20_spill] sm:$0xff]  ;;  %v1514_v1 = vpop.f32.mrf.mxu3  ;;  %v5852_v0 = vld [vmem:[#allocation26_spill] sm:$0xff] }
 0x396   : > { %1828 = vst [vmem:[#allocation1 + $0x7] ss:$9 sm:$0xff] %v5840_v36  ;;  %v5846_v36 = vld [vmem:[#allocation21_spill] sm:$0xff] }
 0x397   : > { %5841 = vst [vmem:[#allocation104_spill] sm:$0xff] %v4884_v46  ;;  %v5848_v46 = vld [vmem:[#allocation23_spill] sm:$0xff] }
 0x398   : > { %5842 = vst [vmem:[#allocation105_spill] sm:$0xff] %v4886_v11  ;;  %v1698_v11 = vpop.f32.mrf.mxu0 }
 0x399   : > { %5844 = vst [vmem:[#allocation19_spill] sm:$0xff] %v4891_v59  ;;  %v4897_v31 = vadd.f32 %v1698_v11, %v1514_v1  ;;  %v1123_v11 = vadd.f32 %v4830_v29, %v4822_v32 }
 0x39c   : > { %v1319_v6 = vpop.f32.mrf.mxu2 }
 0x39d   : > { %v1829_v14 = vld [vmem:[#allocation1] sm:$0xff]  ;;  %v4906_v59 = vadd.f32 %v1319_v6, %v4817_v53  ;;  %v3390_v6 = vld [vmem:[#allocation7 + $0xa0] sm:$0xff] }
 0x39e   : > { %2054 = vst [vmem:[#allocation1] ss:$9 sm:$0xff] %v5843_v60  ;;  %2191 = vmatpush.bf16.msra.mxu2 %v3390_v6 }
 0x39f   : > { %2056 = vst [vmem:[#allocation1 + $0x1] ss:$9 sm:$0xff] %v5845_v55  ;;  %v5858_v55 = vld [vmem:[#allocation29_spill] sm:$0xff] }
 0x3a0   : > { %2058 = vst [vmem:[#allocation1 + $0x2] ss:$9 sm:$0xff] %v5846_v36  ;;  %v1700_v36 = vpop.f32.mrf.mxu0 }
 0x3a1   : > { %2060 = vst [vmem:[#allocation1 + $0x3] ss:$9 sm:$0xff] %v5847_v13  ;;  %v1516_v13 = vpop.f32.mrf.mxu3 }
 0x3a2   : > { %2062 = vst [vmem:[#allocation1 + $0x4] ss:$9 sm:$0xff] %v5848_v46  ;;  %v4899_v7 = vpop.f32.mrf.mxu1 }
 0x3a3   : > { %5849 = vst [vmem:[#allocation106_spill] sm:$0xff] %v4899_v7 }
 0x3a4   : > { %2064 = vst [vmem:[#allocation1 + $0x5] ss:$9 sm:$0xff] %v5850_v21  ;;  %v1321_v46 = vpop.f32.mrf.mxu2  ;;  %v5855_v21 = vld [vmem:[#allocation27_spill] sm:$0xff] }
 0x3a5   : > { %2066 = vst [vmem:[#allocation1 + $0x6] ss:$9 sm:$0xff] %v5851_v33  ;;  %3276 = vmatmul.msk.bf16.gmra.mxu1 %vm867_vm4, %v1829_v14  ;;  %v4913_v33 = vadd.f32 %v1321_v46, %v1123_v11 }
 0x3a6   : > { %2068 = vst [vmem:[#allocation1 + $0x7] ss:$9 sm:$0xff] %v5852_v0  ;;  %v5857_v0 = vld [vmem:[#allocation28_spill] sm:$0xff] }
 0x3a7   : > { %5853 = vst [vmem:[#allocation107_spill] sm:$0xff] %v4906_v59  ;;  %v3386_v59 = vld [vmem:[#allocation7 + $0x40] sm:$0xff] }
 0x3a8   : > { %5856 = vst [vmem:[#allocation27_spill] sm:$0xff] %v4913_v33  ;;  %v1703_v14 = vpop.f32.mrf.mxu0  ;;  %2375 = vmatpush.bf16.msra.mxu3 %v3386_v59  ;;  %v1696_v33 = vadd.f32 %v1695_v28, %v1511_v18 }
 0x3a9   : > { %v1519_v53 = vpop.f32.mrf.mxu3 }
 0x3aa   : > { %v4910_v1 = vpop.f32.mrf.mxu1  ;;  %v1704_v32 = vadd.f32 %v1703_v14, %v1519_v53  ;;  %v3394_v14 = vld [vmem:[#allocation7 + $0x100] sm:$0xff] }
 0x3ab   : > { %5854 = vst [vmem:[#allocation108_spill] sm:$0xff] %v4910_v1  ;;  %2568 = vmatpush.bf16.msra.mxu0 %v3394_v14 }
 0x3ac   : > { %v1324_v46 = vpop.f32.mrf.mxu2 }
 0x3ad   : > { %v2069_v7 = vld [vmem:[#allocation1] sm:$0xff]  ;;  %v4923_v11 = vadd.f32 %v1324_v46, %v4841_v5  ;;  %v1701_v46 = vadd.f32 %v1700_v36, %v1516_v13  ;;  %v5871_v36 = vld [vmem:[#allocation39_spill] sm:$0xff] }
 0x3ae   : > { %2070 = vst [vmem:[#allocation1] ss:$9 sm:$0xff] %v5855_v21  ;;  %3293 = vmatmul.msk.bf16.vlgmr.msra.gmra.mxu2 %vm867_vm4, %v2069_v7 }
 0x3af   : > { %2071 = vst [vmem:[#allocation1 + $0x1] ss:$9 sm:$0xff] %v5857_v0 }
 0x3b0   : > { %2072 = vst [vmem:[#allocation1 + $0x2] ss:$9 sm:$0xff] %v5858_v55  ;;  %v1705_v53 = vpop.f32.mrf.mxu0 }
 0x3b1   : > { %2073 = vst [vmem:[#allocation1 + $0x3] ss:$9 sm:$0xff] %v4048_v34  ;;  %v5862_v34 = vld [vmem:[#allocation54_spill] sm:$0xff] }
 0x3b2   : > { %2074 = vst [vmem:[#allocation1 + $0x4] ss:$9 sm:$0xff] %v4051_v37  ;;  %v1886_v29 = vpop.f32.mrf.mxu1  ;;  %v1521_v37 = vpop.f32.mrf.mxu3 }
 0x3b3   : > { %2075 = vst [vmem:[#allocation1 + $0x5] ss:$9 sm:$0xff] %v4058_v39  ;;  %v4926_v1 = vadd.f32 %v1886_v29, %v1694_v12  ;;  %v5861_v39 = vld [vmem:[#allocation37_spill] sm:$0xff]  ;;  %v5864_v12 = vld [vmem:[#allocation35_spill] sm:$0xff] }
 0x3b4   : > { %2076 = vst [vmem:[#allocation1 + $0x6] ss:$9 sm:$0xff] %v4060_v40  ;;  %v1091_v6 = vadd.f32 %v5862_v34, %v5861_v39 }
 0x3b5   : > { %2077 = vst [vmem:[#allocation1 + $0x7] ss:$9 sm:$0xff] %v4063_v41  ;;  %v5618_v41 = vrot.slane %v4926_v1, 1 }
 0x3b6   : > { %5859 = vst [vmem:[#allocation28_spill] sm:$0xff] %v4923_v11  ;;  %v1331_v18 = vadd.f32 %v4775_v2, %v1091_v6  ;;  %v5896_v11 = vld [vmem:[#allocation72_spill] sm:$0xff] }
 0x3b7   : > { %5860 = vst [vmem:[#allocation109_spill] sm:$0xff] %v4926_v1 }
 0x3b8   : > { %v1708_v7 = vpop.f32.mrf.mxu0 }
 0x3ba   : > { %v1888_v59 = vpop.f32.mrf.mxu1  ;;  %v1524_v28 = vpop.f32.mrf.mxu3 }
 0x3bb   : > { %v4931_v55 = vadd.f32 %v1888_v59, %v1696_v33  ;;  %v5866_v33 = vld [vmem:[#allocation36_spill] sm:$0xff]  ;;  %v1709_v29 = vadd.f32 %v1708_v7, %v1524_v28 }
 0x3bc   : > { %v2078_v40 = vld [vmem:[#allocation1] sm:$0xff] }
 0x3bd   : > { %5863 = vst [vmem:[#allocation37_spill] sm:$0xff] %v4931_v55  ;;  %v5615_v5 = vrot.slane %v4931_v55, 1 }
 0x3be   : > { %2079 = vst [vmem:[#allocation1] ss:$9 sm:$0xff] %v4074_v49  ;;  %3294 = vmatmul.msk.bf16.gmra.mxu2 %vm867_vm4, %v2078_v40 }
 0x3bf   : > { %2080 = vst [vmem:[#allocation1 + $0x1] ss:$9 sm:$0xff] %v4079_v52  ;;  %v1969_v34 = vsel %vm1962_vm5, %v5618_v41, %v5615_v5 }
 0x3c0   : > { %2081 = vst [vmem:[#allocation1 + $0x2] ss:$9 sm:$0xff] %v5864_v12  ;;  %v4945_v39 = vadd.f32 %v1969_v34, %v1331_v18  ;;  %v5869_v34 = vld [vmem:[#allocation38_spill] sm:$0xff]  ;;  %v1710_v41 = vpop.f32.mrf.mxu0 }
 0x3c1   : > { %2082 = vst [vmem:[#allocation1 + $0x3] ss:$9 sm:$0xff] %v4085_v56 }
 0x3c2   : > { %2083 = vst [vmem:[#allocation1 + $0x4] ss:$9 sm:$0xff] %v4088_v57  ;;  %v1891_v2 = vpop.f32.mrf.mxu1 }
 0x3c3   : > { %5865 = vst [vmem:[#allocation54_spill] sm:$0xff] %v4945_v39  ;;  %v4952_v14 = vadd.f32 %v1891_v2, %v4897_v31  ;;  %v1706_v2 = vadd.f32 %v1705_v53, %v1521_v37  ;;  %v5875_v37 = vld [vmem:[#allocation45_spill] sm:$0xff]  ;;  %v5876_v53 = vld [vmem:[#allocation46_spill] sm:$0xff]  ;;  %v5895_v39 = vld [vmem:[#allocation71_spill] sm:$0xff] }
 0x3c4   : > { %2084 = vst [vmem:[#allocation1 + $0x5] ss:$9 sm:$0xff] %v5866_v33 }
 0x3c5   : > { %2085 = vst [vmem:[#allocation1 + $0x6] ss:$9 sm:$0xff] %v4097_v62  ;;  %v5617_v28 = vrot.slane %v4952_v14, 1 }
 0x3c6   : > { %2086 = vst [vmem:[#allocation1 + $0x7] ss:$9 sm:$0xff] %v4099_v63 }
 0x3c7   : > { %5867 = vst [vmem:[#allocation35_spill] sm:$0xff] %v4952_v14 }
 0x3c8   : > { %v1713_v14 = vpop.f32.mrf.mxu0 }
 0x3ca   : > { %v1893_v59 = vpop.f32.mrf.mxu1 }
 0x3cb   : > { %v4955_v18 = vadd.f32 %v1893_v59, %v1701_v46 }
 0x3cd   : > { %v2087_v6 = vld [vmem:[#allocation1] sm:$0xff]  ;;  %5868 = vst [vmem:[#allocation36_spill] sm:$0xff] %v4955_v18  ;;  %v5616_v7 = vrot.slane %v4955_v18, 1 }
 0x3ce   : > { %2088 = vst [vmem:[#allocation1] ss:$9 sm:$0xff] %v5754_v58  ;;  %3295 = vmatmul.msk.bf16.gmra.mxu2 %vm867_vm4, %v2087_v6  ;;  %v5878_v6 = vld [vmem:[#allocation47_spill] sm:$0xff] }
 0x3cf   : > { %2089 = vst [vmem:[#allocation1 + $0x1] ss:$9 sm:$0xff] %v5869_v34  ;;  %v1973_v40 = vsel %vm1962_vm5, %v5617_v28, %v5616_v7  ;;  %v5873_v7 = vld [vmem:[#allocation41_spill] sm:$0xff] }
 0x3d0   : > { %2090 = vst [vmem:[#allocation1 + $0x2] ss:$9 sm:$0xff] %v4118_v22  ;;  %v4970_v31 = vadd.f32 %v1973_v40, %v4799_v15 }
 0x3d1   : > { %2091 = vst [vmem:[#allocation1 + $0x3] ss:$9 sm:$0xff] %v4122_v25 }
 0x3d2   : > { %2092 = vst [vmem:[#allocation1 + $0x4] ss:$9 sm:$0xff] %v4124_v26  ;;  %v1896_v13 = vpop.f32.mrf.mxu1 }
 0x3d3   : > { %2093 = vst [vmem:[#allocation1 + $0x5] ss:$9 sm:$0xff] %v4128_v27  ;;  %v4975_v59 = vadd.f32 %v1896_v13, %v1704_v32 }
 0x3d4   : > { %5870 = vst [vmem:[#allocation38_spill] sm:$0xff] %v4970_v31 }
 0x3d5   : > { %2094 = vst [vmem:[#allocation1 + $0x6] ss:$9 sm:$0xff] %v5871_v36  ;;  %v5624_v15 = vrot.slane %v4975_v59, 1 }
 0x3d6   : > { %2095 = vst [vmem:[#allocation1 + $0x7] ss:$9 sm:$0xff] %v5755_v30 }
 0x3d7   : > { %5872 = vst [vmem:[#allocation39_spill] sm:$0xff] %v4975_v59  ;;  %v5894_v59 = vld [vmem:[#allocation70_spill] sm:$0xff] }
 0x3da   : > { %v1898_v5 = vpop.f32.mrf.mxu1 }
 0x3db   : > { %v4979_v28 = vadd.f32 %v1898_v5, %v1706_v2  ;;  %v1526_v2 = vpop.f32.mrf.mxu3 }
 0x3dc   : > { %v1711_v18 = vadd.f32 %v1710_v41, %v1526_v2  ;;  %v5885_v2 = vld [vmem:[#allocation61_spill] sm:$0xff] }
 0x3dd   : > { %v2096_v46 = vld [vmem:[#allocation1] sm:$0xff]  ;;  %5874 = vst [vmem:[#allocation41_spill] sm:$0xff] %v4979_v28  ;;  %v5621_v40 = vrot.slane %v4979_v28, 1 }
 0x3de   : > { %2097 = vst [vmem:[#allocation1] ss:$9 sm:$0xff] %v4147_v45  ;;  %3296 = vmatmul.msk.bf16.gmra.mxu2 %vm867_vm4, %v2096_v46 }
 0x3df   : > { %2098 = vst [vmem:[#allocation1 + $0x1] ss:$9 sm:$0xff] %v5873_v7  ;;  %v1977_v32 = vsel %vm1962_vm5, %v5624_v15, %v5621_v40 }
 0x3e0   : > { %2099 = vst [vmem:[#allocation1 + $0x2] ss:$9 sm:$0xff] %v5757_v54  ;;  %v4994_v5 = vadd.f32 %v1977_v32, %v4819_v35 }
 0x3e1   : > { %2100 = vst [vmem:[#allocation1 + $0x3] ss:$9 sm:$0xff] %v5758_v48 }
 0x3e2   : > { %2101 = vst [vmem:[#allocation1 + $0x4] ss:$9 sm:$0xff] %v5759_v9  ;;  %v1901_v13 = vpop.f32.mrf.mxu1 }
 0x3e3   : > { %2102 = vst [vmem:[#allocation1 + $0x5] ss:$9 sm:$0xff] %v5875_v37  ;;  %v4999_v28 = vadd.f32 %v1901_v13, %v1709_v29  ;;  %v5883_v13 = vld [vmem:[#allocation53_spill] sm:$0xff]  ;;  %v1529_v55 = vpop.f32.mrf.mxu3 }
 0x3e4   : > { %2103 = vst [vmem:[#allocation1 + $0x6] ss:$9 sm:$0xff] %v5876_v53  ;;  %v1714_v1 = vadd.f32 %v1713_v14, %v1529_v55  ;;  %v5902_v55 = vld [vmem:[#allocation76_spill] sm:$0xff] }
 0x3e5   : > { %5877 = vst [vmem:[#allocation45_spill] sm:$0xff] %v4994_v5  ;;  %v5623_v32 = vrot.slane %v4999_v28, 1  ;;  %v5893_v5 = vld [vmem:[#allocation69_spill] sm:$0xff] }
 0x3e6   : > { %2104 = vst [vmem:[#allocation1 + $0x7] ss:$9 sm:$0xff] %v5878_v6 }
 0x3e7   : > { %5879 = vst [vmem:[#allocation46_spill] sm:$0xff] %v4999_v28  ;;  %v5892_v28 = vld [vmem:[#allocation68_spill] sm:$0xff] }
 0x3ea   : > { %v1903_v40 = vpop.f32.mrf.mxu1 }
 0x3eb   : > { %v5003_v35 = vadd.f32 %v1903_v40, %v1711_v18  ;;  %v5882_v40 = vld [vmem:[#allocation52_spill] sm:$0xff] }
 0x3ed   : > { %v2105_v31 = vld [vmem:[#allocation1] sm:$0xff]  ;;  %5880 = vst [vmem:[#allocation47_spill] sm:$0xff] %v5003_v35  ;;  %v5622_v41 = vrot.slane %v5003_v35, 1  ;;  %v5889_v35 = vld [vmem:[#allocation65_spill] sm:$0xff] }
 0x3ee   : > { %2106 = vst [vmem:[#allocation1] ss:$9 sm:$0xff] %v4184_v17  ;;  %3297 = vmatmul.msk.bf16.gmra.mxu2 %vm867_vm4, %v2105_v31  ;;  %v5884_v31 = vld [vmem:[#allocation60_spill] sm:$0xff] }
 0x3ef   : > { %2107 = vst [vmem:[#allocation1 + $0x1] ss:$9 sm:$0xff] %v4186_v20  ;;  %v1981_v29 = vsel %vm1962_vm5, %v5623_v32, %v5622_v41  ;;  %v5887_v41 = vld [vmem:[#allocation63_spill] sm:$0xff]  ;;  %v5888_v32 = vld [vmem:[#allocation64_spill] sm:$0xff] }
 0x3f0   : > { %2108 = vst [vmem:[#allocation1 + $0x2] ss:$9 sm:$0xff] %v4188_v23  ;;  %v5018_v18 = vadd.f32 %v1981_v29, %v4844_v8  ;;  %v5886_v29 = vld [vmem:[#allocation62_spill] sm:$0xff] }
 0x3f1   : > { %2109 = vst [vmem:[#allocation1 + $0x3] ss:$9 sm:$0xff] %v4190_v24 }
 0x3f2   : > { %2110 = vst [vmem:[#allocation1 + $0x4] ss:$9 sm:$0xff] %v4197_v38 }
 0x3f3   : > { %2111 = vst [vmem:[#allocation1 + $0x5] ss:$9 sm:$0xff] %v4201_v42 }
 0x3f4   : > { %2112 = vst [vmem:[#allocation1 + $0x6] ss:$9 sm:$0xff] %v4203_v43 }
 0x3f5   : > { %2113 = vst [vmem:[#allocation1 + $0x7] ss:$9 sm:$0xff] %v5719_v16 }
 0x3f6   : > { %5881 = vst [vmem:[#allocation110_spill] sm:$0xff] %v5018_v18  ;;  %v5891_v18 = vld [vmem:[#allocation67_spill] sm:$0xff] }
 0x3fc   : > { %v2114_v46 = vld [vmem:[#allocation1] sm:$0xff] }
 0x3fd   : > { %2115 = vst [vmem:[#allocation1] ss:$9 sm:$0xff] %v5720_v61 }
 0x3fe   : > { %2116 = vst [vmem:[#allocation1 + $0x1] ss:$9 sm:$0xff] %v5721_v50  ;;  %3298 = vmatmul.msk.bf16.gmra.mxu2 %vm867_vm4, %v2114_v46  ;;  %v5890_v46 = vld [vmem:[#allocation66_spill] sm:$0xff] }
 0x3ff   : > { %2117 = vst [vmem:[#allocation1 + $0x2] ss:$9 sm:$0xff] %v5722_v44 }
 0x400   : > { %2118 = vst [vmem:[#allocation1 + $0x3] ss:$9 sm:$0xff] %v5882_v40 }
 0x401   : > { %2119 = vst [vmem:[#allocation1 + $0x4] ss:$9 sm:$0xff] %v5883_v13 }
 0x402   : > { %2120 = vst [vmem:[#allocation1 + $0x5] ss:$9 sm:$0xff] %v5792_v47 }
 0x403   : > { %2121 = vst [vmem:[#allocation1 + $0x6] ss:$9 sm:$0xff] %v5793_v10 }
 0x404   : > { %2122 = vst [vmem:[#allocation1 + $0x7] ss:$9 sm:$0xff] %v5795_v4 }
 0x40b   : > { %v2123_v8 = vld [vmem:[#allocation1] sm:$0xff] }
 0x40c   : > { %2124 = vst [vmem:[#allocation1] ss:$9 sm:$0xff] %v5796_v51 }
 0x40d   : > { %2125 = vst [vmem:[#allocation1 + $0x1] ss:$9 sm:$0xff] %v5797_v3 }
 0x40e   : > { %2126 = vst [vmem:[#allocation1 + $0x2] ss:$9 sm:$0xff] %v5798_v19  ;;  %3299 = vmatmul.msk.bf16.gmra.mxu2 %vm867_vm4, %v2123_v8  ;;  %v1715_v8 = vpop.f32.mrf.mxu0 }
 0x40f   : > { %2127 = vst [vmem:[#allocation1 + $0x3] ss:$9 sm:$0xff] %v5884_v31 }
 0x410   : > { %2128 = vst [vmem:[#allocation1 + $0x4] ss:$9 sm:$0xff] %v5885_v2 }
 0x411   : > { %2129 = vst [vmem:[#allocation1 + $0x5] ss:$9 sm:$0xff] %v5886_v29 }
 0x412   : > { %2130 = vst [vmem:[#allocation1 + $0x6] ss:$9 sm:$0xff] %v5887_v41 }
 0x413   : > { %2131 = vst [vmem:[#allocation1 + $0x7] ss:$9 sm:$0xff] %v5888_v32  ;;  %v1906_v32 = vpop.f32.mrf.mxu1 }
 0x41a   : > { %v2132_v15 = vld [vmem:[#allocation1] sm:$0xff] }
 0x41b   : > { %2133 = vst [vmem:[#allocation1] ss:$9 sm:$0xff] %v5889_v35  ;;  %v1531_v35 = vpop.f32.mrf.mxu3  ;;  %v1908_v29 = vpop.f32.mrf.mxu1 }
 0x41c   : > { %2134 = vst [vmem:[#allocation1 + $0x1] ss:$9 sm:$0xff] %v5890_v46  ;;  %v5047_v46 = vadd.f32 %v1906_v32, %v1714_v1  ;;  %v5903_v1 = vld [vmem:[#allocation77_spill] sm:$0xff]  ;;  %v5908_v32 = vld [vmem:[#allocation80_spill] sm:$0xff] }
 0x41d   : > { %2135 = vst [vmem:[#allocation1 + $0x2] ss:$9 sm:$0xff] %v5891_v18  ;;  %v1716_v18 = vadd.f32 %v1715_v8, %v1531_v35  ;;  %v5904_v35 = vld [vmem:[#allocation78_spill] sm:$0xff]  ;;  %v5910_v8 = vld [vmem:[#allocation20_spill] sm:$0xff] }
 0x41e   : > { %2136 = vst [vmem:[#allocation1 + $0x3] ss:$9 sm:$0xff] %v5892_v28  ;;  %v5898_v28 = vld [vmem:[#allocation73_spill] sm:$0xff]  ;;  %3300 = vmatmul.msk.bf16.gmra.mxu2 %vm867_vm4, %v2132_v15  ;;  %v5632_v14 = vrot.slane %v5047_v46, 1  ;;  %v5906_v15 = vld [vmem:[#allocation100_spill] sm:$0xff] }
 0x41f   : > { %2137 = vst [vmem:[#allocation1 + $0x4] ss:$9 sm:$0xff] %v5893_v5  ;;  %v5899_v5 = vld [vmem:[#allocation74_spill] sm:$0xff] }
 0x420   : > { %2138 = vst [vmem:[#allocation1 + $0x5] ss:$9 sm:$0xff] %v5894_v59  ;;  %v5051_v59 = vadd.f32 %v1908_v29, %v1716_v18  ;;  %v5909_v29 = vld [vmem:[#allocation81_spill] sm:$0xff] }
 0x421   : > { %2139 = vst [vmem:[#allocation1 + $0x6] ss:$9 sm:$0xff] %v5895_v39  ;;  %v5901_v39 = vld [vmem:[#allocation75_spill] sm:$0xff] }
 0x422   : > { %2140 = vst [vmem:[#allocation1 + $0x7] ss:$9 sm:$0xff] %v5896_v11  ;;  %v5631_v11 = vrot.slane %v5051_v59, 1 }
 0x423   : > { %5897 = vst [vmem:[#allocation52_spill] sm:$0xff] %v5047_v46 }
 0x424   : > { %5900 = vst [vmem:[#allocation53_spill] sm:$0xff] %v5051_v59 }
 0x429   : > { %v2141_v41 = vld [vmem:[#allocation1] sm:$0xff] }
 0x42a   : > { %2238 = vst [vmem:[#allocation1] ss:$9 sm:$0xff] %v5898_v28  ;;  %v1985_v28 = vsel %vm1962_vm5, %v5632_v14, %v5631_v11 }
 0x42b   : > { %2240 = vst [vmem:[#allocation1 + $0x1] ss:$9 sm:$0xff] %v5899_v5  ;;  %v5905_v5 = vld [vmem:[#allocation79_spill] sm:$0xff] }
 0x42c   : > { %2242 = vst [vmem:[#allocation1 + $0x2] ss:$9 sm:$0xff] %v5901_v39  ;;  %v5067_v39 = vadd.f32 %v1985_v28, %v5906_v15  ;;  %v5914_v28 = vld [vmem:[#allocation24_spill] sm:$0xff] }
 0x42d   : > { %2244 = vst [vmem:[#allocation1 + $0x3] ss:$9 sm:$0xff] %v5902_v55  ;;  %v5911_v55 = vld [vmem:[#allocation21_spill] sm:$0xff] }
 0x42e   : > { %2246 = vst [vmem:[#allocation1 + $0x4] ss:$9 sm:$0xff] %v5903_v1  ;;  %3301 = vmatmul.msk.bf16.gmra.mxu2 %vm867_vm4, %v2141_v41  ;;  %v5912_v1 = vld [vmem:[#allocation22_spill] sm:$0xff] }
 0x42f   : > { %2248 = vst [vmem:[#allocation1 + $0x5] ss:$9 sm:$0xff] %v5904_v35  ;;  %v5913_v35 = vld [vmem:[#allocation23_spill] sm:$0xff]  ;;  %v5918_v41 = vld [vmem:[#allocation30_spill] sm:$0xff] }
 0x430   : > { %2250 = vst [vmem:[#allocation1 + $0x6] ss:$9 sm:$0xff] %v5905_v5  ;;  %v5915_v5 = vld [vmem:[#allocation25_spill] sm:$0xff] }
 0x431   : > { %5907 = vst [vmem:[#allocation60_spill] sm:$0xff] %v5067_v39 }
 0x432   : > { %2252 = vst [vmem:[#allocation1 + $0x7] ss:$9 sm:$0xff] %v5908_v32  ;;  %v5916_v32 = vld [vmem:[#allocation26_spill] sm:$0xff] }
 0x439   : > { %v2253_v18 = vld [vmem:[#allocation1] sm:$0xff] }
 0x43a   : > { %3318 = vmatmul.msk.bf16.vlgmr.msra.gmra.mxu3 %vm867_vm4, %v2253_v18  ;;  %2254 = vst [vmem:[#allocation1] ss:$9 sm:$0xff] %v5909_v29  ;;  %v5919_v18 = vld [vmem:[#allocation31_spill] sm:$0xff]  ;;  %v5920_v29 = vld [vmem:[#allocation32_spill] sm:$0xff] }
 0x43b   : > { %2255 = vst [vmem:[#allocation1 + $0x1] ss:$9 sm:$0xff] %v5843_v60  ;;  %v5917_v60 = vld [vmem:[#allocation29_spill] sm:$0xff] }
 0x43c   : > { %2256 = vst [vmem:[#allocation1 + $0x2] ss:$9 sm:$0xff] %v5910_v8  ;;  %v5921_v8 = vld [vmem:[#allocation33_spill] sm:$0xff] }
 0x43d   : > { %2257 = vst [vmem:[#allocation1 + $0x3] ss:$9 sm:$0xff] %v5911_v55 }
 0x43e   : > { %2258 = vst [vmem:[#allocation1 + $0x4] ss:$9 sm:$0xff] %v5912_v1  ;;  %v5922_v1 = vld [vmem:[#allocation34_spill] sm:$0xff] }
 0x43f   : > { %2259 = vst [vmem:[#allocation1 + $0x5] ss:$9 sm:$0xff] %v5913_v35 }
 0x440   : > { %2260 = vst [vmem:[#allocation1 + $0x6] ss:$9 sm:$0xff] %v5914_v28 }
 0x441   : > { %2261 = vst [vmem:[#allocation1 + $0x7] ss:$9 sm:$0xff] %v5915_v5 }
 0x448   : > { %v2262_v15 = vld [vmem:[#allocation1] sm:$0xff] }
 0x449   : > { %2263 = vst [vmem:[#allocation1] ss:$9 sm:$0xff] %v5916_v32  ;;  %v1534_v32 = vpop.f32.mrf.mxu3 }
 0x44a   : > { %2264 = vst [vmem:[#allocation1 + $0x1] ss:$9 sm:$0xff] %v5855_v21  ;;  %3319 = vmatmul.msk.bf16.gmra.mxu3 %vm867_vm4, %v2262_v15 }
 0x44b   : > { %2265 = vst [vmem:[#allocation1 + $0x2] ss:$9 sm:$0xff] %v5857_v0 }
 0x44c   : > { %2266 = vst [vmem:[#allocation1 + $0x3] ss:$9 sm:$0xff] %v5917_v60 }
 0x44d   : > { %2267 = vst [vmem:[#allocation1 + $0x4] ss:$9 sm:$0xff] %v5918_v41 }
 0x44e   : > { %2268 = vst [vmem:[#allocation1 + $0x5] ss:$9 sm:$0xff] %v5919_v18 }
 0x44f   : > { %2269 = vst [vmem:[#allocation1 + $0x6] ss:$9 sm:$0xff] %v5920_v29 }
 0x450   : > { %2270 = vst [vmem:[#allocation1 + $0x7] ss:$9 sm:$0xff] %v5921_v8 }
 0x451   : > { %v1536_v11 = vpop.f32.mrf.mxu3 }
 0x457   : > { %v2271_v55 = vld [vmem:[#allocation1] sm:$0xff] }
 0x458   : > { %2272 = vst [vmem:[#allocation1] ss:$9 sm:$0xff] %v5922_v1 }
 0x459   : > { %2273 = vst [vmem:[#allocation1 + $0x1] ss:$9 sm:$0xff] %v4074_v49 }
 0x45a   : > { %2274 = vst [vmem:[#allocation1 + $0x2] ss:$9 sm:$0xff] %v4079_v52  ;;  %3320 = vmatmul.msk.bf16.gmra.mxu3 %vm867_vm4, %v2271_v55  ;;  %v1718_v55 = vpop.f32.mrf.mxu0 }
 0x45b   : > { %2275 = vst [vmem:[#allocation1 + $0x3] ss:$9 sm:$0xff] %v5864_v12 }
 0x45c   : > { %2276 = vst [vmem:[#allocation1 + $0x4] ss:$9 sm:$0xff] %v4085_v56 }
 0x45d   : > { %2277 = vst [vmem:[#allocation1 + $0x5] ss:$9 sm:$0xff] %v4088_v57 }
 0x45e   : > { %2278 = vst [vmem:[#allocation1 + $0x6] ss:$9 sm:$0xff] %v5866_v33 }
 0x45f   : > { %2279 = vst [vmem:[#allocation1 + $0x7] ss:$9 sm:$0xff] %v4097_v62 }
 0x462   : > { %v1720_v14 = vpop.f32.mrf.mxu0 }
 0x463   : > { %v1721_v39 = vadd.f32 %v1720_v14, %v1536_v11  ;;  %v1539_v11 = vpop.f32.mrf.mxu3 }
 0x466   : > { %v2280_v21 = vld [vmem:[#allocation1] sm:$0xff] }
 0x467   : > { %2281 = vst [vmem:[#allocation1] ss:$9 sm:$0xff] %v4099_v63 }
 0x468   : > { %2282 = vst [vmem:[#allocation1 + $0x1] ss:$9 sm:$0xff] %v5754_v58 }
 0x469   : > { %2283 = vst [vmem:[#allocation1 + $0x2] ss:$9 sm:$0xff] %v5869_v34 }
 0x46a   : > { %2284 = vst [vmem:[#allocation1 + $0x3] ss:$9 sm:$0xff] %v4118_v22  ;;  %3321 = vmatmul.msk.bf16.gmra.mxu3 %vm867_vm4, %v2280_v21  ;;  %v1719_v21 = vadd.f32 %v1718_v55, %v1534_v32  ;;  %v1723_v14 = vpop.f32.mrf.mxu0 }
 0x46b   : > { %2285 = vst [vmem:[#allocation1 + $0x4] ss:$9 sm:$0xff] %v4122_v25 }
 0x46c   : > { %2286 = vst [vmem:[#allocation1 + $0x5] ss:$9 sm:$0xff] %v4124_v26 }
 0x46d   : > { %2287 = vst [vmem:[#allocation1 + $0x6] ss:$9 sm:$0xff] %v4128_v27 }
 0x46e   : > { %2288 = vst [vmem:[#allocation1 + $0x7] ss:$9 sm:$0xff] %v5871_v36 }
 0x475   : > { %v2289_v35 = vld [vmem:[#allocation1] sm:$0xff] }
 0x476   : > { %2290 = vst [vmem:[#allocation1] ss:$9 sm:$0xff] %v5755_v30 }
 0x477   : > { %2291 = vst [vmem:[#allocation1 + $0x1] ss:$9 sm:$0xff] %v4147_v45 }
 0x478   : > { %2292 = vst [vmem:[#allocation1 + $0x2] ss:$9 sm:$0xff] %v5873_v7 }
 0x479   : > { %2293 = vst [vmem:[#allocation1 + $0x3] ss:$9 sm:$0xff] %v5757_v54 }
 0x47a   : > { %2294 = vst [vmem:[#allocation1 + $0x4] ss:$9 sm:$0xff] %v5758_v48  ;;  %3322 = vmatmul.msk.bf16.gmra.mxu3 %vm867_vm4, %v2289_v35  ;;  %v1911_v35 = vpop.f32.mrf.mxu1 }
 0x47b   : > { %2295 = vst [vmem:[#allocation1 + $0x5] ss:$9 sm:$0xff] %v5759_v9  ;;  %v5143_v59 = vadd.f32 %v1911_v35, %v1719_v21  ;;  %v5926_v35 = vld [vmem:[#allocation19_spill] sm:$0xff] }
 0x47c   : > { %2296 = vst [vmem:[#allocation1 + $0x6] ss:$9 sm:$0xff] %v5875_v37 }
 0x47d   : > { %2297 = vst [vmem:[#allocation1 + $0x7] ss:$9 sm:$0xff] %v5876_v53 }
 0x482   : > { %v1913_v46 = vpop.f32.mrf.mxu1 }
 0x483   : > { %v1939_v32 = vadd.f32 %v1913_v46, %v1721_v39  ;;  %v1724_v46 = vadd.f32 %v1723_v14, %v1539_v11 }
 0x484   : > { %v2298_v28 = vld [vmem:[#allocation1] sm:$0xff] }
 0x485   : > { %2299 = vst [vmem:[#allocation1] ss:$9 sm:$0xff] %v5878_v6 }
 0x486   : > { %2300 = vst [vmem:[#allocation1 + $0x1] ss:$9 sm:$0xff] %v4184_v17 }
 0x487   : > { %2301 = vst [vmem:[#allocation1 + $0x2] ss:$9 sm:$0xff] %v4186_v20 }
 0x488   : > { %2302 = vst [vmem:[#allocation1 + $0x3] ss:$9 sm:$0xff] %v4188_v23 }
 0x489   : > { %2303 = vst [vmem:[#allocation1 + $0x4] ss:$9 sm:$0xff] %v4190_v24 }
 0x48a   : > { %2304 = vst [vmem:[#allocation1 + $0x5] ss:$9 sm:$0xff] %v4197_v38  ;;  %3323 = vmatmul.msk.bf16.gmra.mxu3 %vm867_vm4, %v2298_v28  ;;  %v5923_v28 = vld [vmem:[#allocation62_spill] sm:$0xff]  ;;  %v1916_v39 = vpop.f32.mrf.mxu1 }
 0x48b   : > { %2305 = vst [vmem:[#allocation1 + $0x6] ss:$9 sm:$0xff] %v4201_v42 }
 0x48c   : > { %2306 = vst [vmem:[#allocation1 + $0x7] ss:$9 sm:$0xff] %v4203_v43 }
 0x493   : > { %v2307_v5 = vld [vmem:[#allocation1] sm:$0xff] }
 0x494   : > { %2308 = vst [vmem:[#allocation1] ss:$9 sm:$0xff] %v5719_v16 }
 0x495   : > { %2309 = vst [vmem:[#allocation1 + $0x1] ss:$9 sm:$0xff] %v5720_v61 }
 0x496   : > { %2310 = vst [vmem:[#allocation1 + $0x2] ss:$9 sm:$0xff] %v5721_v50 }
 0x497   : > { %2311 = vst [vmem:[#allocation1 + $0x3] ss:$9 sm:$0xff] %v5722_v44 }
 0x498   : > { %2312 = vst [vmem:[#allocation1 + $0x4] ss:$9 sm:$0xff] %v5882_v40 }
 0x499   : > { %2313 = vst [vmem:[#allocation1 + $0x5] ss:$9 sm:$0xff] %v5883_v13 }
 0x49a   : > { %2314 = vst [vmem:[#allocation1 + $0x6] ss:$9 sm:$0xff] %v5792_v47  ;;  %3324 = vmatmul.msk.bf16.gmra.mxu3 %vm867_vm4, %v2307_v5  ;;  %v5924_v5 = vld [vmem:[#allocation63_spill] sm:$0xff] }
 0x49b   : > { %2315 = vst [vmem:[#allocation1 + $0x7] ss:$9 sm:$0xff] %v5793_v10 }
 0x4a2   : > { %v2316_v15 = vld [vmem:[#allocation1] sm:$0xff] }
 0x4a3   : > { %2317 = vst [vmem:[#allocation1] ss:$9 sm:$0xff] %v5795_v4 }
 0x4a4   : > { %2318 = vst [vmem:[#allocation1 + $0x1] ss:$9 sm:$0xff] %v5796_v51 }
 0x4a5   : > { %2319 = vst [vmem:[#allocation1 + $0x2] ss:$9 sm:$0xff] %v5797_v3  ;;  %v1988_v3 = vrot.slane %v1939_v32, 1  ;;  %v1725_v32 = vpop.f32.mrf.mxu0 }
 0x4a6   : > { %2320 = vst [vmem:[#allocation1 + $0x3] ss:$9 sm:$0xff] %v5798_v19  ;;  %v1986_v19 = vrot.slane %v5143_v59, 1 }
 0x4a7   : > { %2321 = vst [vmem:[#allocation1 + $0x4] ss:$9 sm:$0xff] %v5884_v31 }
 0x4a8   : > { %2322 = vst [vmem:[#allocation1 + $0x5] ss:$9 sm:$0xff] %v5885_v2 }
 0x4a9   : > { %2323 = vst [vmem:[#allocation1 + $0x6] ss:$9 sm:$0xff] %v5923_v28 }
 0x4aa   : > { %2324 = vst [vmem:[#allocation1 + $0x7] ss:$9 sm:$0xff] %v5924_v5  ;;  %3325 = vmatmul.msk.bf16.gmra.mxu3 %vm867_vm4, %v2316_v15  ;;  %v1989_v5 = vsel %vm1962_vm5, %v1986_v19, %v1988_v3  ;;  %v5925_v15 = vld [vmem:[#allocation104_spill] sm:$0xff] }
 0x4ab   : > { %v5153_v21 = vadd.f32 %v1989_v5, %v5925_v15 }
 0x4b1   : > { %v2325_v55 = vld [vmem:[#allocation1] sm:$0xff] }
 0x4b2   : > { %2431 = vst [vmem:[#allocation1] ss:$9 sm:$0xff] %v5857_v0  ;;  %v1940_v0 = vadd.f32 %v1916_v39, %v1724_v46  ;;  %v1728_v46 = vpop.f32.mrf.mxu0 }
 0x4b3   : > { %2433 = vst [vmem:[#allocation1 + $0x1] ss:$9 sm:$0xff] %v5917_v60 }
 0x4b4   : > { %2435 = vst [vmem:[#allocation1 + $0x2] ss:$9 sm:$0xff] %v5918_v41  ;;  %v1990_v60 = vrot.slane %v1940_v0, 1 }
 0x4b5   : > { %2437 = vst [vmem:[#allocation1 + $0x3] ss:$9 sm:$0xff] %v5919_v18  ;;  %v1541_v18 = vpop.f32.mrf.mxu3 }
 0x4b6   : > { %2439 = vst [vmem:[#allocation1 + $0x4] ss:$9 sm:$0xff] %v5920_v29  ;;  %v1991_v41 = vsel %vm1962_vm5, %v1988_v3, %v1990_v60  ;;  %v1726_v15 = vadd.f32 %v1725_v32, %v1541_v18  ;;  %v1918_v29 = vpop.f32.mrf.mxu1  ;;  %v5927_v3 = vld [vmem:[#allocation107_spill] sm:$0xff] }
 0x4b7   : > { %2441 = vst [vmem:[#allocation1 + $0x5] ss:$9 sm:$0xff] %v5921_v8  ;;  %v5163_v5 = vadd.f32 %v1991_v41, %v5926_v35 }
 0x4b8   : > { %2443 = vst [vmem:[#allocation1 + $0x6] ss:$9 sm:$0xff] %v5922_v1  ;;  %v1941_v11 = vadd.f32 %v1918_v29, %v1726_v15 }
 0x4b9   : > { %2445 = vst [vmem:[#allocation1 + $0x7] ss:$9 sm:$0xff] %v4074_v49 }
 0x4ba   : > { %3326 = vmatmul.msk.bf16.gmra.mxu3 %vm867_vm4, %v2325_v55  ;;  %v1992_v8 = vrot.slane %v1941_v11, 1  ;;  %v1730_v35 = vpop.f32.mrf.mxu0 }
 0x4bc   : > { %v1993_v49 = vsel %vm1962_vm5, %v1990_v60, %v1992_v8 }
 0x4bd   : > { %v5172_v1 = vadd.f32 %v1993_v49, %v5927_v3  ;;  %v1544_v55 = vpop.f32.mrf.mxu3 }
 0x4be   : > { %v1729_v39 = vadd.f32 %v1728_v46, %v1544_v55  ;;  %v5953_v46 = vld [vmem:[#allocation99_spill] sm:$0xff] }
 0x4c0   : > { %v2446_v14 = vld [vmem:[#allocation1] sm:$0xff] }
 0x4c1   : > { %3343 = vmatmul.msk.bf16.vlgmr.msra.gmra.mxu0 %vm867_vm4, %v2446_v14  ;;  %2447 = vst [vmem:[#allocation1] ss:$9 sm:$0xff] %v4079_v52  ;;  %v1921_v52 = vpop.f32.mrf.mxu1  ;;  %v5951_v14 = vld [vmem:[#allocation101_spill] sm:$0xff] }
 0x4c2   : > { %2448 = vst [vmem:[#allocation1 + $0x1] ss:$9 sm:$0xff] %v5864_v12  ;;  %v1942_v12 = vadd.f32 %v1921_v52, %v1729_v39  ;;  %v5954_v39 = vld [vmem:[#allocation106_spill] sm:$0xff] }
 0x4c3   : > { %2449 = vst [vmem:[#allocation1 + $0x2] ss:$9 sm:$0xff] %v4085_v56  ;;  %v5260_v52 = vadd.f32 %v5954_v39, %v5953_v46 }
 0x4c4   : > { %2450 = vst [vmem:[#allocation1 + $0x3] ss:$9 sm:$0xff] %v4088_v57  ;;  %v1994_v56 = vrot.slane %v1942_v12, 1  ;;  %v5928_v57 = vld [vmem:[#allocation27_spill] sm:$0xff]  ;;  %v5955_v12 = vld [vmem:[#allocation108_spill] sm:$0xff] }
 0x4c5   : > { %2451 = vst [vmem:[#allocation1 + $0x4] ss:$9 sm:$0xff] %v5866_v33  ;;  %v1546_v41 = vpop.f32.mrf.mxu3 }
 0x4c6   : > { %2452 = vst [vmem:[#allocation1 + $0x5] ss:$9 sm:$0xff] %v4097_v62  ;;  %v1995_v0 = vsel %vm1962_vm5, %v1992_v8, %v1994_v56  ;;  %v1731_v18 = vadd.f32 %v1730_v35, %v1546_v41  ;;  %v5952_v8 = vld [vmem:[#allocation102_spill] sm:$0xff]  ;;  %v1963_v35 = vrot.slane %v5260_v52, 1 }
 0x4c7   : > { %2453 = vst [vmem:[#allocation1 + $0x6] ss:$9 sm:$0xff] %v4099_v63  ;;  %v5180_v60 = vadd.f32 %v1995_v0, %v5928_v57  ;;  %v1691_v49 = vadd.f32 %v5952_v8, %v5951_v14 }
 0x4c8   : > { %2454 = vst [vmem:[#allocation1 + $0x7] ss:$9 sm:$0xff] %v5754_v58  ;;  %v5929_v58 = vld [vmem:[#allocation28_spill] sm:$0xff] }
 0x4c9   : > { %v1923_v32 = vpop.f32.mrf.mxu1 }
 0x4ca   : > { %v5182_v15 = vadd.f32 %v1923_v32, %v1731_v18 }
 0x4cc   : > { %v1996_v62 = vrot.slane %v5182_v15, 1 }
 0x4ce   : > { %v1997_v63 = vsel %vm1962_vm5, %v1994_v56, %v1996_v62  ;;  %v1927_v56 = vadd.f32 %v5955_v12, %v1691_v49 }
 0x4cf   : > { %v2455_v33 = vld [vmem:[#allocation1] sm:$0xff]  ;;  %v5195_v29 = vadd.f32 %v1997_v63, %v5929_v58 }
 0x4d0   : > { %2456 = vst [vmem:[#allocation1] ss:$9 sm:$0xff] %v5869_v34  ;;  %v5943_v34 = vld [vmem:[#allocation49_spill] sm:$0xff]  ;;  %v1964_v18 = vrot.slane %v1927_v56, 1 }
 0x4d1   : > { %3344 = vmatmul.msk.bf16.gmra.mxu0 %vm867_vm4, %v2455_v33  ;;  %2457 = vst [vmem:[#allocation1 + $0x1] ss:$9 sm:$0xff] %v4118_v22 }
 0x4d2   : > { %2458 = vst [vmem:[#allocation1 + $0x2] ss:$9 sm:$0xff] %v4122_v25  ;;  %v1965_v58 = vsel %vm1962_vm5, %v1963_v35, %v1964_v18 }
 0x4d3   : > { %2459 = vst [vmem:[#allocation1 + $0x3] ss:$9 sm:$0xff] %v4124_v26 }
 0x4d4   : > { %2460 = vst [vmem:[#allocation1 + $0x4] ss:$9 sm:$0xff] %v4128_v27 }
 0x4d5   : > { %2461 = vst [vmem:[#allocation1 + $0x5] ss:$9 sm:$0xff] %v5871_v36 }
 0x4d6   : > { %2462 = vst [vmem:[#allocation1 + $0x6] ss:$9 sm:$0xff] %v5755_v30  ;;  %v5940_v30 = vld [vmem:[#allocation71_spill] sm:$0xff] }
 0x4d7   : > { %2463 = vst [vmem:[#allocation1 + $0x7] ss:$9 sm:$0xff] %v4147_v45  ;;  %v5930_v45 = vld [vmem:[#allocation58_spill] sm:$0xff] }
 0x4de   : > { %v2464_v22 = vld [vmem:[#allocation1] sm:$0xff] }
 0x4df   : > { %2465 = vst [vmem:[#allocation1] ss:$9 sm:$0xff] %v5873_v7  ;;  %v5944_v7 = vld [vmem:[#allocation50_spill] sm:$0xff] }
 0x4e0   : > { %2466 = vst [vmem:[#allocation1 + $0x1] ss:$9 sm:$0xff] %v5757_v54  ;;  %v5941_v54 = vld [vmem:[#allocation72_spill] sm:$0xff] }
 0x4e1   : > { %3345 = vmatmul.msk.bf16.gmra.mxu0 %vm867_vm4, %v2464_v22  ;;  %2467 = vst [vmem:[#allocation1 + $0x2] ss:$9 sm:$0xff] %v5758_v48 }
 0x4e2   : > { %2468 = vst [vmem:[#allocation1 + $0x3] ss:$9 sm:$0xff] %v5759_v9  ;;  %v5942_v9 = vld [vmem:[#allocation48_spill] sm:$0xff] }
 0x4e3   : > { %2469 = vst [vmem:[#allocation1 + $0x4] ss:$9 sm:$0xff] %v5875_v37  ;;  %v5945_v37 = vld [vmem:[#allocation51_spill] sm:$0xff] }
 0x4e4   : > { %2470 = vst [vmem:[#allocation1 + $0x5] ss:$9 sm:$0xff] %v5876_v53 }
 0x4e5   : > { %2471 = vst [vmem:[#allocation1 + $0x6] ss:$9 sm:$0xff] %v5878_v6  ;;  %v5946_v6 = vld [vmem:[#allocation82_spill] sm:$0xff] }
 0x4e6   : > { %2472 = vst [vmem:[#allocation1 + $0x7] ss:$9 sm:$0xff] %v4184_v17  ;;  %v5931_v17 = vld [vmem:[#allocation59_spill] sm:$0xff] }
 0x4ed   : > { %v2473_v25 = vld [vmem:[#allocation1] sm:$0xff] }
 0x4ee   : > { %2474 = vst [vmem:[#allocation1] ss:$9 sm:$0xff] %v4186_v20  ;;  %v5230_v20 = vpop.f32.mrf.mxu2 }
 0x4ef   : > { %2475 = vst [vmem:[#allocation1 + $0x1] ss:$9 sm:$0xff] %v4188_v23  ;;  %v5932_v23 = vld [vmem:[#allocation63_spill] sm:$0xff] }
 0x4f0   : > { %2476 = vst [vmem:[#allocation1 + $0x2] ss:$9 sm:$0xff] %v4190_v24  ;;  %v5933_v24 = vld [vmem:[#allocation64_spill] sm:$0xff] }
 0x4f1   : > { %3346 = vmatmul.msk.bf16.gmra.mxu0 %vm867_vm4, %v2473_v25  ;;  %2477 = vst [vmem:[#allocation1 + $0x3] ss:$9 sm:$0xff] %v4197_v38  ;;  %v5934_v38 = vld [vmem:[#allocation65_spill] sm:$0xff] }
 0x4f2   : > { %2478 = vst [vmem:[#allocation1 + $0x4] ss:$9 sm:$0xff] %v4201_v42 }
 0x4f3   : > { %2479 = vst [vmem:[#allocation1 + $0x5] ss:$9 sm:$0xff] %v4203_v43  ;;  %v2377_v43 = vpop.f32.mrf.mxu3 }
 0x4f4   : > { %2480 = vst [vmem:[#allocation1 + $0x6] ss:$9 sm:$0xff] %v5719_v16  ;;  %v5935_v16 = vld [vmem:[#allocation66_spill] sm:$0xff] }
 0x4f5   : > { %2481 = vst [vmem:[#allocation1 + $0x7] ss:$9 sm:$0xff] %v5720_v61  ;;  %v5936_v61 = vld [vmem:[#allocation67_spill] sm:$0xff] }
 0x4f6   : > { %v2193_v42 = vpop.f32.mrf.mxu2 }
 0x4f7   : > { %v2378_v41 = vadd.f32 %v2377_v43, %v2193_v42  ;;  %v5277_v42 = vld [vmem:[%s5443_s3] ss:$0 sm:$0xff] }
 0x4fc   : > { %v2482_v26 = vld [vmem:[#allocation1] sm:$0xff] }
 0x4fd   : > { %2483 = vst [vmem:[#allocation1] ss:$9 sm:$0xff] %v5721_v50  ;;  %v5937_v50 = vld [vmem:[#allocation68_spill] sm:$0xff] }
 0x4fe   : > { %2484 = vst [vmem:[#allocation1 + $0x1] ss:$9 sm:$0xff] %v5722_v44  ;;  %v5938_v44 = vld [vmem:[#allocation69_spill] sm:$0xff]  ;;  %v2195_v48 = vpop.f32.mrf.mxu2 }
 0x4ff   : > { %2485 = vst [vmem:[#allocation1 + $0x2] ss:$9 sm:$0xff] %v5882_v40  ;;  %v5947_v40 = vld [vmem:[#allocation83_spill] sm:$0xff] }
 0x500   : > { %2486 = vst [vmem:[#allocation1 + $0x3] ss:$9 sm:$0xff] %v5883_v13  ;;  %v5948_v13 = vld [vmem:[#allocation84_spill] sm:$0xff] }
 0x501   : > { %3347 = vmatmul.msk.bf16.gmra.mxu0 %vm867_vm4, %v2482_v26  ;;  %2487 = vst [vmem:[#allocation1 + $0x4] ss:$9 sm:$0xff] %v5792_v47 }
 0x502   : > { %2488 = vst [vmem:[#allocation1 + $0x5] ss:$9 sm:$0xff] %v5793_v10 }
 0x503   : > { %2489 = vst [vmem:[#allocation1 + $0x6] ss:$9 sm:$0xff] %v5795_v4  ;;  %v2379_v4 = vpop.f32.mrf.mxu3 }
 0x504   : > { %2490 = vst [vmem:[#allocation1 + $0x7] ss:$9 sm:$0xff] %v5796_v51  ;;  %v5939_v51 = vld [vmem:[#allocation70_spill] sm:$0xff]  ;;  %v2380_v32 = vadd.f32 %v2379_v4, %v2195_v48 }
 0x506   : > { %v2198_v36 = vpop.f32.mrf.mxu2 }
 0x50b   : > { %v2491_v27 = vld [vmem:[#allocation1] sm:$0xff]  ;;  %v2382_v53 = vpop.f32.mrf.mxu3 }
 0x50c   : > { %2492 = vst [vmem:[#allocation1] ss:$9 sm:$0xff] %v5930_v45  ;;  %v5956_v45 = vld [vmem:[#allocation96_spill] sm:$0xff] }
 0x50d   : > { %2493 = vst [vmem:[#allocation1 + $0x1] ss:$9 sm:$0xff] %v5931_v17  ;;  %v5957_v17 = vld [vmem:[#allocation44_spill] sm:$0xff] }
 0x50e   : > { %2494 = vst [vmem:[#allocation1 + $0x2] ss:$9 sm:$0xff] %v5884_v31  ;;  %v5949_v31 = vld [vmem:[#allocation85_spill] sm:$0xff] }
 0x50f   : > { %2495 = vst [vmem:[#allocation1 + $0x3] ss:$9 sm:$0xff] %v5885_v2  ;;  %v5950_v2 = vld [vmem:[#allocation86_spill] sm:$0xff] }
 0x510   : > { %2496 = vst [vmem:[#allocation1 + $0x4] ss:$9 sm:$0xff] %v5923_v28  ;;  %v2200_v28 = vpop.f32.mrf.mxu2 }
 0x511   : > { %3348 = vmatmul.msk.bf16.gmra.mxu0 %vm867_vm4, %v2491_v27  ;;  %2497 = vst [vmem:[#allocation1 + $0x5] ss:$9 sm:$0xff] %v5932_v23  ;;  %v1088_v23 = vadd.f32 %v5957_v17, %v5956_v45  ;;  %v5965_v17 = vld [vmem:[#allocation35_spill] sm:$0xff] }
 0x512   : > { %2498 = vst [vmem:[#allocation1 + $0x6] ss:$9 sm:$0xff] %v5933_v24  ;;  %v5958_v24 = vld [vmem:[#allocation94_spill] sm:$0xff] }
 0x513   : > { %2499 = vst [vmem:[#allocation1 + $0x7] ss:$9 sm:$0xff] %v5934_v38  ;;  %v2384_v11 = vpop.f32.mrf.mxu3  ;;  %v2018_v38 = vadd.f32 %v1965_v58, %v5958_v24  ;;  %v5964_v58 = vld [vmem:[#allocation54_spill] sm:$0xff]  ;;  %v5967_v24 = vld [vmem:[#allocation37_spill] sm:$0xff] }
 0x518   : > { %v2203_v0 = vpop.f32.mrf.mxu2 }
 0x51a   : > { %v2500_v10 = vld [vmem:[#allocation1] sm:$0xff] }
 0x51b   : > { %2501 = vst [vmem:[#allocation1] ss:$9 sm:$0xff] %v5935_v16  ;;  %v2387_v57 = vpop.f32.mrf.mxu3 }
 0x51c   : > { %2502 = vst [vmem:[#allocation1 + $0x1] ss:$9 sm:$0xff] %v5936_v61  ;;  %v2388_v56 = vadd.f32 %v2387_v57, %v2203_v0  ;;  %v5968_v0 = vrot.slane %v5967_v24, 1 }
 0x51d   : > { %2503 = vst [vmem:[#allocation1 + $0x2] ss:$9 sm:$0xff] %v5937_v50  ;;  %v5959_v50 = vld [vmem:[#allocation90_spill] sm:$0xff] }
 0x51e   : > { %2504 = vst [vmem:[#allocation1 + $0x3] ss:$9 sm:$0xff] %v5938_v44  ;;  %v1330_v44 = vadd.f32 %v5959_v50, %v1088_v23  ;;  %v5966_v23 = vrot.slane %v5965_v17, 1 }
 0x51f   : > { %2505 = vst [vmem:[#allocation1 + $0x4] ss:$9 sm:$0xff] %v5939_v51 }
 0x520   : > { %2506 = vst [vmem:[#allocation1 + $0x5] ss:$9 sm:$0xff] %v5940_v30  ;;  %v2205_v27 = vpop.f32.mrf.mxu2  ;;  %v1971_v57 = vsel %vm1962_vm5, %v5968_v0, %v5966_v23 }
 0x521   : > { %3349 = vmatmul.msk.bf16.gmra.mxu0 %vm867_vm4, %v2500_v10  ;;  %2507 = vst [vmem:[#allocation1 + $0x6] ss:$9 sm:$0xff] %v5941_v54  ;;  %v2383_v10 = vadd.f32 %v2382_v53, %v2198_v36  ;;  %v5960_v54 = vld [vmem:[#allocation109_spill] sm:$0xff] }
 0x522   : > { %2508 = vst [vmem:[#allocation1 + $0x7] ss:$9 sm:$0xff] %v5942_v9  ;;  %v5961_v48 = vrot.slane %v5960_v54, 1 }
 0x523   : > { %v2389_v43 = vpop.f32.mrf.mxu3 }
 0x524   : > { %v1967_v9 = vsel %vm1962_vm5, %v1964_v18, %v5961_v48  ;;  %v5962_v18 = vld [vmem:[#allocation40_spill] sm:$0xff] }
 0x529   : > { %v2509_v47 = vld [vmem:[#allocation1] sm:$0xff] }
 0x52a   : > { %2510 = vst [vmem:[#allocation1] ss:$9 sm:$0xff] %v5943_v34 }
 0x52b   : > { %2511 = vst [vmem:[#allocation1 + $0x1] ss:$9 sm:$0xff] %v5944_v7  ;;  %v2019_v7 = vadd.f32 %v1967_v9, %v1330_v44 }
 0x52c   : > { %2512 = vst [vmem:[#allocation1 + $0x2] ss:$9 sm:$0xff] %v5945_v37 }
 0x52d   : > { %2513 = vst [vmem:[#allocation1 + $0x3] ss:$9 sm:$0xff] %v5946_v6 }
 0x52e   : > { %2514 = vst [vmem:[#allocation1 + $0x4] ss:$9 sm:$0xff] %v5947_v40  ;;  %v2208_v40 = vpop.f32.mrf.mxu2 }
 0x52f   : > { %2515 = vst [vmem:[#allocation1 + $0x5] ss:$9 sm:$0xff] %v5948_v13 }
 0x530   : > { %2516 = vst [vmem:[#allocation1 + $0x6] ss:$9 sm:$0xff] %v5949_v31  ;;  %v2392_v31 = vpop.f32.mrf.mxu3 }
 0x531   : > { %3350 = vmatmul.msk.bf16.gmra.mxu0 %vm867_vm4, %v2509_v47  ;;  %2517 = vst [vmem:[#allocation1 + $0x7] ss:$9 sm:$0xff] %v5950_v2  ;;  %v2385_v2 = vadd.f32 %v2384_v11, %v2200_v28 }
 0x536   : > { %v2210_v11 = vpop.f32.mrf.mxu2 }
 0x538   : > { %v2518_v55 = vld [vmem:[#allocation1] sm:$0xff]  ;;  %v2394_v45 = vpop.f32.mrf.mxu3 }
 0x53e   : > { %v2570_v3 = vpop.f32.mrf.mxu0 }
 0x53f   : > { %v5265_v33 = vadd.f32 %v2570_v3, %v2378_v41 }
 0x541   : > { %3351 = vmatmul.msk.bf16.gmra.mxu0 %vm867_vm4, %v2518_v55  ;;  %v2652_v25 = vrot.slane %v5265_v33, 2 }
 0x546   : > { %v2572_v63 = vpop.f32.mrf.mxu0 }
 0x547   : > { %v2616_v22 = vadd.f32 %v2572_v63, %v2380_v32  ;;  %v5963_v32 = vld [vmem:[#allocation56_spill] sm:$0xff] }
 0x548   : > { %v1093_v63 = vadd.f32 %v5963_v32, %v5962_v18  ;;  %v5973_v32 = vld [vmem:[#allocation39_spill] sm:$0xff] }
 0x549   : > { %v2653_v26 = vrot.slane %v2616_v22, 2 }
 0x54b   : > { %v2654_v16 = vsel %vm2651_vm6, %v2652_v25, %v2653_v26 }
 0x54c   : > { %v2707_v61 = vadd.f32 %v2654_v16, %v2018_v38 }
 0x54e   : > { %v2729_v51 = vadd.f32 %v5277_v42, %v2707_v61  ;;  %v2575_v30 = vpop.f32.mrf.mxu0 }
 0x54f   : > { %v2617_v4 = vadd.f32 %v2575_v30, %v2383_v10  ;;  %v5969_v10 = vld [vmem:[#allocation92_spill] sm:$0xff] }
 0x550   : > { %v2747_v47 = vmax.f32 %v2729_v51, 0.0  ;;  %v1332_v16 = vadd.f32 %v5969_v10, %v1093_v63  ;;  %v5974_v63 = vrot.slane %v5973_v32, 1 }
 0x551   : > { %v2655_v34 = vrot.slane %v2617_v4, 2 }
 0x552   : > { %v2783_v37 = vrot.slane %v2747_v47, 2  ;;  %v2784_v36 = vrot.slane %v2747_v47, 4  ;;  %v2785_v53 = vrot.slane %v2747_v47, 6  ;;  %2831 = vst [vmem:[#allocation1] ss:$4 sm:$0xff] %v2747_v47  ;;  %v2021_v44 = vadd.f32 %v1971_v57, %v1332_v16 }
 0x553   : > { %v2656_v6 = vsel %vm2651_vm6, %v2653_v26, %v2655_v34  ;;  %v2390_v47 = vadd.f32 %v2389_v43, %v2205_v27  ;;  %v2393_v27 = vadd.f32 %v2392_v31, %v2208_v40  ;;  %v5977_v31 = vld [vmem:[#allocation93_spill] sm:$0xff] }
 0x554   : > { %2833 = vst [vmem:[#allocation1 + $0x1] ss:$4 sm:$0xff] %v2783_v37  ;;  %v2708_v13 = vadd.f32 %v2656_v6, %v2019_v7  ;;  %v2213_v6 = vpop.f32.mrf.mxu2 }
 0x555   : > { %2835 = vst [vmem:[#allocation1 + $0x2] ss:$4 sm:$0xff] %v2784_v36 }
 0x556   : > { %2837 = vst [vmem:[#allocation1 + $0x3] ss:$4 sm:$0xff] %v2785_v53  ;;  %v2730_v14 = vadd.f32 %v5277_v42, %v2708_v13  ;;  %v2577_v8 = vpop.f32.mrf.mxu0 }
 0x557   : > { %v2618_v49 = vadd.f32 %v2577_v8, %v2385_v2  ;;  %v2397_v2 = vpop.f32.mrf.mxu3 }
 0x558   : > { %v2748_v3 = vmax.f32 %v2730_v14, 0.0 }
 0x559   : > { %v2657_v55 = vrot.slane %v2618_v49, 2 }
 0x55a   : > { %v2786_v46 = vrot.slane %v2748_v3, 2  ;;  %v2787_v39 = vrot.slane %v2748_v3, 4  ;;  %v2788_v12 = vrot.slane %v2748_v3, 6  ;;  %2839 = vst [vmem:[#allocation1 + $0x20] ss:$4 sm:$0xff] %v2748_v3 }
 0x55b   : > { %v2658_v41 = vsel %vm2651_vm6, %v2655_v34, %v2657_v55 }
 0x55c   : > { %2841 = vst [vmem:[#allocation1 + $0x21] ss:$4 sm:$0xff] %v2786_v46  ;;  %v2709_v28 = vadd.f32 %v2658_v41, %v5964_v58  ;;  %v5971_v46 = vld [vmem:[#allocation87_spill] sm:$0xff]  ;;  %v5975_v58 = vld [vmem:[#allocation36_spill] sm:$0xff]  ;;  %v2215_v24 = vpop.f32.mrf.mxu2 }
 0x55d   : > { %2843 = vst [vmem:[#allocation1 + $0x22] ss:$4 sm:$0xff] %v2787_v39  ;;  %v2846_v9 = vld.sshfl [vmem:[#allocation1] sm:$0xff pattern:$0x73625140] }
 0x55e   : > { %2845 = vst [vmem:[#allocation1 + $0x23] ss:$4 sm:$0xff] %v2788_v12  ;;  %v2731_v22 = vadd.f32 %v5277_v42, %v2709_v28  ;;  %v2580_v26 = vpop.f32.mrf.mxu0  ;;  %v5972_v12 = vld [vmem:[#allocation38_spill] sm:$0xff]  ;;  %v5976_v28 = vrot.slane %v5975_v58, 1 }
 0x55f   : > { %v2619_v38 = vadd.f32 %v2580_v26, %v2388_v56  ;;  %v2399_v10 = vpop.f32.mrf.mxu3 }
 0x560   : > { %v2749_v61 = vmax.f32 %v2731_v22, 0.0  ;;  %v1975_v22 = vsel %vm1962_vm5, %v5976_v28, %v5974_v63 }
 0x561   : > { %v2659_v50 = vrot.slane %v2619_v38, 2 }
 0x562   : > { %v2789_v51 = vrot.slane %v2749_v61, 2  ;;  %v2790_v30 = vrot.slane %v2749_v61, 4  ;;  %v2791_v54 = vrot.slane %v2749_v61, 6 }
 0x563   : > { %v2660_v48 = vsel %vm2651_vm6, %v2657_v55, %v2659_v50  ;;  %v5970_v55 = vld [vmem:[#allocation42_spill] sm:$0xff] }
 0x564   : > { %v2710_v4 = vadd.f32 %v2660_v48, %v2021_v44  ;;  %2848 = vst [vmem:[#allocation1] ss:$4 sm:$0xff] %v2789_v51  ;;  %v1098_v39 = vadd.f32 %v5971_v46, %v5970_v55  ;;  %v2395_v44 = vadd.f32 %v2394_v45, %v2210_v11  ;;  %v5979_v11 = vld [vmem:[#allocation88_spill] sm:$0xff]  ;;  %v5981_v55 = vld [vmem:[#allocation46_spill] sm:$0xff] }
 0x565   : > { %v2847_v34 = vld.sshfl [vmem:[#allocation1 + $0x20] sm:$0xff pattern:$0x73625140]  ;;  %2849 = vst [vmem:[#allocation1 + $0x1] ss:$4 sm:$0xff] %v2790_v30  ;;  %v5982_v46 = vrot.slane %v5981_v55, 1 }
 0x566   : > { %v2732_v7 = vadd.f32 %v5277_v42, %v2710_v4  ;;  %v2582_v37 = vpop.f32.mrf.mxu0  ;;  %2850 = vst [vmem:[#allocation1 + $0x2] ss:$4 sm:$0xff] %v2791_v54  ;;  %v3403_v36 = vpack.c.bf16 %v2847_v34, %v2846_v9  ;;  %v1334_v26 = vadd.f32 %v5977_v31, %v1098_v39  ;;  %v5983_v39 = vld [vmem:[#allocation41_spill] sm:$0xff]  ;;  %v2400_v31 = vadd.f32 %v2399_v10, %v2215_v24  ;;  %v5986_v24 = vld [vmem:[#allocation55_spill] sm:$0xff] }
 0x567   : > { %v2620_v53 = vadd.f32 %v2582_v37, %v2390_v47  ;;  %v2398_v37 = vadd.f32 %v2397_v2, %v2213_v6  ;;  %v5984_v6 = vrot.slane %v5983_v39, 1  ;;  %v5987_v10 = vld [vmem:[#allocation89_spill] sm:$0xff] }
 0x568   : > { %v2750_v13 = vmax.f32 %v2732_v7, 0.0  ;;  %3404 = vst [vmem:[%s5303_s11] sm:$0xff] %v3403_v36   ;;  %v2023_v0 = vadd.f32 %v1975_v22, %v1334_v26 }
 0x569   : > { %v2661_v14 = vrot.slane %v2620_v53, 2  ;;  %v2218_v53 = vpop.f32.mrf.mxu2  ;;  %v1979_v2 = vsel %vm1962_vm5, %v5984_v6, %v5982_v46 }
 0x56a   : > { %v2792_v8 = vrot.slane %v2750_v13, 2  ;;  %v2793_v49 = vrot.slane %v2750_v13, 4  ;;  %v2794_v3 = vrot.slane %v2750_v13, 6  ;;  %2851 = vst [vmem:[#allocation1 + $0x3] ss:$4 sm:$0xff] %v2750_v13 }
 0x56b   : > { %v2662_v43 = vsel %vm2651_vm6, %v2659_v50, %v2661_v14 }
 0x56c   : > { %2852 = vst [vmem:[#allocation1 + $0x20] ss:$4 sm:$0xff] %v2792_v8  ;;  %v2711_v56 = vadd.f32 %v2662_v43, %v5972_v12  ;;  %v5980_v8 = vld [vmem:[#allocation45_spill] sm:$0xff] }
 0x56d   : > { %2853 = vst [vmem:[#allocation1 + $0x21] ss:$4 sm:$0xff] %v2793_v49 }
 0x56e   : > { %2854 = vst [vmem:[#allocation1 + $0x22] ss:$4 sm:$0xff] %v2794_v3  ;;  %v2733_v41 = vadd.f32 %v5277_v42, %v2711_v56  ;;  %v2585_v18 = vpop.f32.mrf.mxu0  ;;  %v2402_v3 = vpop.f32.mrf.mxu3  ;;  %v5985_v56 = vld [vmem:[#allocation95_spill] sm:$0xff] }
 0x56f   : > { %v2621_v40 = vadd.f32 %v2585_v18, %v2393_v27 }
 0x570   : > { %v2751_v17 = vmax.f32 %v2733_v41, 0.0 }
 0x571   : > { %v2663_v23 = vrot.slane %v2621_v40, 2  ;;  %v2856_v61 = vld.sshfl [vmem:[#allocation1] sm:$0xff pattern:$0x73625140]  ;;  %v2220_v26 = vpop.f32.mrf.mxu2 }
 0x572   : > { %v2795_v57 = vrot.slane %v2751_v17, 4  ;;  %v2796_v38 = vrot.slane %v2751_v17, 6  ;;  %2855 = vst [vmem:[#allocation1 + $0x23] ss:$4 sm:$0xff] %v2751_v17 }
 0x573   : > { %v2664_v16 = vsel %vm2651_vm6, %v2661_v14, %v2663_v23  ;;  %v5978_v14 = vld [vmem:[#allocation43_spill] sm:$0xff] }
 0x574   : > { %v2712_v50 = vadd.f32 %v2664_v16, %v2023_v0  ;;  %2858 = vst [vmem:[#allocation1] ss:$4 sm:$0xff] %v2795_v57  ;;  %v1103_v45 = vadd.f32 %v5979_v11, %v5978_v14  ;;  %v5991_v14 = vld [vmem:[#allocation47_spill] sm:$0xff] }
 0x575   : > { %2859 = vst [vmem:[#allocation1 + $0x1] ss:$4 sm:$0xff] %v2796_v38  ;;  %v5992_v11 = vrot.slane %v5991_v14, 1 }
 0x576   : > { %v2734_v51 = vadd.f32 %v5277_v42, %v2712_v50  ;;  %v2587_v30 = vpop.f32.mrf.mxu0  ;;  %v1336_v41 = vadd.f32 %v5985_v56, %v1103_v45  ;;  %v2404_v57 = vpop.f32.mrf.mxu3 }
 0x577   : > { %v2622_v54 = vadd.f32 %v2587_v30, %v2395_v44  ;;  %v2405_v56 = vadd.f32 %v2404_v57, %v2220_v26 }
 0x578   : > { %v2752_v48 = vmax.f32 %v2734_v51, 0.0  ;;  %v2025_v63 = vadd.f32 %v1979_v2, %v1336_v41 }
 0x579   : > { %v2857_v9 = vld.sshfl [vmem:[#allocation1 + $0x20] sm:$0xff pattern:$0x73625140]  ;;  %v2665_v4 = vrot.slane %v2622_v54, 2  ;;  %v2403_v54 = vadd.f32 %v2402_v3, %v2218_v53 }
 0x57a   : > { %v2797_v47 = vrot.slane %v2752_v48, 2  ;;  %v2798_v34 = vrot.slane %v2752_v48, 4  ;;  %v2799_v7 = vrot.slane %v2752_v48, 6  ;;  %2860 = vst [vmem:[#allocation1 + $0x2] ss:$4 sm:$0xff] %v2752_v48  ;;  %v3408_v13 = vpack.c.bf16 %v2857_v9, %v2856_v61 }
 0x57b   : > { %v2666_v36 = vsel %vm2651_vm6, %v2663_v23, %v2665_v4  ;;  %v1108_v9 = vadd.f32 %v5987_v10, %v5986_v24 }
 0x57c   : > { %2862 = vst [vmem:[#allocation1 + $0x20] ss:$4 sm:$0xff] %v2798_v34  ;;  %v2713_v49 = vadd.f32 %v2666_v36, %v5980_v8  ;;  %v5989_v36 = vld [vmem:[#allocation52_spill] sm:$0xff]  ;;  %v2223_v8 = vpop.f32.mrf.mxu2 }
 0x57d   : > { %2863 = vst [vmem:[#allocation1 + $0x21] ss:$4 sm:$0xff] %v2799_v7 }
 0x57e   : > { %v2735_v27 = vadd.f32 %v5277_v42, %v2713_v49  ;;  %v2590_v43 = vpop.f32.mrf.mxu0  ;;  %2861 = vst [vmem:[#allocation1 + $0x3] ss:$4 sm:$0xff] %v2797_v47  ;;  %v5993_v49 = vld [vmem:[#allocation98_spill] sm:$0xff] }
 0x57f   : > { %v2623_v12 = vadd.f32 %v2590_v43, %v2398_v37  ;;  %3440 = vst [vmem:[%s5303_s11 + $0x8] sm:$0xff] %v3408_v13   ;;  %v5990_v13 = vrot.slane %v5989_v36, 1  ;;  %v1338_v3 = vadd.f32 %v5993_v49, %v1108_v9  ;;  %v2407_v43 = vpop.f32.mrf.mxu3 }
 0x580   : > { %v2753_v18 = vmax.f32 %v2735_v27, 0.0 }
 0x581   : > { %v2667_v32 = vrot.slane %v2623_v12, 2  ;;  %v1983_v53 = vsel %vm1962_vm5, %v5992_v11, %v5990_v13 }
 0x582   : > { %v2800_v58 = vrot.slane %v2753_v18, 2  ;;  %v2801_v28 = vrot.slane %v2753_v18, 6  ;;  %2864 = vst [vmem:[#allocation1 + $0x22] ss:$4 sm:$0xff] %v2753_v18  ;;  %v2027_v46 = vadd.f32 %v1983_v53, %v1338_v3 }
 0x583   : > { %v2668_v22 = vsel %vm2651_vm6, %v2665_v4, %v2667_v32  ;;  %v5988_v4 = vld [vmem:[#allocation110_spill] sm:$0xff] }
 0x584   : > { %2865 = vst [vmem:[#allocation1 + $0x23] ss:$4 sm:$0xff] %v2800_v58  ;;  %v2714_v40 = vadd.f32 %v2668_v22, %v2025_v63 }
 0x585   : > { %v2866_v17 = vld.sshfl [vmem:[#allocation1] sm:$0xff pattern:$0x73625140] }
 0x586   : > { %v2736_v23 = vadd.f32 %v5277_v42, %v2714_v40  ;;  %v2592_v0 = vpop.f32.mrf.mxu0  ;;  %2868 = vst [vmem:[#allocation1] ss:$4 sm:$0xff] %v2801_v28  ;;  %v2225_v28 = vpop.f32.mrf.mxu2 }
 0x587   : > { %v2624_v38 = vadd.f32 %v2592_v0, %v2400_v31  ;;  %v2408_v0 = vadd.f32 %v2407_v43, %v2223_v8 }
 0x588   : > { %v2754_v16 = vmax.f32 %v2736_v23, 0.0  ;;  %v2409_v23 = vpop.f32.mrf.mxu3 }
 0x589   : > { %v2669_v61 = vrot.slane %v2624_v38, 2  ;;  %v2410_v8 = vadd.f32 %v2409_v23, %v2225_v28 }
 0x58a   : > { %v2802_v50 = vrot.slane %v2754_v16, 2  ;;  %v2803_v44 = vrot.slane %v2754_v16, 4  ;;  %v2804_v51 = vrot.slane %v2754_v16, 6  ;;  %2869 = vst [vmem:[#allocation1 + $0x1] ss:$4 sm:$0xff] %v2754_v16  ;;  %v5994_v16 = vld [vmem:[#allocation57_spill] sm:$0xff] }
 0x58b   : > { %v2867_v30 = vld.sshfl [vmem:[#allocation1 + $0x20] sm:$0xff pattern:$0x73625140]  ;;  %v2670_v48 = vsel %vm2651_vm6, %v2667_v32, %v2669_v61 }
 0x58c   : > { %2872 = vst [vmem:[#allocation1 + $0x20] ss:$4 sm:$0xff] %v2804_v51  ;;  %v2715_v47 = vadd.f32 %v2670_v48, %v5988_v4  ;;  %v3413_v34 = vpack.c.bf16 %v2867_v30, %v2866_v17  ;;  %v5997_v48 = vld [vmem:[#allocation53_spill] sm:$0xff]  ;;  %v5999_v4 = vld [vmem:[#allocation103_spill] sm:$0xff] }
 0x58d   : > { %2870 = vst [vmem:[#allocation1 + $0x2] ss:$4 sm:$0xff] %v2802_v50  ;;  %v5996_v50 = vld [vmem:[#allocation60_spill] sm:$0xff]  ;;  %v5998_v24 = vrot.slane %v5997_v48, 1 }
 0x58e   : > { %v2737_v7 = vadd.f32 %v5277_v42, %v2715_v47  ;;  %v2595_v37 = vpop.f32.mrf.mxu0  ;;  %2871 = vst [vmem:[#allocation1 + $0x3] ss:$4 sm:$0xff] %v2803_v44  ;;  %v2228_v53 = vpop.f32.mrf.mxu2 }
 0x58f   : > { %v2625_v45 = vadd.f32 %v2595_v37, %v2403_v54  ;;  %3441 = vst [vmem:[%s5303_s11 + $0x10] sm:$0xff] %v3413_v34   ;;  %v1987_v10 = vsel %vm1962_vm5, %v5998_v24, %v1986_v19 }
 0x590   : > { %v2755_v27 = vmax.f32 %v2737_v7, 0.0 }
 0x591   : > { %v2671_v55 = vrot.slane %v2625_v45, 2  ;;  %v2412_v45 = vpop.f32.mrf.mxu3 }
 0x592   : > { %v2805_v39 = vrot.slane %v2755_v27, 2  ;;  %v2806_v6 = vrot.slane %v2755_v27, 4  ;;  %2873 = vst [vmem:[#allocation1 + $0x21] ss:$4 sm:$0xff] %v2755_v27 }
 0x593   : > { %v2672_v2 = vsel %vm2651_vm6, %v2669_v61, %v2671_v55  ;;  %v5995_v61 = vld [vmem:[#allocation91_spill] sm:$0xff] }
 0x594   : > { %2874 = vst [vmem:[#allocation1 + $0x22] ss:$4 sm:$0xff] %v2805_v39  ;;  %v2716_v12 = vadd.f32 %v2672_v2, %v2027_v46  ;;  %v1113_v26 = vadd.f32 %v5995_v61, %v5994_v16 }
 0x595   : > { %2875 = vst [vmem:[#allocation1 + $0x23] ss:$4 sm:$0xff] %v2806_v6  ;;  %v2876_v22 = vld.sshfl [vmem:[#allocation1] sm:$0xff pattern:$0x73625140]  ;;  %v2413_v6 = vadd.f32 %v2412_v45, %v2228_v53 }
 0x596   : > { %v2738_v41 = vadd.f32 %v5277_v42, %v2716_v12  ;;  %v2597_v18 = vpop.f32.mrf.mxu0  ;;  %v1340_v47 = vadd.f32 %v5999_v4, %v1113_v26 }
 0x597   : > { %v2626_v32 = vadd.f32 %v2597_v18, %v2405_v56  ;;  %v2230_v18 = vpop.f32.mrf.mxu2 }
 0x598   : > { %v2756_v63 = vmax.f32 %v2738_v41, 0.0  ;;  %v2029_v37 = vadd.f32 %v1987_v10, %v1340_v47 }
 0x599   : > { %v2673_v58 = vrot.slane %v2626_v32, 2 }
 0x59a   : > { %v2807_v40 = vrot.slane %v2756_v63, 2  ;;  %v2808_v31 = vrot.slane %v2756_v63, 4  ;;  %v2809_v17 = vrot.slane %v2756_v63, 6  ;;  %2878 = vst [vmem:[#allocation1] ss:$4 sm:$0xff] %v2756_v63  ;;  %v2414_v63 = vpop.f32.mrf.mxu3 }
 0x59b   : > { %v2674_v38 = vsel %vm2651_vm6, %v2671_v55, %v2673_v58  ;;  %v2415_v16 = vadd.f32 %v2414_v63, %v2230_v18 }
 0x59c   : > { %v2877_v57 = vld.sshfl [vmem:[#allocation1 + $0x20] sm:$0xff pattern:$0x73625140]  ;;  %v2717_v44 = vadd.f32 %v2674_v38, %v5996_v50  ;;  %2879 = vst [vmem:[#allocation1 + $0x1] ss:$4 sm:$0xff] %v2807_v40 }
 0x59d   : > { %2880 = vst [vmem:[#allocation1 + $0x2] ss:$4 sm:$0xff] %v2808_v31  ;;  %v3418_v51 = vpack.c.bf16 %v2877_v57, %v2876_v22 }
 0x59e   : > { %v2739_v30 = vadd.f32 %v5277_v42, %v2717_v44  ;;  %v2600_v54 = vpop.f32.mrf.mxu0  ;;  %2881 = vst [vmem:[#allocation1 + $0x3] ss:$4 sm:$0xff] %v2809_v17 }
 0x59f   : > { %v2627_v9 = vadd.f32 %v2600_v54, %v2408_v0  ;;  %3442 = vst [vmem:[%s5303_s11 + $0x18] sm:$0xff] %v3418_v51   ;;  %v2233_v44 = vpop.f32.mrf.mxu2 }
 0x5a0   : > { %v2757_v34 = vmax.f32 %v2739_v30, 0.0 }
 0x5a1   : > { %v2675_v7 = vrot.slane %v2627_v9, 2 }
 0x5a2   : > { %v2810_v36 = vrot.slane %v2757_v34, 2  ;;  %v2811_v13 = vrot.slane %v2757_v34, 4  ;;  %v2812_v14 = vrot.slane %v2757_v34, 6  ;;  %2882 = vst [vmem:[#allocation1 + $0x20] ss:$4 sm:$0xff] %v2757_v34  ;;  %v2417_v51 = vpop.f32.mrf.mxu3 }
 0x5a3   : > { %v2676_v11 = vsel %vm2651_vm6, %v2673_v58, %v2675_v7  ;;  %v2418_v24 = vadd.f32 %v2417_v51, %v2233_v44 }
 0x5a4   : > { %2883 = vst [vmem:[#allocation1 + $0x21] ss:$4 sm:$0xff] %v2810_v36  ;;  %v2718_v59 = vadd.f32 %v2676_v11, %v2029_v37 }
 0x5a5   : > { %2884 = vst [vmem:[#allocation1 + $0x22] ss:$4 sm:$0xff] %v2811_v13  ;;  %v2886_v12 = vld.sshfl [vmem:[#allocation1] sm:$0xff pattern:$0x73625140] }
 0x5a6   : > { %2885 = vst [vmem:[#allocation1 + $0x23] ss:$4 sm:$0xff] %v2812_v14  ;;  %v2740_v19 = vadd.f32 %v5277_v42, %v2718_v59  ;;  %v2602_v49 = vpop.f32.mrf.mxu0 }
 0x5a7   : > { %v2628_v3 = vadd.f32 %v2602_v49, %v2410_v8  ;;  %v2235_v53 = vpop.f32.mrf.mxu2 }
 0x5a8   : > { %v2758_v27 = vmax.f32 %v2740_v19, 0.0  ;;  %v6001_v19 = vld [vmem:[#allocation105_spill] sm:$0xff] }
 0x5a9   : > { %v2677_v43 = vrot.slane %v2628_v3, 2 }
 0x5aa   : > { %v2813_v55 = vrot.slane %v2758_v27, 2  ;;  %v2814_v46 = vrot.slane %v2758_v27, 4  ;;  %v2815_v39 = vrot.slane %v2758_v27, 6  ;;  %v2419_v59 = vpop.f32.mrf.mxu3 }
 0x5ab   : > { %v2678_v2 = vsel %vm2651_vm6, %v2675_v7, %v2677_v43  ;;  %v2420_v27 = vadd.f32 %v2419_v59, %v2235_v53 }
 0x5ac   : > { %v2719_v56 = vadd.f32 %v2678_v2, %v5153_v21  ;;  %2888 = vst [vmem:[#allocation1] ss:$4 sm:$0xff] %v2813_v55 }
 0x5ad   : > { %v2887_v41 = vld.sshfl [vmem:[#allocation1 + $0x20] sm:$0xff pattern:$0x73625140]  ;;  %2889 = vst [vmem:[#allocation1 + $0x1] ss:$4 sm:$0xff] %v2814_v46  ;;  %v2017_v46 = vsel %vm1962_vm5, %v1996_v62, %v1963_v35 }
 0x5ae   : > { %v2741_v32 = vadd.f32 %v5277_v42, %v2719_v56  ;;  %v2605_v58 = vpop.f32.mrf.mxu0  ;;  %2890 = vst [vmem:[#allocation1 + $0x2] ss:$4 sm:$0xff] %v2815_v39  ;;  %v3423_v28 = vpack.c.bf16 %v2887_v41, %v2886_v12 }
 0x5af   : > { %v2629_v22 = vadd.f32 %v2605_v58, %v2413_v6 }
 0x5b0   : > { %v2759_v40 = vmax.f32 %v2741_v32, 0.0  ;;  %3443 = vst [vmem:[%s5303_s11 + $0x20] sm:$0xff] %v3423_v28  }
 0x5b1   : > { %v2679_v31 = vrot.slane %v2629_v22, 2 }
 0x5b2   : > { %v2816_v17 = vrot.slane %v2759_v40, 2  ;;  %v2817_v23 = vrot.slane %v2759_v40, 4  ;;  %v2818_v0 = vrot.slane %v2759_v40, 6  ;;  %2891 = vst [vmem:[#allocation1 + $0x3] ss:$4 sm:$0xff] %v2759_v40 }
 0x5b3   : > { %v2680_v21 = vsel %vm2651_vm6, %v2677_v43, %v2679_v31 }
 0x5b4   : > { %2892 = vst [vmem:[#allocation1 + $0x20] ss:$4 sm:$0xff] %v2816_v17  ;;  %v2720_v38 = vadd.f32 %v2680_v21, %v5163_v5 }
 0x5b5   : > { %2893 = vst [vmem:[#allocation1 + $0x21] ss:$4 sm:$0xff] %v2817_v23 }
 0x5b6   : > { %2894 = vst [vmem:[#allocation1 + $0x22] ss:$4 sm:$0xff] %v2818_v0  ;;  %v2742_v61 = vadd.f32 %v5277_v42, %v2720_v38  ;;  %v2607_v26 = vpop.f32.mrf.mxu0 }
 0x5b7   : > { %v2630_v57 = vadd.f32 %v2607_v26, %v2415_v16 }
 0x5b8   : > { %v2760_v50 = vmax.f32 %v2742_v61, 0.0 }
 0x5b9   : > { %v2681_v30 = vrot.slane %v2630_v57, 2  ;;  %v2896_v9 = vld.sshfl [vmem:[#allocation1] sm:$0xff pattern:$0x73625140] }
 0x5ba   : > { %v2819_v54 = vrot.slane %v2760_v50, 4  ;;  %v2820_v48 = vrot.slane %v2760_v50, 6  ;;  %2895 = vst [vmem:[#allocation1 + $0x23] ss:$4 sm:$0xff] %v2760_v50 }
 0x5bb   : > { %v2682_v10 = vsel %vm2651_vm6, %v2679_v31, %v2681_v30 }
 0x5bc   : > { %v2721_v5 = vadd.f32 %v2682_v10, %v5172_v1  ;;  %2898 = vst [vmem:[#allocation1] ss:$4 sm:$0xff] %v2819_v54  ;;  %v6000_v1 = vld [vmem:[#allocation97_spill] sm:$0xff] }
 0x5bd   : > { %2899 = vst [vmem:[#allocation1 + $0x1] ss:$4 sm:$0xff] %v2820_v48  ;;  %v1128_v49 = vadd.f32 %v6001_v19, %v6000_v1 }
 0x5be   : > { %v2743_v4 = vadd.f32 %v5277_v42, %v2721_v5  ;;  %v2610_v47 = vpop.f32.mrf.mxu0 }
 0x5bf   : > { %v2631_v34 = vadd.f32 %v2610_v47, %v2418_v24  ;;  %v1346_v6 = vadd.f32 %v5230_v20, %v1128_v49 }
 0x5c0   : > { %v2761_v7 = vmax.f32 %v2743_v4, 0.0 }
 0x5c1   : > { %v2897_v37 = vld.sshfl [vmem:[#allocation1 + $0x20] sm:$0xff pattern:$0x73625140]  ;;  %v2683_v36 = vrot.slane %v2631_v34, 2  ;;  %v2035_v56 = vadd.f32 %v2017_v46, %v1346_v6 }
 0x5c2   : > { %v2821_v13 = vrot.slane %v2761_v7, 2  ;;  %v2822_v14 = vrot.slane %v2761_v7, 4  ;;  %v2823_v11 = vrot.slane %v2761_v7, 6  ;;  %2900 = vst [vmem:[#allocation1 + $0x2] ss:$4 sm:$0xff] %v2761_v7  ;;  %v3428_v8 = vpack.c.bf16 %v2897_v37, %v2896_v9 }
 0x5c3   : > { %v2684_v45 = vsel %vm2651_vm6, %v2681_v30, %v2683_v36 }
 0x5c4   : > { %2902 = vst [vmem:[#allocation1 + $0x20] ss:$4 sm:$0xff] %v2822_v14  ;;  %v2722_v3 = vadd.f32 %v2684_v45, %v5180_v60 }
 0x5c5   : > { %2903 = vst [vmem:[#allocation1 + $0x21] ss:$4 sm:$0xff] %v2823_v11 }
 0x5c6   : > { %v2744_v43 = vadd.f32 %v5277_v42, %v2722_v3  ;;  %v2612_v55 = vpop.f32.mrf.mxu0  ;;  %2901 = vst [vmem:[#allocation1 + $0x3] ss:$4 sm:$0xff] %v2821_v13 }
 0x5c7   : > { %v2632_v39 = vadd.f32 %v2612_v55, %v2420_v27  ;;  %3444 = vst [vmem:[%s5303_s11 + $0x28] sm:$0xff] %v3428_v8  }
 0x5c8   : > { %v2762_v2 = vmax.f32 %v2744_v43, 0.0 }
 0x5c9   : > { %v2685_v12 = vrot.slane %v2632_v39, 2 }
 0x5ca   : > { %v2824_v60 = vrot.slane %v2762_v2, 2  ;;  %v2825_v41 = vrot.slane %v2762_v2, 6  ;;  %2904 = vst [vmem:[#allocation1 + $0x22] ss:$4 sm:$0xff] %v2762_v2 }
 0x5cb   : > { %v2686_v18 = vsel %vm2651_vm6, %v2683_v36, %v2685_v12  ;;  %v2706_v52 = vsel %vm2651_vm6, %v2685_v12, %v2652_v25 }
 0x5cc   : > { %2905 = vst [vmem:[#allocation1 + $0x23] ss:$4 sm:$0xff] %v2824_v60  ;;  %v2723_v15 = vadd.f32 %v2686_v18, %v5195_v29  ;;  %v2724_v62 = vadd.f32 %v2706_v52, %v2035_v56 }
 0x5cd   : > { %v2906_v35 = vld.sshfl [vmem:[#allocation1] sm:$0xff pattern:$0x73625140] }
 0x5ce   : > { %v2745_v32 = vadd.f32 %v5277_v42, %v2723_v15  ;;  %v2746_v20 = vadd.f32 %v5277_v42, %v2724_v62  ;;  %2908 = vst [vmem:[#allocation1] ss:$4 sm:$0xff] %v2825_v41 }
 0x5d0   : > { %v2763_v63 = vmax.f32 %v2745_v32, 0.0  ;;  %v2764_v58 = vmax.f32 %v2746_v20, 0.0 }
 0x5d2   : > { %v2828_v28 = vrot.slane %v2763_v63, 6  ;;  %v2829_v22 = vrot.slane %v2764_v58, 2  ;;  %2909 = vst [vmem:[#allocation1 + $0x1] ss:$4 sm:$0xff] %v2763_v63  ;;  %v2830_v25 = vrot.slane %v2764_v58, 4  ;;  %v2826_v40 = vrot.slane %v2763_v63, 2 }
 0x5d3   : > { %v2907_v33 = vld.sshfl [vmem:[#allocation1 + $0x20] sm:$0xff pattern:$0x73625140]  ;;  %v2827_v29 = vrot.slane %v2763_v63, 4 }
 0x5d4   : > { %2912 = vst [vmem:[#allocation1 + $0x20] ss:$4 sm:$0xff] %v2828_v28  ;;  %v3433_v31 = vpack.c.bf16 %v2907_v33, %v2906_v35 }
 0x5d5   : > { %2913 = vst [vmem:[#allocation1 + $0x21] ss:$4 sm:$0xff] %v2764_v58 }
 0x5d6   : > { %2914 = vst [vmem:[#allocation1 + $0x22] ss:$4 sm:$0xff] %v2829_v22 }
 0x5d7   : > { %2915 = vst [vmem:[#allocation1 + $0x23] ss:$4 sm:$0xff] %v2830_v25 }
 0x5d8   : > { %2910 = vst [vmem:[#allocation1 + $0x2] ss:$4 sm:$0xff] %v2826_v40 }
 0x5d9   : > { %2911 = vst [vmem:[#allocation1 + $0x3] ss:$4 sm:$0xff] %v2827_v29 }
 0x5da   : > { %3445 = vst [vmem:[%s5303_s11 + $0x30] sm:$0xff] %v3433_v31  }
 0x5de   : > { %v2917_v42 = vld.sshfl [vmem:[#allocation1 + $0x20] sm:$0xff pattern:$0x73625140] }
 0x5e0   : > { %v2916_v17 = vld.sshfl [vmem:[#allocation1] sm:$0xff pattern:$0x73625140] }
 0x5e1   : > { %v3438_v23 = vpack.c.bf16 %v2917_v42, %v2916_v17 }
 0x5e3   : > { %3446 = vst [vmem:[%s5303_s11 + $0x38] sm:$0xff] %v3438_v23  }
 0x5e4   : > { %3690 = shalt.err (!%p3687_p6)
}
 0x5e5   : > { %s3789_s6 = smov 64   ;;  %s3790_s12 = smov 4  }
 0x5e6   : > { %3471 = dma.vmem_to_hbm [thread:$0]  (%p3924_p0), %s2983_s26, 1024, %s2985_s2, %s2967_s8, %s3789_s6, %s3789_s6, %s3790_s12  }
 0x5e7 PF: > { %s6002_s7 = sld [smem:[#allocation13_spill]]  ;;  %p3478_p2 = pnand %p3114_p12, %p3933_p7 }
 0x5e9   : > { %p3479_p8 = pneg %p3478_p2 }
 0x5ed   : > { %s2999_s24 = sand.u32 1, %s6002_s7  }
 0x5ee   : > { %s3000_s5 = scalar_lea.sflag [#allocation4], %s2999_s24 }
 0x5ef   : > { %3740 = dma.done.wait (%p3479_p8), %s3000_s5, 1024  }
 0x5f0   : > { %3742 = vsyncadd (%p3479_p8), %s3000_s5, 4294966272  ;;  %s23_s23 = sadd.s32 1, %s3779_s23   ;;  %s6004_s14 = sld [smem:[#allocation17_spill]] }
 0x5f1   : > { %p20_p1 = scmp.ge.s32.totalorder %s23_s23, 4   ;;  %s6005_s27 = sld [smem:[#allocation14_spill]] }
 0x5f2   : > { %s6006_s20 = sld [smem:[#allocation16_spill]]  ;;  %s6008_s15 = smov %s3751_s16 }
 0x5f3   : > { %s6007_s11 = sld [smem:[#allocation15_spill]]  ;;  %s6009_s16 = smov %s3755_s17 }
 0x5f4   : > { %s6011_s18 = smov %s3763_s19  ;;  %s6013_s21 = smov %s3775_s22 }
 0x5f5   :  { %22 = sbr.rel (!%p20_p1) target bundleno = 13 (0xd), region = 176 }
 0x5f6   : > { %s6010_s17 = smov %s6004_s14 }
 0x5f7   : > { %s6012_s19 = smov %s6005_s27 }
 0x5f9   : > { %s6014_s22 = smov %s6007_s11 }
 0x5fa   :  { %3006 = vsyncpa [#allocation3], 1 }
 0x5fb   :  { %3008 = vsyncpa [#allocation3 + $0x1], 1 }
 0x5fc   :  { %3009 = vsyncpa [#allocation6], 1 }
 0x5fd   :  { %3011 = vsyncpa [#allocation6 + $0x1], 1 }
 0x5fe   :  { %3012 = vsyncpa [#allocation4], 1 }
 0x5ff   :  { %3014 = vsyncpa [#allocation4 + $0x1], 1 }

</bundles_post_ra>
